<compile_context>
chip_gen: v7x
topology: tpu7x:2x2x1
jax: 0.10.0
libtpu: 0.0.40
codegen_flags: <defaults>
</compile_context>

<pallas_src>
import jax
import jax.numpy as jnp
from jax.experimental import pallas as pl
from jax.experimental.pallas import tpu as pltpu

EPS = 1e-5  # nn.BatchNorm2d default eps


def bottleneck_kernel(x_ref,
                      w1_ref, b1_ref,
                      w2_ref, b2_ref,
                      w3_ref, b3_ref,
                      out_ref,
                      t1p_ref):
    """One batch image per grid step (NHWC, N squeezed by the BlockSpec).

    x_ref   : (H, W, Cin)          f32
    w1_ref  : (Cin, width)         bf16   conv1 1x1 with BN1 folded in
    b1_ref  : (1, width)           f32
    w2_ref  : (3, 3*width, width)  bf16   conv2 3x3, BN2 folded, kx taps on K
    b2_ref  : (1, width)           f32
    w3_ref  : (width, Cout)        bf16   conv3 1x1 with BN3 folded in
    b3_ref  : (1, Cout)            f32
    out_ref : (H, W, Cout)         f32
    t1p_ref : (H+2, W, 3*width)    bf16   scratch: H-padded, kx-concatenated
    """
    H, W, Cin = x_ref.shape
    width = w1_ref.shape[1]
    Cout = w3_ref.shape[1]
    HW = H * W

    # ---- conv1 (1x1) + folded bn1 + relu ------------------------------------
    x2 = x_ref[...].reshape(HW, Cin)
    t1 = jnp.dot(x2.astype(jnp.bfloat16), w1_ref[...],
                 preferred_element_type=jnp.float32)
    t1 = jnp.maximum(t1 + b1_ref[...], 0.0)                    # (HW, width) f32

    # ---- build kx-shifted / K-concatenated operand for the 3x3 conv ---------
    # left/right column neighbours via XLU roll + border masking (no
    # sublane-misaligned slices of the scratch).
    col = jax.lax.broadcasted_iota(jnp.int32, (HW, width), 0) % W
    left = jnp.where(col == 0, 0.0, pltpu.roll(t1, 1, axis=0))         # t1[x-1]
    right = jnp.where(col == W - 1, 0.0, pltpu.roll(t1, HW - 1, axis=0))  # t1[x+1]
    bcat = jnp.concatenate([left, t1, right], axis=1).astype(jnp.bfloat16)

    # zero only the two H-halo rows; the interior is fully overwritten below.
    zero_row = jnp.zeros((1, W, 3 * width), jnp.bfloat16)
    t1p_ref[0:1] = zero_row
    t1p_ref[H + 1:H + 2] = zero_row
    t1p_ref[1:H + 1] = bcat.reshape(H, W, 3 * width)

    # ---- conv2 (3x3) as 3 wide-K matmuls (one per ky row) + bn2 + relu ------
    acc = jnp.zeros((HW, width), jnp.float32)
    for ky in range(3):
        patch = t1p_ref[ky:ky + H].reshape(HW, 3 * width)
        acc = acc + jnp.dot(patch, w2_ref[ky],
                            preferred_element_type=jnp.float32)
    t2 = jnp.maximum(acc + b2_ref[...], 0.0)

    # ---- conv3 (1x1) + folded bn3 + residual add + relu ---------------------
    t3 = jnp.dot(t2.astype(jnp.bfloat16), w3_ref[...],
                 preferred_element_type=jnp.float32)
    t3 = t3 + b3_ref[...] + x_ref[...].reshape(HW, Cout)   # identity: Cin == Cout
    out_ref[...] = jnp.maximum(t3, 0.0).reshape(H, W, Cout)


def _fold_bn(g, b, m, v):
    s = g * jax.lax.rsqrt(v + EPS)
    return s, b - m * s


def bottleneck_forward(x_nchw, p):
    """x_nchw: (N, C, H, W) float32 -> (N, C, H, W) float32."""
    x = jnp.transpose(x_nchw, (0, 2, 3, 1))                # NCHW -> NHWC
    N, H, W, Cin = x.shape
    width = p["w1"].shape[1]
    Cout = p["w3"].shape[1]
    assert Cin == Cout, "no downsample branch: inplanes must equal planes*4"

    # Fold eval-mode BatchNorm into conv weights / biases (wrapper-side).
    s1, b1 = _fold_bn(p["g1"], p["b1"], p["m1"], p["v1"])
    s2, b2 = _fold_bn(p["g2"], p["b2"], p["m2"], p["v2"])
    s3, b3 = _fold_bn(p["g3"], p["b3"], p["m3"], p["v3"])
    w1f = (p["w1"] * s1).astype(jnp.bfloat16)                       # (Cin, width)
    # (3,3,width,width) HWIO -> scale out channel, concat the 3 kx taps on K.
    w2f = (p["w2"] * s2).reshape(3, 3 * width, width).astype(jnp.bfloat16)
    w3f = (p["w3"] * s3).astype(jnp.bfloat16)                       # (width, Cout)

    flops = 2 * N * H * W * (Cin * width + 9 * width * width + width * Cout)
    bytes_accessed = ((x.size + N * H * W * Cout) * 4
                      + (w1f.size + w2f.size + w3f.size) * 2
                      + (b1.size + b2.size + b3.size) * 4)

    out = pl.pallas_call(
        bottleneck_kernel,
        out_shape=jax.ShapeDtypeStruct((N, H, W, Cout), jnp.float32),
        grid=(N,),
        in_specs=[
            pl.BlockSpec((None, H, W, Cin), lambda n: (n, 0, 0, 0)),
            pl.BlockSpec((Cin, width), lambda n: (0, 0)),
            pl.BlockSpec((1, width), lambda n: (0, 0)),
            pl.BlockSpec((3, 3 * width, width), lambda n: (0, 0, 0)),
            pl.BlockSpec((1, width), lambda n: (0, 0)),
            pl.BlockSpec((width, Cout), lambda n: (0, 0)),
            pl.BlockSpec((1, Cout), lambda n: (0, 0)),
        ],
        out_specs=pl.BlockSpec((None, H, W, Cout), lambda n: (n, 0, 0, 0)),
        scratch_shapes=[pltpu.VMEM((H + 2, W, 3 * width), jnp.bfloat16)],
        compiler_params=pltpu.CompilerParams(
            dimension_semantics=("parallel",),
            vmem_limit_bytes=32 * 1024 * 1024),
        cost_estimate=pl.CostEstimate(
            flops=flops, transcendentals=0, bytes_accessed=bytes_accessed),
    )(x, w1f, b1, w2f, b2, w3f, b3)
    return jnp.transpose(out, (0, 3, 1, 2))                # NHWC -> NCHW


def make_params(key, inplanes, planes, base_width=64, groups=1):
    width = int(planes * (base_width / 64.0)) * groups
    cout = planes * 4  # Bottleneck.expansion
    ks = jax.random.split(key, 16)
    p = {}
    p["w1"] = (jax.random.normal(ks[0], (inplanes, width))
               / jnp.sqrt(inplanes)).astype(jnp.float32)
    p["w2"] = (jax.random.normal(ks[1], (3, 3, width, width))
               / jnp.sqrt(9.0 * width)).astype(jnp.float32)
    p["w3"] = (jax.random.normal(ks[2], (width, cout))
               / jnp.sqrt(width)).astype(jnp.float32)
    for i, c in zip(range(3), (width, width, cout)):
        p[f"g{i+1}"] = (jax.random.uniform(ks[3 + 4 * i], (1, c)) + 0.5).astype(jnp.float32)
        p[f"b{i+1}"] = (jax.random.normal(ks[4 + 4 * i], (1, c)) * 0.1).astype(jnp.float32)
        p[f"m{i+1}"] = (jax.random.normal(ks[5 + 4 * i], (1, c)) * 0.1).astype(jnp.float32)
        p[f"v{i+1}"] = (jax.random.uniform(ks[6 + 4 * i], (1, c)) + 0.5).astype(jnp.float32)
    return p


def reference_forward(x_nchw, p):
    """Plain-JAX f32 reference (matches PyTorch eval-mode Bottleneck semantics)."""
    def bn(y, g, b, m, v):
        s = g * jax.lax.rsqrt(v + EPS)
        return y * s + (b - m * s)

    x = jnp.transpose(x_nchw, (0, 2, 3, 1))                # NHWC
    t = jnp.einsum("nhwc,cd->nhwd", x, p["w1"])
    t = jnp.maximum(bn(t, p["g1"], p["b1"], p["m1"], p["v1"]), 0.0)
    t = jax.lax.conv_general_dilated(
        t, p["w2"], window_strides=(1, 1), padding=((1, 1), (1, 1)),
        dimension_numbers=("NHWC", "HWIO", "NHWC"))
    t = jnp.maximum(bn(t, p["g2"], p["b2"], p["m2"], p["v2"]), 0.0)
    t = jnp.einsum("nhwc,cd->nhwd", t, p["w3"])
    t = bn(t, p["g3"], p["b3"], p["m3"], p["v3"]) + x
    t = jnp.maximum(t, 0.0)
    return jnp.transpose(t, (0, 3, 1, 2))


if __name__ == "__main__":
    key = jax.random.PRNGKey(0)
    k_x, k_p = jax.random.split(key)

    # Real ResNet stage-1 bottleneck channel sizes (lane-dense: width=64,
    # Cout=256) at a small spatial size; inplanes == planes*4 so the residual
    # add needs no downsample branch.
    N, inplanes, H, W = 2, 256, 16, 16
    planes = 64                                            # width = 64, cout = 256

    x = jax.random.normal(k_x, (N, inplanes, H, W), jnp.float32)
    params = make_params(k_p, inplanes, planes)

    out = jax.block_until_ready(bottleneck_forward(x, params))
    ref = reference_forward(x, params)

    assert out.shape == (N, planes * 4, H, W)
    rel = jnp.linalg.norm(out - ref) / (jnp.linalg.norm(ref) + 1e-12)
    assert rel < 2e-2, f"relative L2 error too large: {rel}"
    # bf16 MXU operands -> tolerance loosened vs the f32 reference.
    assert jnp.allclose(out, ref, atol=5e-2, rtol=5e-2), "mismatch vs. reference"

    print("KERNEL_OK")
</pallas_src>

<mosaic_0001>
module attributes {stable_mosaic.version = 11 : i64} {
  func.func @bottleneck_kernel(%arg0: i32, %arg1: memref<1x16x16x256xf32, #tpu.memory_space<vmem>>, %arg2: memref<256x64xbf16, #tpu.memory_space<vmem>>, %arg3: memref<1x64xf32, #tpu.memory_space<vmem>>, %arg4: memref<3x192x64xbf16, #tpu.memory_space<vmem>>, %arg5: memref<1x64xf32, #tpu.memory_space<vmem>>, %arg6: memref<64x256xbf16, #tpu.memory_space<vmem>>, %arg7: memref<1x256xf32, #tpu.memory_space<vmem>>, %arg8: memref<1x16x16x256xf32, #tpu.memory_space<vmem>>, %arg9: memref<18x16x192xbf16, #tpu.memory_space<vmem>>) attributes {dimension_semantics = [#tpu.dimension_semantics<parallel>], iteration_bounds = array<i64: 2>, scalar_prefetch = 0 : i64, scratch_operands = 1 : i64, tpu.core_type = #tpu.core_type<tc>, window_params = [{transform_indices = @transform_0, window_bounds = array<i64: 1, 16, 16, 256>}, {pipeline_mode = #tpu.pipeline_mode<synchronous>, transform_indices = @transform_1, window_bounds = array<i64: 256, 64>}, {pipeline_mode = #tpu.pipeline_mode<synchronous>, transform_indices = @transform_2, window_bounds = array<i64: 1, 64>}, {pipeline_mode = #tpu.pipeline_mode<synchronous>, transform_indices = @transform_3, window_bounds = array<i64: 3, 192, 64>}, {pipeline_mode = #tpu.pipeline_mode<synchronous>, transform_indices = @transform_4, window_bounds = array<i64: 1, 64>}, {pipeline_mode = #tpu.pipeline_mode<synchronous>, transform_indices = @transform_5, window_bounds = array<i64: 64, 256>}, {pipeline_mode = #tpu.pipeline_mode<synchronous>, transform_indices = @transform_6, window_bounds = array<i64: 1, 256>}, {transform_indices = @transform_7, window_bounds = array<i64: 1, 16, 16, 256>}]} {
    %c0 = arith.constant 0 : index
    %c0_0 = arith.constant 0 : index
    %c0_1 = arith.constant 0 : index
    %c0_2 = arith.constant 0 : index
    %0 = vector.load %arg1[%c0, %c0_0, %c0_1, %c0_2] : memref<1x16x16x256xf32, #tpu.memory_space<vmem>>, vector<1x16x16x256xf32>
    %1 = vector.shape_cast %0 : vector<1x16x16x256xf32> to vector<16x16x256xf32>
    %2 = vector.shape_cast %1 : vector<16x16x256xf32> to vector<256x256xf32>
    %3 = arith.truncf %2 : vector<256x256xf32> to vector<256x256xbf16>
    %c0_3 = arith.constant 0 : index
    %c0_4 = arith.constant 0 : index
    %4 = vector.load %arg2[%c0_3, %c0_4] : memref<256x64xbf16, #tpu.memory_space<vmem>>, vector<256x64xbf16>
    %cst = arith.constant dense<0.000000e+00> : vector<256x64xf32>
    %5 = tpu.matmul %3, %4, %cst {dimension_numbers = #tpu.dot_dimension_numbers<[1], [0], [0], [1], [0, 0, 1, 1], [], []>} : vector<256x256xbf16>, vector<256x64xbf16>, vector<256x64xf32> -> vector<256x64xf32>
    %c0_5 = arith.constant 0 : index
    %c0_6 = arith.constant 0 : index
    %6 = vector.load %arg3[%c0_5, %c0_6] : memref<1x64xf32, #tpu.memory_space<vmem>>, vector<1x64xf32>
    %7 = vector.broadcast %6 : vector<1x64xf32> to vector<256x64xf32>
    %8 = arith.addf %5, %7 : vector<256x64xf32>
    %cst_7 = arith.constant 0.000000e+00 : f32
    %9 = vector.broadcast %cst_7 : f32 to vector<256x64xf32>
    %10 = arith.maximumf %8, %9 : vector<256x64xf32>
    %11 = tpu.iota {dimensions = array<i32: 0>} : vector<256x64xi32>
    %c16_i32 = arith.constant 16 : i32
    %c0_i32 = arith.constant 0 : i32
    %12 = arith.cmpi eq, %c16_i32, %c0_i32 : i32
    %c1_i32 = arith.constant 1 : i32
    %13 = arith.select %12, %c1_i32, %c16_i32 : i32
    %14 = vector.broadcast %13 : i32 to vector<256x64xi32>
    %15 = arith.remsi %11, %14 : vector<256x64xi32>
    %c0_i32_8 = arith.constant 0 : i32
    %16 = vector.broadcast %c0_i32_8 : i32 to vector<256x64xi32>
    %17 = arith.cmpi ne, %15, %16 : vector<256x64xi32>
    %c0_i32_9 = arith.constant 0 : i32
    %18 = vector.broadcast %c0_i32_9 : i32 to vector<256x64xi32>
    %19 = arith.cmpi slt, %15, %18 : vector<256x64xi32>
    %c0_i32_10 = arith.constant 0 : i32
    %20 = arith.cmpi slt, %13, %c0_i32_10 : i32
    %21 = vector.broadcast %20 : i1 to vector<256x64xi1>
    %22 = vector.broadcast %21 : vector<256x64xi1> to vector<256x64xi1>
    %23 = arith.xori %19, %22 : vector<256x64xi1>
    %24 = arith.andi %23, %17 : vector<256x64xi1>
    %25 = vector.broadcast %13 : i32 to vector<256x64xi32>
    %26 = arith.addi %15, %25 : vector<256x64xi32>
    %27 = arith.select %24, %26, %15 : vector<256x64xi1>, vector<256x64xi32>
    %c0_i32_11 = arith.constant 0 : i32
    %28 = vector.broadcast %c0_i32_11 : i32 to vector<256x64xi32>
    %29 = arith.cmpi eq, %27, %28 : vector<256x64xi32>
    %c1_i32_12 = arith.constant 1 : i32
    %30 = tpu.dynamic_rotate %10 by %c1_i32_12 dim 0 : vector<256x64xf32>, i32 -> vector<256x64xf32>
    %cst_13 = arith.constant 0.000000e+00 : f32
    %31 = vector.broadcast %cst_13 : f32 to vector<256x64xf32>
    %32 = arith.select %29, %31, %30 : vector<256x64xi1>, vector<256x64xf32>
    %c15_i32 = arith.constant 15 : i32
    %33 = vector.broadcast %c15_i32 : i32 to vector<256x64xi32>
    %34 = arith.cmpi eq, %27, %33 : vector<256x64xi32>
    %c255_i32 = arith.constant 255 : i32
    %35 = tpu.dynamic_rotate %10 by %c255_i32 dim 0 : vector<256x64xf32>, i32 -> vector<256x64xf32>
    %cst_14 = arith.constant 0.000000e+00 : f32
    %36 = vector.broadcast %cst_14 : f32 to vector<256x64xf32>
    %37 = arith.select %34, %36, %35 : vector<256x64xi1>, vector<256x64xf32>
    %38 = tpu.concatenate %32, %10, %37 in 1 : vector<256x64xf32>, vector<256x64xf32>, vector<256x64xf32> -> vector<256x192xf32>
    %39 = arith.truncf %38 : vector<256x192xf32> to vector<256x192xbf16>
    %cst_15 = arith.constant 0.000000e+00 : bf16
    %40 = vector.broadcast %cst_15 : bf16 to vector<1x16x192xbf16>
    %c0_16 = arith.constant 0 : index
    %c0_17 = arith.constant 0 : index
    %c0_18 = arith.constant 0 : index
    %41 = vector.load %arg9[%c0_16, %c0_17, %c0_18] : memref<18x16x192xbf16, #tpu.memory_space<vmem>>, vector<1x16x192xbf16>
    tpu.vector_store %arg9[%c0_16, %c0_17, %c0_18], %40 {strides = array<i32>} : memref<18x16x192xbf16, #tpu.memory_space<vmem>>, vector<1x16x192xbf16>,
    %c17 = arith.constant 17 : index
    %c0_19 = arith.constant 0 : index
    %c0_20 = arith.constant 0 : index
    %42 = vector.load %arg9[%c17, %c0_19, %c0_20] : memref<18x16x192xbf16, #tpu.memory_space<vmem>>, vector<1x16x192xbf16>
    tpu.vector_store %arg9[%c17, %c0_19, %c0_20], %40 {strides = array<i32>} : memref<18x16x192xbf16, #tpu.memory_space<vmem>>, vector<1x16x192xbf16>,
    %43 = vector.shape_cast %39 : vector<256x192xbf16> to vector<16x16x192xbf16>
    %c1 = arith.constant 1 : index
    %c0_21 = arith.constant 0 : index
    %c0_22 = arith.constant 0 : index
    %44 = vector.load %arg9[%c1, %c0_21, %c0_22] : memref<18x16x192xbf16, #tpu.memory_space<vmem>>, vector<16x16x192xbf16>
    tpu.vector_store %arg9[%c1, %c0_21, %c0_22], %43 {strides = array<i32>} : memref<18x16x192xbf16, #tpu.memory_space<vmem>>, vector<16x16x192xbf16>,
    %cst_23 = arith.constant 0.000000e+00 : f32
    %45 = vector.broadcast %cst_23 : f32 to vector<256x64xf32>
    %c0_24 = arith.constant 0 : index
    %c0_25 = arith.constant 0 : index
    %c0_26 = arith.constant 0 : index
    %46 = vector.load %arg9[%c0_24, %c0_25, %c0_26] : memref<18x16x192xbf16, #tpu.memory_space<vmem>>, vector<16x16x192xbf16>
    %47 = vector.shape_cast %46 : vector<16x16x192xbf16> to vector<256x192xbf16>
    %c0_27 = arith.constant 0 : index
    %c0_28 = arith.constant 0 : index
    %c0_29 = arith.constant 0 : index
    %48 = vector.load %arg4[%c0_27, %c0_28, %c0_29] : memref<3x192x64xbf16, #tpu.memory_space<vmem>>, vector<1x192x64xbf16>
    %49 = vector.shape_cast %48 : vector<1x192x64xbf16> to vector<192x64xbf16>
    %cst_30 = arith.constant dense<0.000000e+00> : vector<256x64xf32>
    %50 = tpu.matmul %47, %49, %cst_30 {dimension_numbers = #tpu.dot_dimension_numbers<[1], [0], [0], [1], [0, 0, 1, 1], [], []>} : vector<256x192xbf16>, vector<192x64xbf16>, vector<256x64xf32> -> vector<256x64xf32>
    %51 = arith.addf %45, %50 : vector<256x64xf32>
    %c1_31 = arith.constant 1 : index
    %c0_32 = arith.constant 0 : index
    %c0_33 = arith.constant 0 : index
    %52 = vector.load %arg9[%c1_31, %c0_32, %c0_33] : memref<18x16x192xbf16, #tpu.memory_space<vmem>>, vector<16x16x192xbf16>
    %53 = vector.shape_cast %52 : vector<16x16x192xbf16> to vector<256x192xbf16>
    %c1_34 = arith.constant 1 : index
    %c0_35 = arith.constant 0 : index
    %c0_36 = arith.constant 0 : index
    %54 = vector.load %arg4[%c1_34, %c0_35, %c0_36] : memref<3x192x64xbf16, #tpu.memory_space<vmem>>, vector<1x192x64xbf16>
    %55 = vector.shape_cast %54 : vector<1x192x64xbf16> to vector<192x64xbf16>
    %cst_37 = arith.constant dense<0.000000e+00> : vector<256x64xf32>
    %56 = tpu.matmul %53, %55, %cst_37 {dimension_numbers = #tpu.dot_dimension_numbers<[1], [0], [0], [1], [0, 0, 1, 1], [], []>} : vector<256x192xbf16>, vector<192x64xbf16>, vector<256x64xf32> -> vector<256x64xf32>
    %57 = arith.addf %51, %56 : vector<256x64xf32>
    %c2 = arith.constant 2 : index
    %c0_38 = arith.constant 0 : index
    %c0_39 = arith.constant 0 : index
    %58 = vector.load %arg9[%c2, %c0_38, %c0_39] : memref<18x16x192xbf16, #tpu.memory_space<vmem>>, vector<16x16x192xbf16>
    %59 = vector.shape_cast %58 : vector<16x16x192xbf16> to vector<256x192xbf16>
    %c2_40 = arith.constant 2 : index
    %c0_41 = arith.constant 0 : index
    %c0_42 = arith.constant 0 : index
    %60 = vector.load %arg4[%c2_40, %c0_41, %c0_42] : memref<3x192x64xbf16, #tpu.memory_space<vmem>>, vector<1x192x64xbf16>
    %61 = vector.shape_cast %60 : vector<1x192x64xbf16> to vector<192x64xbf16>
    %cst_43 = arith.constant dense<0.000000e+00> : vector<256x64xf32>
    %62 = tpu.matmul %59, %61, %cst_43 {dimension_numbers = #tpu.dot_dimension_numbers<[1], [0], [0], [1], [0, 0, 1, 1], [], []>} : vector<256x192xbf16>, vector<192x64xbf16>, vector<256x64xf32> -> vector<256x64xf32>
    %63 = arith.addf %57, %62 : vector<256x64xf32>
    %c0_44 = arith.constant 0 : index
    %c0_45 = arith.constant 0 : index
    %64 = vector.load %arg5[%c0_44, %c0_45] : memref<1x64xf32, #tpu.memory_space<vmem>>, vector<1x64xf32>
    %65 = vector.broadcast %64 : vector<1x64xf32> to vector<256x64xf32>
    %66 = arith.addf %63, %65 : vector<256x64xf32>
    %cst_46 = arith.constant 0.000000e+00 : f32
    %67 = vector.broadcast %cst_46 : f32 to vector<256x64xf32>
    %68 = arith.maximumf %66, %67 : vector<256x64xf32>
    %69 = arith.truncf %68 : vector<256x64xf32> to vector<256x64xbf16>
    %c0_47 = arith.constant 0 : index
    %c0_48 = arith.constant 0 : index
    %70 = vector.load %arg6[%c0_47, %c0_48] : memref<64x256xbf16, #tpu.memory_space<vmem>>, vector<64x256xbf16>
    %cst_49 = arith.constant dense<0.000000e+00> : vector<256x256xf32>
    %71 = tpu.matmul %69, %70, %cst_49 {dimension_numbers = #tpu.dot_dimension_numbers<[1], [0], [0], [1], [0, 0, 1, 1], [], []>} : vector<256x64xbf16>, vector<64x256xbf16>, vector<256x256xf32> -> vector<256x256xf32>
    %c0_50 = arith.constant 0 : index
    %c0_51 = arith.constant 0 : index
    %72 = vector.load %arg7[%c0_50, %c0_51] : memref<1x256xf32, #tpu.memory_space<vmem>>, vector<1x256xf32>
    %73 = vector.broadcast %72 : vector<1x256xf32> to vector<256x256xf32>
    %74 = arith.addf %71, %73 : vector<256x256xf32>
    %c0_52 = arith.constant 0 : index
    %c0_53 = arith.constant 0 : index
    %c0_54 = arith.constant 0 : index
    %c0_55 = arith.constant 0 : index
    %75 = vector.load %arg1[%c0_52, %c0_53, %c0_54, %c0_55] : memref<1x16x16x256xf32, #tpu.memory_space<vmem>>, vector<1x16x16x256xf32>
    %76 = vector.shape_cast %75 : vector<1x16x16x256xf32> to vector<16x16x256xf32>
    %77 = vector.shape_cast %76 : vector<16x16x256xf32> to vector<256x256xf32>
    %78 = arith.addf %74, %77 : vector<256x256xf32>
    %cst_56 = arith.constant 0.000000e+00 : f32
    %79 = vector.broadcast %cst_56 : f32 to vector<256x256xf32>
    %80 = arith.maximumf %78, %79 : vector<256x256xf32>
    %81 = vector.shape_cast %80 : vector<256x256xf32> to vector<16x16x256xf32>
    %c0_57 = arith.constant 0 : index
    %c0_58 = arith.constant 0 : index
    %c0_59 = arith.constant 0 : index
    %c0_60 = arith.constant 0 : index
    %82 = vector.load %arg8[%c0_57, %c0_58, %c0_59, %c0_60] : memref<1x16x16x256xf32, #tpu.memory_space<vmem>>, vector<1x16x16x256xf32>
    %83 = vector.shape_cast %82 : vector<1x16x16x256xf32> to vector<16x16x256xf32>
    %84 = vector.shape_cast %81 : vector<16x16x256xf32> to vector<1x16x16x256xf32>
    tpu.vector_store %arg8[%c0_57, %c0_58, %c0_59, %c0_60], %84 {strides = array<i32>} : memref<1x16x16x256xf32, #tpu.memory_space<vmem>>, vector<1x16x16x256xf32>,
    return
  }
  func.func @transform_0(%arg0: i32) -> (i32, i32, i32, i32) {
    %c0_i32 = arith.constant 0 : i32
    %c0_i32_0 = arith.constant 0 : i32
    %c0_i32_1 = arith.constant 0 : i32
    %c0_i32_2 = arith.constant 0 : i32
    return %arg0, %c0_i32, %c0_i32_0, %c0_i32_1 : i32, i32, i32, i32
  }
  func.func @transform_1(%arg0: i32) -> (i32, i32) {
    %c0_i32 = arith.constant 0 : i32
    %c0_i32_0 = arith.constant 0 : i32
    %c0_i32_1 = arith.constant 0 : i32
    return %c0_i32, %c0_i32_0 : i32, i32
  }
  func.func @transform_2(%arg0: i32) -> (i32, i32) {
    %c0_i32 = arith.constant 0 : i32
    %c0_i32_0 = arith.constant 0 : i32
    %c0_i32_1 = arith.constant 0 : i32
    return %c0_i32, %c0_i32_0 : i32, i32
  }
  func.func @transform_3(%arg0: i32) -> (i32, i32, i32) {
    %c0_i32 = arith.constant 0 : i32
    %c0_i32_0 = arith.constant 0 : i32
    %c0_i32_1 = arith.constant 0 : i32
    %c0_i32_2 = arith.constant 0 : i32
    return %c0_i32, %c0_i32_0, %c0_i32_1 : i32, i32, i32
  }
  func.func @transform_4(%arg0: i32) -> (i32, i32) {
    %c0_i32 = arith.constant 0 : i32
    %c0_i32_0 = arith.constant 0 : i32
    %c0_i32_1 = arith.constant 0 : i32
    return %c0_i32, %c0_i32_0 : i32, i32
  }
  func.func @transform_5(%arg0: i32) -> (i32, i32) {
    %c0_i32 = arith.constant 0 : i32
    %c0_i32_0 = arith.constant 0 : i32
    %c0_i32_1 = arith.constant 0 : i32
    return %c0_i32, %c0_i32_0 : i32, i32
  }
  func.func @transform_6(%arg0: i32) -> (i32, i32) {
    %c0_i32 = arith.constant 0 : i32
    %c0_i32_0 = arith.constant 0 : i32
    %c0_i32_1 = arith.constant 0 : i32
    return %c0_i32, %c0_i32_0 : i32, i32
  }
  func.func @transform_7(%arg0: i32) -> (i32, i32, i32, i32) {
    %c0_i32 = arith.constant 0 : i32
    %c0_i32_0 = arith.constant 0 : i32
    %c0_i32_1 = arith.constant 0 : i32
    %c0_i32_2 = arith.constant 0 : i32
    return %arg0, %c0_i32, %c0_i32_0, %c0_i32_1 : i32, i32, i32, i32
  }
}

</mosaic_0001>

<bundles_post_ra>
// kernel: tpu_custom_call.1
= control target key start
LH: loop header
LB: loop body
LE: loop exit
PB: predicated region body
PF: predicated region fallthrough
CT: control target
= control target key end

     0   :  { %12 = vsyncpa [#allocation4], 0  ;;  %s5894_s0 = inlined_call_operand.hbm [shape: f32[2,16,16,256], index: 0, kind: input, shape index: {}]   ;;  %s5895_s1 = inlined_call_operand.vmem [shape: bf16[256,64], index: 1, kind: input, shape index: {}]   ;;  %s5896_s2 = inlined_call_operand.vmem [shape: f32[1,64], index: 2, kind: input, shape index: {}]   ;;  %s5897_s3 = inlined_call_operand.vmem [shape: bf16[3,192,64], index: 3, kind: input, shape index: {}]   ;;  %s5898_s4 = inlined_call_operand.vmem [shape: f32[1,64], index: 4, kind: input, shape index: {}]   ;;  %s5899_s5 = inlined_call_operand.vmem [shape: bf16[64,256], index: 5, kind: input, shape index: {}]   ;;  %s5900_s6 = inlined_call_operand.vmem [shape: f32[1,256], index: 6, kind: input, shape index: {}]   ;;  %s5901_s7 = inlined_call_operand.hbm [shape: f32[2,16,16,256], index: 7, kind: output, shape index: {}]  }
   0x1   :  { %14 = vsyncpa [#allocation4 + $0x1], 0 }
   0x2   :  { %15 = vsyncpa [#allocation5], 0 }
   0x3   :  { %17 = vsyncpa [#allocation5 + $0x1], 0  ;;  %s4067_s24 = smov 0   ;;  %s4069_s25 = smov 0  }
   0x4   :  { %s4071_s26 = smov 0   ;;  %s4073_s27 = smov 0  }
   0x5 LB: > { %s4088_s28 = sadd.s32 4294967295, %s4017_s27   ;;  %s3405_s29 = sadd.s32 4294967294, %s4017_s27   ;;  %s4017_s27 = sphi %s4073_s27, %s6002_s27   ;;  %s4013_s26 = sphi %s4071_s26, %s6001_s26   ;;  %s4009_s25 = sphi %s4069_s25, %s6000_s25   ;;  %s4005_s24 = sphi %s4067_s24, %s5999_s24  }
   0x6   : > { %s4092_s30 = sadd.s32 1, %s4017_s27   ;;  %s30_s8 = sadd.s32 1, %s4013_s26 }
   0x7   : > { %s27_s9 = ssub.s32 %s4017_s27, %s4092_s30  ;;  %p37_p0 = scmp.ne.s32.totalorder %s4013_s26, %s4009_s25 }
   0x8   : > { %p28_p1 = scmp.eq.s32.totalorder %s27_s9, 0  ;;  %p38_p2 = scmp.eq.s32.totalorder %s4017_s27, 0 }
   0x9   : > { %p43_p3 = scmp.ne.s32.totalorder %s4009_s25, %s4005_s24  ;;  %p44_p4 = scmp.eq.s32.totalorder %s4088_s28, 0 }
   0xa   : > { %s4104_s10 = scalar_select %p28_p1, %s4013_s26, %s30_s8  }
   0xb   : > { %p4106_p5 = por %p38_p2, %p37_p0  ;;  %p4110_p6 = por %p44_p4, %p43_p3 }
   0xc   : > { %p193_p7 = scmp.eq.s32.totalorder %s4088_s28, 1  ;;  %p199_p8 = scmp.eq.s32.totalorder %s3405_s29, 1 }
   0xd   : > { %p3735_p10 = scmp.lt.s32.totalorder %s4017_s27, 2  ;;  %s237_s15 = sand.u32 1, %s4013_s26  }
   0xe   : > { %p4117_p11 = por %p193_p7, %p37_p0  ;;  %p4121_p12 = por %p199_p8, %p43_p3 }
   0xf   : > { %s3593_s16 = sshll.u32 %s4017_s27, 13  ;;  %s3408_s17 = sshll.u32 %s237_s15, 9 }
  0x10   : > { %s5918_s13 = scalar_select %p4117_p11, 1, 0 }
  0x11   : > { %s5919_s14 = scalar_select %p4121_p12, 1, 0 }
  0x12   : > { %s4130_s20 = scalar_lea.hbm %s5894_s0, %s3593_s16  ;;  %s241_s21 = scalar_lea.vmem [#allocation3], %s3408_s17 }
  0x13   : > { %s248_s22 = sshll.u32 %s241_s21, 4  ;;  %p4134_p13 = pnand %p3735_p10, %p4106_p5  ;;  %s4138_s22 = int_to_ptr.vmem [resolvable:$true] %s248_s22 }
  0x14   : > { %s4140_s29 = scalar_lea.sflag [#allocation4], %s237_s15  ;;  %s3921_s8 = scalar_lea.hbm %s4130_s20, 8192 }
  0x15   : > { %p3922_p0 = scmp.ne.s32.totalorder %s4130_s20, %s3921_s8  ;;  %p3923_p1 = pneg %p4134_p13 }
  0x16   : > { %s3926_s16 = scalar_lea.hbm %s5894_s0, 16384  ;;  %p3927_p4 = scmp.lt.u32.totalorder %s4130_s20, %s5894_s0 }
  0x17   : > { %p3924_p2 = pnand %p3923_p1, %p3922_p0  ;;  %p3928_p5 = scmp.lt.u32.totalorder %s3926_s16, %s3921_s8 }
  0x18   : > { %p3930_p8 = scmp.lt.u32.totalorder %s3921_s8, %s4130_s20 }
  0x19   : > { %p3925_p3 = pneg %p3924_p2  ;;  %p3929_p7 = por %p3928_p5, %p3927_p4 }
  0x1b   : > { %p3931_p10 = por %p3930_p8, %p3929_p7 }
  0x1d   : > { %p3932_p9 = pnand %p3931_p10, %p3925_p3 }
  0x1f   : > { %3935 = shalt.err (!%p3932_p9)
}
  0x20   : > { %s3936_s15 = scalar_lea.vmem %s4138_s22, 8192  ;;  %s4019_s19 = smov [#allocation3]  }
  0x21   : > { %p3937_p0 = scmp.ne.s32.totalorder %s4138_s22, %s3936_s15  ;;  %s3941_s21 = sshll.u32 %s4019_s19, 4  ;;  %s3942_s21 = int_to_ptr.vmem [resolvable:$false] %s3941_s21 }
  0x22   : > { %s3943_s9 = scalar_lea.vmem %s3942_s21, 16384  ;;  %p3944_p11 = scmp.lt.s32.totalorder %s4138_s22, %s3942_s21 }
  0x23   : > { %p3939_p2 = pnand %p3937_p0, %p3923_p1  ;;  %p3945_p4 = scmp.lt.s32.totalorder %s3943_s9, %s3936_s15 }
  0x25   : > { %p3940_p12 = pneg %p3939_p2  ;;  %p3946_p5 = por %p3945_p4, %p3944_p11 }
  0x27   : > { %p3947_p7 = pnand %p3946_p5, %p3940_p12 }
  0x29   : > { %3950 = shalt.err (!%p3947_p7)
}
  0x2a   : > { %s4020_s8 = smov 256   ;;  %s4021_s11 = smov 16  }
  0x2b   : > { %3730 = dma.hbm_to_vmem [thread:$0]  (!%p4134_p13), %s4130_s20, 8192, %s4138_s22, %s4140_s29, %s4020_s8, %s4020_s8, %s4021_s11  }
  0x2c   : > { %p3411_p9 = scmp.ge.s32.totalorder %s4017_s27, 1  ;;  %p256_p1 = scmp.lt.s32.totalorder %s4017_s27, 3 }
  0x2e   : > { %p257_p3 = pnand %p3411_p9, %p256_p1 }
  0x30   : > { %260 = sbr.rel (%p257_p3) target bundleno = 1146 (0x47a), region = 48 }
  0x37   : > { %s4171_s16 = sand.u32 1, %s4009_s25  }
  0x38   : > { %s3412_s17 = sshll.u32 %s4171_s16, 9  ;;  %s263_s18 = scalar_lea.sflag [#allocation4], %s4171_s16 }
  0x39   : > { %s4177_s15 = scalar_lea.vmem [#allocation3], %s3412_s17 }
  0x3a   : > { %3996 = dma.done.wait (%p4110_p6), %s263_s18, 8192  }
  0x3b   : > { %3998 = vsyncadd (%p4110_p6), %s263_s18, 4294959104  ;;  %v4022_v0 = vmov 0   ;;  %v3855_v1 = vld [vmem:[%s5895_s1 + $0x40] sm:$0xff]   ;;  %v3857_v3 = vld [vmem:[%s5895_s1 + $0x48] sm:$0xff]   ;;  %vm1525_vm0 = vcmask 523264   ;;  %s4023_s21 = smov 64  }
  0x3c   : > { %1590 = vst [vmem:[#allocation2] sm:$0xff] %v4022_v0  ;;  %v3856_v2 = vld [vmem:[%s5895_s1] sm:$0xff]   ;;  %3595 = vmatprep.subr.bf16.mxu0 %v3855_v1  ;;  %3707 = vmatprep.subr.bf16.mxu1 %v3855_v1  ;;  %v3858_v4 = vld [vmem:[%s5895_s1 + $0x8] sm:$0xff]   ;;  %v3859_v5 = vld [vmem:[%s5895_s1 + $0x50] sm:$0xff]   ;;  %s5657_s12 = scalar_lea.vmem [#allocation6], %s3412_s17  ;;  %s3594_s17 = sshll.u32 %s4088_s28, 13 }
  0x3d   : > { %3596 = vmatpush3.bf16.msra.mxu0 %v3856_v2  ;;  %3715 = vmatpush3.bf16.msra.mxu1 %v3856_v2  ;;  %v3860_v6 = vld [vmem:[%s5895_s1 + $0x10] sm:$0xff]   ;;  %v3861_v7 = vld [vmem:[%s5895_s1 + $0x58] sm:$0xff]   ;;  %v3863_v9 = vld [vmem:[%s5895_s1 + $0x60] sm:$0xff]   ;;  %1591 = vst.msk [vmem:[#allocation2 + $0x8] sm:$0xff] %vm1525_vm0, %v4022_v0  ;;  %s3332_s9 = sshll.u32 %s5657_s12, 4  ;;  %s5845_s18 = scalar_lea.hbm %s5901_s7, %s3594_s17  ;;  %s5847_s9 = int_to_ptr.vmem [resolvable:$true] %s3332_s9 }
  0x3e   : > { %3597 = vmatprep.subr.bf16.mxu0 %v3857_v3  ;;  %3708 = vmatprep.subr.bf16.mxu1 %v3857_v3  ;;  %v3862_v8 = vld [vmem:[%s5895_s1 + $0x18] sm:$0xff]   ;;  %v3864_v10 = vld [vmem:[%s5895_s1 + $0x20] sm:$0xff]   ;;  %v3865_v11 = vld [vmem:[%s5895_s1 + $0x68] sm:$0xff]   ;;  %1594 = vst.msk [vmem:[#allocation2 + $0x118] sm:$0xff] %vm1525_vm0, %v4022_v0  ;;  %s3319_s28 = scalar_lea.sflag [#allocation5], %s4171_s16  ;;  %p5996_p11 = scmp.ne.s32.totalorder %s5918_s13, 0 }
  0x3f   : > { %v299_v12 = vld [vmem:[%s4177_s15 + $0x8] sm:$0xff]  ;;  %v301_v13 = vld [vmem:[%s4177_s15 + $0x18] sm:$0xff]  ;;  %v3867_v19 = vld [vmem:[%s5895_s1 + $0x70] sm:$0xff]   ;;  %s4024_s20 = smov [#allocation6]  }
  0x40   : > { %v331_v14 = vld [vmem:[%s4177_s15 + $0x108] sm:$0xff]  ;;  %v363_v15 = vpack.c.bf16 %v301_v13, %v299_v12  ;;  %v333_v16 = vld [vmem:[%s4177_s15 + $0x118] sm:$0xff]  ;;  %v3868_v20 = vld [vmem:[%s5895_s1 + $0x30] sm:$0xff]   ;;  %s3955_s22 = sshll.u32 %s4024_s20, 4  ;;  %s3956_s22 = int_to_ptr.vmem [resolvable:$false] %s3955_s22 }
  0x41   : > { %3598 = vmatpush3.bf16.msra.mxu0 %v3858_v4  ;;  %3716 = vmatpush3.bf16.msra.mxu1 %v3858_v4  ;;  %v379_v17 = vpack.c.bf16 %v333_v16, %v331_v14  ;;  %v3866_v18 = vld [vmem:[%s5895_s1 + $0x28] sm:$0xff]   ;;  %v3869_v21 = vld [vmem:[%s5895_s1 + $0x78] sm:$0xff]   ;;  %v298_v23 = vld [vmem:[%s4177_s15] sm:$0xff]  ;;  %s3957_s23 = scalar_lea.vmem %s3956_s22, 16384  ;;  %p3958_p8 = scmp.lt.s32.totalorder %s5847_s9, %s3956_s22 }
  0x42   : > { %3599 = vmatprep.subr.bf16.mxu0 %v3859_v5  ;;  %3709 = vmatprep.subr.bf16.mxu1 %v3859_v5  ;;  %v3870_v22 = vld [vmem:[%s5895_s1 + $0x38] sm:$0xff]   ;;  %v300_v24 = vld [vmem:[%s4177_s15 + $0x10] sm:$0xff]  ;;  %v330_v25 = vld [vmem:[%s4177_s15 + $0x100] sm:$0xff] }
  0x43   : > { %561 = vmatprep.mubr.bf16.mxu0 %v363_v15  ;;  %625 = vmatprep.mubr.bf16.mxu1 %v379_v17  ;;  %v332_v26 = vld [vmem:[%s4177_s15 + $0x110] sm:$0xff]  ;;  %v303_v27 = vld [vmem:[%s4177_s15 + $0x28] sm:$0xff]  ;;  %v305_v28 = vld [vmem:[%s4177_s15 + $0x38] sm:$0xff]  ;;  %v362_v31 = vpack.c.bf16 %v300_v24, %v298_v23 }
  0x44   : > { %v335_v29 = vld [vmem:[%s4177_s15 + $0x128] sm:$0xff]  ;;  %v337_v30 = vld [vmem:[%s4177_s15 + $0x138] sm:$0xff]  ;;  %v378_v32 = vpack.c.bf16 %v332_v26, %v330_v25  ;;  %v365_v33 = vpack.c.bf16 %v305_v28, %v303_v27  ;;  %v302_v35 = vld [vmem:[%s4177_s15 + $0x20] sm:$0xff] }
  0x45   : > { %3600 = vmatpush3.bf16.msra.mxu0 %v3860_v6  ;;  %3717 = vmatpush3.bf16.msra.mxu1 %v3860_v6  ;;  %v381_v34 = vpack.c.bf16 %v337_v30, %v335_v29  ;;  %v304_v36 = vld [vmem:[%s4177_s15 + $0x30] sm:$0xff]  ;;  %v334_v37 = vld [vmem:[%s4177_s15 + $0x120] sm:$0xff]  ;;  %v307_v39 = vld [vmem:[%s4177_s15 + $0x48] sm:$0xff] }
  0x46   : > { %3601 = vmatprep.subr.bf16.mxu0 %v3861_v7  ;;  %3710 = vmatprep.subr.bf16.mxu1 %v3861_v7  ;;  %v336_v38 = vld [vmem:[%s4177_s15 + $0x130] sm:$0xff]  ;;  %v309_v40 = vld [vmem:[%s4177_s15 + $0x58] sm:$0xff]  ;;  %v339_v41 = vld [vmem:[%s4177_s15 + $0x148] sm:$0xff]  ;;  %v364_v43 = vpack.c.bf16 %v304_v36, %v302_v35 }
  0x47   : > { %v341_v42 = vld [vmem:[%s4177_s15 + $0x158] sm:$0xff]  ;;  %v380_v44 = vpack.c.bf16 %v336_v38, %v334_v37  ;;  %v3871_v45 = vld [vmem:[%s5897_s3] sm:$0xff]   ;;  %v367_v46 = vpack.c.bf16 %v309_v40, %v307_v39  ;;  %v3872_v48 = vld [vmem:[%s5897_s3 + $0x8] sm:$0xff]  }
  0x48   : > { %v383_v47 = vpack.c.bf16 %v341_v42, %v339_v41  ;;  %v306_v49 = vld [vmem:[%s4177_s15 + $0x40] sm:$0xff]  ;;  %v308_v50 = vld [vmem:[%s4177_s15 + $0x50] sm:$0xff]  ;;  %v311_v53 = vld [vmem:[%s4177_s15 + $0x68] sm:$0xff] }
  0x49   : > { %3602 = vmatpush3.bf16.msra.mxu0 %v3862_v8  ;;  %3718 = vmatpush3.bf16.msra.mxu1 %v3862_v8  ;;  %v338_v51 = vld [vmem:[%s4177_s15 + $0x140] sm:$0xff]  ;;  %v340_v52 = vld [vmem:[%s4177_s15 + $0x150] sm:$0xff]  ;;  %v313_v54 = vld [vmem:[%s4177_s15 + $0x78] sm:$0xff]  ;;  %v366_v58 = vpack.c.bf16 %v308_v50, %v306_v49 }
  0x4a   : > { %3603 = vmatprep.subr.bf16.mxu0 %v3863_v9  ;;  %3711 = vmatprep.subr.bf16.mxu1 %v3863_v9  ;;  %v343_v55 = vld [vmem:[%s4177_s15 + $0x168] sm:$0xff]  ;;  %v345_v56 = vld [vmem:[%s4177_s15 + $0x178] sm:$0xff]  ;;  %v3873_v57 = vld [vmem:[%s5897_s3 + $0x10] sm:$0xff]   ;;  %v382_v59 = vpack.c.bf16 %v340_v52, %v338_v51  ;;  %v369_v61 = vpack.c.bf16 %v313_v54, %v311_v53 }
  0x4b   : > { %v3874_v60 = vld [vmem:[%s5897_s3 + $0x18] sm:$0xff]   ;;  %v385_v62 = vpack.c.bf16 %v345_v56, %v343_v55  ;;  %v310_v63 = vld [vmem:[%s4177_s15 + $0x60] sm:$0xff]  ;;  %v312_v1 = vld [vmem:[%s4177_s15 + $0x70] sm:$0xff] }
  0x4c   : > { %v342_v2 = vld [vmem:[%s4177_s15 + $0x160] sm:$0xff]  ;;  %v344_v3 = vld [vmem:[%s4177_s15 + $0x170] sm:$0xff]  ;;  %v315_v4 = vld [vmem:[%s4177_s15 + $0x88] sm:$0xff]  ;;  %v368_v9 = vpack.c.bf16 %v312_v1, %v310_v63 }
  0x4d   : > { %3604 = vmatpush3.bf16.msra.mxu0 %v3864_v10  ;;  %3719 = vmatpush3.bf16.msra.mxu1 %v3864_v10  ;;  %v317_v5 = vld [vmem:[%s4177_s15 + $0x98] sm:$0xff]  ;;  %v347_v6 = vld [vmem:[%s4177_s15 + $0x188] sm:$0xff]  ;;  %v3875_v8 = vld [vmem:[%s5897_s3 + $0x20] sm:$0xff]   ;;  %v384_v10 = vpack.c.bf16 %v344_v3, %v342_v2 }
  0x4e   : > { %3605 = vmatprep.subr.bf16.mxu0 %v3865_v11  ;;  %3712 = vmatprep.subr.bf16.mxu1 %v3865_v11  ;;  %v349_v7 = vld [vmem:[%s4177_s15 + $0x198] sm:$0xff]  ;;  %v371_v11 = vpack.c.bf16 %v317_v5, %v315_v4  ;;  %v314_v13 = vld [vmem:[%s4177_s15 + $0x80] sm:$0xff]  ;;  %v316_v14 = vld [vmem:[%s4177_s15 + $0x90] sm:$0xff] }
  0x4f   : > { %v387_v12 = vpack.c.bf16 %v349_v7, %v347_v6  ;;  %v346_v15 = vld [vmem:[%s4177_s15 + $0x180] sm:$0xff]  ;;  %v348_v16 = vld [vmem:[%s4177_s15 + $0x190] sm:$0xff]  ;;  %v319_v17 = vld [vmem:[%s4177_s15 + $0xa8] sm:$0xff] }
  0x50   : > { %v318_v25 = vld [vmem:[%s4177_s15 + $0xa0] sm:$0xff]  ;;  %v320_v26 = vld [vmem:[%s4177_s15 + $0xb0] sm:$0xff]  ;;  %v323_v29 = vld [vmem:[%s4177_s15 + $0xc8] sm:$0xff] }
  0x51   : > { %3606 = vmatpush3.bf16.msra.mxu0 %v3866_v18  ;;  %3720 = vmatpush3.bf16.msra.mxu1 %v3866_v18  ;;  %v321_v18 = vld [vmem:[%s4177_s15 + $0xb8] sm:$0xff]  ;;  %v350_v27 = vld [vmem:[%s4177_s15 + $0x1a0] sm:$0xff]  ;;  %v352_v28 = vld [vmem:[%s4177_s15 + $0x1b0] sm:$0xff] }
  0x52   : > { %3607 = vmatprep.subr.bf16.mxu0 %v3867_v19  ;;  %3713 = vmatprep.subr.bf16.mxu1 %v3867_v19  ;;  %v351_v19 = vld [vmem:[%s4177_s15 + $0x1a8] sm:$0xff]  ;;  %v373_v23 = vpack.c.bf16 %v321_v18, %v319_v17  ;;  %v325_v30 = vld [vmem:[%s4177_s15 + $0xd8] sm:$0xff]  ;;  %v322_v37 = vld [vmem:[%s4177_s15 + $0xc0] sm:$0xff] }
  0x53   : > { %v375_v35 = vpack.c.bf16 %v325_v30, %v323_v29  ;;  %v324_v38 = vld [vmem:[%s4177_s15 + $0xd0] sm:$0xff]  ;;  %v354_v39 = vld [vmem:[%s4177_s15 + $0x1c0] sm:$0xff]  ;;  %v327_v41 = vld [vmem:[%s4177_s15 + $0xe8] sm:$0xff] }
  0x54   : > { %v356_v40 = vld [vmem:[%s4177_s15 + $0x1d0] sm:$0xff]  ;;  %v329_v42 = vld [vmem:[%s4177_s15 + $0xf8] sm:$0xff]  ;;  %v326_v49 = vld [vmem:[%s4177_s15 + $0xe0] sm:$0xff] }
  0x55   : > { %3608 = vmatpush3.bf16.msra.mxu0 %v3868_v20  ;;  %3721 = vmatpush3.bf16.msra.mxu1 %v3868_v20  ;;  %v353_v20 = vld [vmem:[%s4177_s15 + $0x1b8] sm:$0xff]  ;;  %v328_v50 = vld [vmem:[%s4177_s15 + $0xf0] sm:$0xff]  ;;  %v358_v51 = vld [vmem:[%s4177_s15 + $0x1e0] sm:$0xff] }
  0x56   : > { %3609 = vmatprep.subr.bf16.mxu0 %v3869_v21  ;;  %3714 = vmatprep.subr.bf16.mxu1 %v3869_v21  ;;  %v370_v21 = vpack.c.bf16 %v316_v14, %v314_v13  ;;  %v389_v24 = vpack.c.bf16 %v353_v20, %v351_v19  ;;  %v360_v52 = vld [vmem:[%s4177_s15 + $0x1f0] sm:$0xff]  ;;  %v376_v53 = vpack.c.bf16 %v328_v50, %v326_v49  ;;  %v3876_v55 = vld [vmem:[%s5897_s3 + $0x28] sm:$0xff]   ;;  %v3883_v63 = vld [vmem:[%s5897_s3 + $0x60] sm:$0xff]  }
  0x57   : > { %v392_v54 = vpack.c.bf16 %v360_v52, %v358_v51  ;;  %v3877_v56 = vld [vmem:[%s5897_s3 + $0x30] sm:$0xff]   ;;  %v3884_v1 = vld [vmem:[%s5897_s3 + $0x68] sm:$0xff]   ;;  %v3886_v3 = vld [vmem:[%s5897_s3 + $0x78] sm:$0xff]  }
  0x58   : > { %v3885_v2 = vld [vmem:[%s5897_s3 + $0x70] sm:$0xff]   ;;  %v3887_v4 = vld [vmem:[%s5897_s3 + $0x80] sm:$0xff]   ;;  %v3888_v5 = vld [vmem:[%s5897_s3 + $0x88] sm:$0xff]  }
  0x59   : > { %3610 = vmatpush3.bf16.msra.mxu0 %v3870_v22  ;;  %3722 = vmatpush3.bf16.msra.mxu1 %v3870_v22  ;;  %v386_v22 = vpack.c.bf16 %v348_v16, %v346_v15  ;;  %v3889_v6 = vld [vmem:[%s5897_s3 + $0x90] sm:$0xff]   ;;  %v3890_v7 = vld [vmem:[%s5897_s3 + $0x98] sm:$0xff]   ;;  %v4400_v15 = vld [vmem:[%s5896_s2] ss:$0 sm:$0xff] }
  0x5a   : > { %2142 = vmatprep.subr.bf16.mxu0 %v4022_v0  ;;  %1861 = vmatprep.subr.bf16.mxu1 %v4022_v0  ;;  %v3893_v13 = vld [vmem:[%s5897_s3 + $0xb0] sm:$0xff]  }
  0x5c   : > { %562 = vmatmul.mubr.bf16.vlgmr.msra.gmra.mrb[0].mxu0 %v362_v31  ;;  %626 = vmatmul.mubr.bf16.vlgmr.msra.gmra.mrb[0].mxu1 %v378_v32  ;;  %v355_v31 = vld [vmem:[%s4177_s15 + $0x1c8] sm:$0xff]  ;;  %v357_v32 = vld [vmem:[%s4177_s15 + $0x1d8] sm:$0xff] }
  0x5d   : > { %569 = vmatprep.mubr.bf16.mxu0 %v365_v33  ;;  %633 = vmatprep.mubr.bf16.mxu1 %v381_v34  ;;  %v372_v33 = vpack.c.bf16 %v320_v26, %v318_v25  ;;  %v388_v34 = vpack.c.bf16 %v352_v28, %v350_v27  ;;  %v391_v36 = vpack.c.bf16 %v357_v32, %v355_v31 }
  0x5e   : > { %2143 = vmatpush1.bf16.msra.mxu0 %v3871_v45  ;;  %v374_v45 = vpack.c.bf16 %v324_v38, %v322_v37  ;;  %1862 = vmatpush1.bf16.msra.mxu1 %v3883_v63 }
  0x5f   : > { %2144 = vmatprep.subr.bf16.mxu0 %v4022_v0  ;;  %1863 = vmatprep.subr.bf16.mxu1 %v4022_v0 }
  0x62   : > { %2145 = vmatpush1.bf16.msra.mxu0 %v3872_v48  ;;  %1864 = vmatpush1.bf16.msra.mxu1 %v3884_v1 }
  0x63   : > { %2146 = vmatprep.subr.bf16.mxu0 %v4022_v0  ;;  %1865 = vmatprep.subr.bf16.mxu1 %v4022_v0 }
  0x64   : > { %570 = vmatmul.mubr.bf16.gmra.mrb[4].mxu0 %v364_v43  ;;  %634 = vmatmul.mubr.bf16.gmra.mrb[4].mxu1 %v380_v44  ;;  %v359_v43 = vld [vmem:[%s4177_s15 + $0x1e8] sm:$0xff]  ;;  %v361_v44 = vld [vmem:[%s4177_s15 + $0x1f8] sm:$0xff] }
  0x65   : > { %577 = vmatprep.mubr.bf16.mxu0 %v367_v46  ;;  %641 = vmatprep.mubr.bf16.mxu1 %v383_v47  ;;  %v390_v46 = vpack.c.bf16 %v356_v40, %v354_v39  ;;  %v377_v47 = vpack.c.bf16 %v329_v42, %v327_v41  ;;  %v393_v48 = vpack.c.bf16 %v361_v44, %v359_v43  ;;  %v3894_v40 = vld [vmem:[%s5897_s3 + $0xb8] sm:$0xff]  }
  0x66   : > { %2147 = vmatpush1.bf16.msra.mxu0 %v3873_v57  ;;  %v3878_v57 = vld [vmem:[%s5897_s3 + $0x38] sm:$0xff]   ;;  %1866 = vmatpush1.bf16.msra.mxu1 %v3885_v2 }
  0x67   : > { %2148 = vmatprep.subr.bf16.mxu0 %v4022_v0  ;;  %1867 = vmatprep.subr.bf16.mxu1 %v4022_v0 }
  0x6a   : > { %2149 = vmatpush1.bf16.msra.mxu0 %v3874_v60  ;;  %v3881_v60 = vld [vmem:[%s5897_s3 + $0x50] sm:$0xff]   ;;  %1868 = vmatpush1.bf16.msra.mxu1 %v3886_v3 }
  0x6b   : > { %2150 = vmatprep.subr.bf16.mxu0 %v4022_v0  ;;  %1869 = vmatprep.subr.bf16.mxu1 %v4022_v0 }
  0x6c   : > { %578 = vmatmul.mubr.bf16.gmra.mrb[8].mxu0 %v366_v58  ;;  %642 = vmatmul.mubr.bf16.gmra.mrb[8].mxu1 %v382_v59  ;;  %v3879_v58 = vld [vmem:[%s5897_s3 + $0x40] sm:$0xff]   ;;  %v3880_v59 = vld [vmem:[%s5897_s3 + $0x48] sm:$0xff]  }
  0x6d   : > { %585 = vmatprep.mubr.bf16.mxu0 %v369_v61  ;;  %649 = vmatprep.mubr.bf16.mxu1 %v385_v62  ;;  %v3882_v61 = vld [vmem:[%s5897_s3 + $0x58] sm:$0xff]   ;;  %v1629_v62 = vld [vmem:[#allocation2 + $0x8] sm:$0xff] }
  0x6e   : > { %2151 = vmatpush1.bf16.msra.mxu0 %v3875_v8  ;;  %1870 = vmatpush1.bf16.msra.mxu1 %v3887_v4  ;;  %v3891_v8 = vld [vmem:[%s5897_s3 + $0xa0] sm:$0xff]  }
  0x6f   : > { %2152 = vmatprep.subr.bf16.mxu0 %v4022_v0  ;;  %1871 = vmatprep.subr.bf16.mxu1 %v4022_v0 }
  0x72   : > { %2153 = vmatpush1.bf16.msra.mxu0 %v3876_v55  ;;  %1872 = vmatpush1.bf16.msra.mxu1 %v3888_v5 }
  0x73   : > { %2154 = vmatprep.subr.bf16.mxu0 %v4022_v0  ;;  %1873 = vmatprep.subr.bf16.mxu1 %v4022_v0 }
  0x74   : > { %586 = vmatmul.mubr.bf16.gmra.mrb[12].mxu0 %v368_v9  ;;  %650 = vmatmul.mubr.bf16.gmra.mrb[12].mxu1 %v384_v10  ;;  %v3892_v9 = vld [vmem:[%s5897_s3 + $0xa8] sm:$0xff]   ;;  %v722_v10 = vlaneseq }
  0x75   : > { %593 = vmatprep.mubr.bf16.mxu0 %v371_v11  ;;  %657 = vmatprep.mubr.bf16.mxu1 %v387_v12 }
  0x76   : > { %2155 = vmatpush1.bf16.msra.mxu0 %v3877_v56  ;;  %1874 = vmatpush1.bf16.msra.mxu1 %v3889_v6  ;;  %v4391_v11 = vshrl.u32 %v722_v10, 7 }
  0x77   : > { %2156 = vmatprep.subr.bf16.mxu0 %v4022_v0  ;;  %1875 = vmatprep.subr.bf16.mxu1 %v4022_v0 }
  0x78   : > { %v724_v12 = vadd.s32 8, %v4391_v11  ;;  %v4403_v18 = vadd.s32 24, %v4391_v11  ;;  %v4406_v19 = vadd.s32 40, %v4391_v11  ;;  %v4415_v27 = vadd.s32 152, %v4391_v11 }
  0x79   : > { %vm1332_vm1 = vcmp.lt.s32.totalorder %v4391_v11, 7  ;;  %v4420_v31 = vadd.s32 72, %v4391_v11  ;;  %vm1203_vm2 = vcmp.lt.s32.totalorder %v4391_v11, 1  ;;  %v4457_v55 = vadd.s32 200, %v4391_v11 }
  0x7a   : > { %2157 = vmatpush1.bf16.msra.mxu0 %v3878_v57  ;;  %1876 = vmatpush1.bf16.msra.mxu1 %v3890_v7  ;;  %v766_v29 = vand.u32 15, %v724_v12  ;;  %v794_v37 = vand.u32 15, %v4406_v19  ;;  %v892_v44 = vand.u32 15, %v4415_v27 }
  0x7b   : > { %2158 = vmatprep.subr.bf16.mxu0 %v4022_v0  ;;  %1877 = vmatprep.subr.bf16.mxu1 %v4022_v0 }
  0x7c   : > { %594 = vmatmul.mubr.bf16.gmra.mrb[16].mxu0 %v370_v21  ;;  %658 = vmatmul.mubr.bf16.gmra.mrb[16].mxu1 %v386_v22  ;;  %v4409_v21 = vadd.s32 56, %v4391_v11  ;;  %v4412_v22 = vadd.s32 136, %v4391_v11  ;;  %vm4449_vm3 = vcmp.eq.s32.totalorder %v766_v29, 15  ;;  %vm4537_vm6 = vcmp.eq.s32.totalorder %v892_v44, 15 }
  0x7d   : > { %601 = vmatprep.mubr.bf16.mxu0 %v373_v23  ;;  %665 = vmatprep.mubr.bf16.mxu1 %v389_v24  ;;  %vm4569_vm7 = vcmp.eq.s32.totalorder %v794_v37, 15 }
  0x7e   : > { %2159 = vmatpush1.bf16.msra.mxu0 %v3879_v58  ;;  %1878 = vmatpush1.bf16.msra.mxu1 %v3891_v8  ;;  %v808_v38 = vand.u32 15, %v4409_v21  ;;  %v878_v39 = vand.u32 15, %v4412_v22 }
  0x7f   : > { %2160 = vmatprep.subr.bf16.mxu0 %v4022_v0  ;;  %1879 = vmatprep.subr.bf16.mxu1 %v4022_v0 }
  0x80   : > { %vm4501_vm4 = vcmp.eq.s32.totalorder %v878_v39, 15  ;;  %vm4638_vm9 = vcmp.eq.s32.totalorder %v808_v38, 15 }
  0x82   : > { %2161 = vmatpush1.bf16.msra.mxu0 %v3880_v59  ;;  %1880 = vmatpush1.bf16.msra.mxu1 %v3892_v9 }
  0x83   : > { %2162 = vmatprep.subr.bf16.mxu0 %v4022_v0  ;;  %1881 = vmatprep.subr.bf16.mxu1 %v4022_v0 }
  0x84   : > { %602 = vmatmul.mubr.bf16.gmra.mrb[20].mxu0 %v372_v33  ;;  %666 = vmatmul.mubr.bf16.gmra.mrb[20].mxu1 %v388_v34 }
  0x85   : > { %609 = vmatprep.mubr.bf16.mxu0 %v375_v35  ;;  %673 = vmatprep.mubr.bf16.mxu1 %v391_v36  ;;  %v780_v36 = vand.u32 15, %v4403_v18 }
  0x86   : > { %2163 = vmatpush1.bf16.msra.mxu0 %v3881_v60  ;;  %1882 = vmatpush1.bf16.msra.mxu1 %v3893_v13 }
  0x87   : > { %2164 = vmatprep.subr.bf16.mxu0 %v4022_v0  ;;  %1883 = vmatprep.subr.bf16.mxu1 %v4022_v0  ;;  %vm4513_vm5 = vcmp.eq.s32.totalorder %v780_v36, 15 }
  0x8a   : > { %2165 = vmatpush1.bf16.msra.mxu0 %v3882_v61  ;;  %1884 = vmatpush1.bf16.msra.mxu1 %v3894_v40  ;;  %v934_v40 = vand.u32 15, %v4457_v55 }
  0x8b   : > { %2481 = vmatprep.subr.bf16.mxu1 %v4022_v0 }
  0x8c   : > { %610 = vmatmul.mubr.bf16.gmra.mrb[24].mxu0 %v374_v45  ;;  %674 = vmatmul.mubr.bf16.gmra.mrb[24].mxu1 %v390_v46  ;;  %v822_v46 = vand.u32 15, %v4420_v31  ;;  %vm4740_vm12 = vcmp.eq.s32.totalorder %v934_v40, 15 }
  0x8d   : > { %617 = vmatprep.mubr.bf16.mxu0 %v377_v47  ;;  %681 = vmatprep.mubr.bf16.mxu1 %v393_v48  ;;  %v4441_v47 = vadd.s32 168, %v4391_v11  ;;  %v4444_v48 = vadd.s32 184, %v4391_v11 }
  0x8e   : > { %vm4708_vm11 = vcmp.eq.s32.totalorder %v822_v46, 15 }
  0x8f   : > { %v920_v29 = vand.u32 15, %v4444_v48 }
  0x91   : > { %vm4679_vm10 = vcmp.eq.s32.totalorder %v920_v29, 15 }
  0x94   : > { %618 = vmatmul.mubr.bf16.gmra.mrb[28].mxu0 %v376_v53  ;;  %682 = vmatmul.mubr.bf16.gmra.mrb[28].mxu1 %v392_v54  ;;  %v4454_v54 = vadd.s32 88, %v4391_v11 }
  0x95   : > { %3495 = vmatprep.mubr.msk.bf16.mxu0 %vm1525_vm0, %v1629_v62 }
  0x9c   : > { %2175 = vmatmul.mubr.bf16.vlgmr.msra.gmra.mrb[32].mxu0 %v4022_v0 }
 0x12f   : > { %v3611_v14 = vpop.f32.mrb[0].mxu0  ;;  %v3659_v16 = vpop.f32.mrb[0].mxu1 }
 0x130   : > { %v3612_v17 = vpop.f32.mrb[1].mxu0  ;;  %v3660_v20 = vpop.f32.mrb[1].mxu1 }
 0x131   : > { %v3613_v23 = vadd.f32 %v3612_v17, %v3611_v14  ;;  %v3614_v24 = vpop.f32.mrb[2].mxu0  ;;  %v3661_v25 = vadd.f32 %v3660_v20, %v3659_v16  ;;  %v3662_v26 = vpop.f32.mrb[2].mxu1 }
 0x132   : > { %v3615_v28 = vpop.f32.mrb[3].mxu0  ;;  %v3663_v30 = vpop.f32.mrb[3].mxu1 }
 0x133   : > { %v564_v32 = vadd.f32 %v3613_v23, %v4400_v15  ;;  %v3616_v33 = vadd.f32 %v3615_v28, %v3614_v24  ;;  %v628_v34 = vadd.f32 %v3661_v25, %v4400_v15  ;;  %v3664_v35 = vadd.f32 %v3663_v30, %v3662_v26 }
 0x134   : > { %v906_v28 = vand.u32 15, %v4441_v47  ;;  %v836_v30 = vand.u32 15, %v4454_v54 }
 0x135   : > { %v4432_v41 = vmax.f32 %v564_v32, 0.0  ;;  %v567_v42 = vadd.f32 %v3616_v33, %v4400_v15  ;;  %v631_v43 = vadd.f32 %v3664_v35, %v4400_v15  ;;  %v4437_v45 = vmax.f32 %v628_v34, 0.0 }
 0x136   : > { %vm4608_vm8 = vcmp.eq.s32.totalorder %v906_v28, 15  ;;  %vm4775_vm13 = vcmp.eq.s32.totalorder %v836_v30, 15 }
 0x137   : > { %v5909_v49 = vrot.slane %v4432_v41, 7  ;;  %v4447_v50 = vmax.f32 %v567_v42, 0.0  ;;  %v3617_v51 = vpop.f32.mrb[4].mxu0  ;;  %v3665_v53 = vpop.f32.mrb[4].mxu1  ;;  %v5910_v56 = vrot.slane %v4432_v41, 1  ;;  %v5908_v58 = vrot.slane %v4437_v45, 7 }
 0x138   : > { %v3618_v57 = vpop.f32.mrb[5].mxu0  ;;  %v5911_v59 = vrot.slane %v4437_v45, 1  ;;  %v4463_v60 = vmax.f32 %v631_v43, 0.0  ;;  %v3666_v61 = vpop.f32.mrb[5].mxu1  ;;  %v4519_v42 = vadd.s32 216, %v4391_v11 }
 0x139   : > { %v1172_v62 = vrot.slane %v4447_v50, 7  ;;  %v1301_v63 = vrot.slane %v4447_v50, 1  ;;  %v3619_v1 = vadd.f32 %v3618_v57, %v3617_v51  ;;  %v3620_v2 = vpop.f32.mrb[6].mxu0  ;;  %v3775_v3 = vpack.i.bf16 %v4447_v50, %v4432_v41  ;;  %v3668_v0 = vpop.f32.mrb[6].mxu1 }
 0x13a   : > { %v3621_v4 = vpop.f32.mrb[7].mxu0  ;;  %v5903_v5 = vrot.slane %v4463_v60, 7  ;;  %v1317_v6 = vrot.slane %v4463_v60, 1  ;;  %v3667_v7 = vadd.f32 %v3666_v61, %v3665_v53  ;;  %v3669_v8 = vpop.f32.mrb[7].mxu1 }
 0x13b   : > { %v1363_v10 = vsel %vm1332_vm1, %v5910_v56, %v1301_v63  ;;  %v572_v12 = vadd.f32 %v3619_v1, %v4400_v15  ;;  %v3622_v13 = vadd.f32 %v3621_v4, %v3620_v2  ;;  %3776 = vrot.lane.b32.xlu0 %v3775_v3, %s4023_s21  ;;  %v3670_v14 = vadd.f32 %v3669_v8, %v3668_v0 }
 0x13c   : > { %v1347_v16 = vsel %vm1332_vm1, %v5911_v59, %v1317_v6  ;;  %v636_v17 = vadd.f32 %v3667_v7, %v4400_v15  ;;  %v4490_v18 = vsel %vm1203_vm2, %v5909_v49, %v1172_v62  ;;  %v4498_v20 = vsel %vm1203_vm2, %v5908_v58, %v5903_v5 }
 0x13d   : > { %v692_v22 = vmax.f32 %v572_v12, 0.0  ;;  %v575_v23 = vadd.f32 %v3622_v13, %v4400_v15  ;;  %v639_v25 = vadd.f32 %v3670_v14, %v4400_v15 }
 0x13e   : > { %v4506_v26 = vmax.f32 %v636_v17, 0.0 }
 0x13f   : > { %v1302_v32 = vrot.slane %v692_v22, 1  ;;  %v4511_v33 = vmax.f32 %v575_v23, 0.0  ;;  %v3623_v34 = vpop.f32.mrb[8].mxu0  ;;  %v3671_v39 = vpop.f32.mrb[8].mxu1  ;;  %v1173_v43 = vrot.slane %v692_v22, 7  ;;  %v4523_v61 = vmax.f32 %v639_v25, 0.0 }
 0x140   : > { %v3624_v51 = vpop.f32.mrb[9].mxu0  ;;  %v5904_v53 = vrot.slane %v4506_v26, 7  ;;  %v1318_v57 = vrot.slane %v4506_v26, 1  ;;  %v3672_v1 = vpop.f32.mrb[9].mxu1 }
 0x141   : > { %v1362_v36 = vsel %vm1332_vm1, %v1301_v63, %v1302_v32  ;;  %v1174_v2 = vrot.slane %v4511_v33, 7  ;;  %v1303_v3 = vrot.slane %v4511_v33, 1  ;;  %v3625_v0 = vadd.f32 %v3624_v51, %v3623_v34  ;;  %v3626_v4 = vpop.f32.mrb[10].mxu0  ;;  %v3674_v7 = vpop.f32.mrb[10].mxu1 }
 0x142   : > { %v1366_v8 = vsel %vm4449_vm3, 0.0, %v1362_v36  ;;  %v3627_v12 = vpop.f32.mrb[11].mxu0  ;;  %v3780_v13 = vpack.i.bf16 %v4511_v33, %v692_v22  ;;  %v1346_v14 = vsel %vm1332_vm1, %v1317_v6, %v1318_v57  ;;  %v5905_v17 = vrot.slane %v4523_v61, 7  ;;  %v3675_v23 = vpop.f32.mrb[11].mxu1 }
 0x143   : > { %v1559_v25 = vpack.c.bf16 %v1366_v8, %v1363_v10  ;;  %v1361_v52 = vsel %vm1332_vm1, %v1302_v32, %v1303_v3  ;;  %v580_v34 = vadd.f32 %v3625_v0, %v4400_v15  ;;  %v3628_v51 = vadd.f32 %v3627_v12, %v3626_v4 }
 0x144   : > { %3781 = vrot.lane.b32.xlu0 %v3780_v13, %s4023_s21  ;;  %v1382_v6 = vsel %vm4501_vm4, 0.0, %v1346_v14  ;;  %v1319_v22 = vrot.slane %v4523_v61, 1  ;;  %v3673_v27 = vadd.f32 %v3672_v1, %v3671_v39  ;;  %v3676_v44 = vadd.f32 %v3675_v23, %v3674_v7 }
 0x145   : > { %1597 = vst.msk [vmem:[#allocation2 + $0x18] sm:$0xff] %vm1525_vm0, %v1559_v25  ;;  %v4549_v36 = vmax.f32 %v580_v34, 0.0  ;;  %v583_v10 = vadd.f32 %v3628_v51, %v4400_v15  ;;  %v1575_v8 = vpack.c.bf16 %v1382_v6, %v1347_v16  ;;  %v4562_v39 = vsel %vm1203_vm2, %v1173_v43, %v1174_v2 }
 0x146   : > { %v1345_v0 = vsel %vm1332_vm1, %v1318_v57, %v1319_v22  ;;  %v644_v24 = vadd.f32 %v3673_v27, %v4400_v15  ;;  %v647_v4 = vadd.f32 %v3676_v44, %v4400_v15  ;;  %v4575_v13 = vadd.s32 104, %v4391_v11 }
 0x147   : > { %v1304_v1 = vrot.slane %v4549_v36, 1  ;;  %v4565_v7 = vmax.f32 %v583_v10, 0.0  ;;  %v3629_v16 = vpop.f32.mrb[12].mxu0  ;;  %1613 = vst.msk [vmem:[#allocation2 + $0x98] sm:$0xff] %vm1525_vm0, %v1575_v8  ;;  %v3677_v57 = vpop.f32.mrb[12].mxu1  ;;  %v4581_v14 = vsel %vm1203_vm2, %v1172_v62, %v1173_v43  ;;  %v1175_v23 = vrot.slane %v4549_v36, 7 }
 0x148   : > { %v3630_v25 = vpop.f32.mrb[13].mxu0  ;;  %v4584_v19 = vmax.f32 %v644_v24, 0.0  ;;  %v4586_v37 = vmax.f32 %v647_v4, 0.0  ;;  %v3678_v34 = vpop.f32.mrb[13].mxu1  ;;  %v4594_v51 = vsel %vm1203_vm2, %v5904_v53, %v5905_v17 }
 0x149   : > { %5931 = vst [vmem:[#allocation9_spill] sm:$0xff] %v4594_v51  ;;  %v1360_v50 = vsel %vm1332_vm1, %v1303_v3, %v1304_v1  ;;  %v1176_v62 = vrot.slane %v4565_v7, 7  ;;  %v1305_v43 = vrot.slane %v4565_v7, 1  ;;  %v3631_v6 = vadd.f32 %v3630_v25, %v3629_v16  ;;  %v3632_v27 = vpop.f32.mrb[14].mxu0  ;;  %v3680_v44 = vpop.f32.mrb[14].mxu1 }
 0x14a   : > { %v1368_v10 = vsel %vm4513_vm5, 0.0, %v1360_v50  ;;  %v3633_v8 = vpop.f32.mrb[15].mxu0  ;;  %v3785_v24 = vpack.i.bf16 %v4565_v7, %v4549_v36  ;;  %v5907_v4 = vrot.slane %v4584_v19, 7  ;;  %v1320_v32 = vrot.slane %v4584_v19, 1  ;;  %v3681_v16 = vpop.f32.mrb[15].mxu1 }
 0x14b   : > { %v1561_v25 = vpack.c.bf16 %v1368_v10, %v1361_v52  ;;  %v1359_v35 = vsel %vm1332_vm1, %v1304_v1, %v1305_v43  ;;  %v588_v50 = vadd.f32 %v3631_v6, %v4400_v15  ;;  %v3634_v5 = vadd.f32 %v3633_v8, %v3632_v27 }
 0x14c   : > { %3786 = vrot.lane.b32.xlu1 %v3785_v24, %s4023_s21  ;;  %v1685_v36 = vld [vmem:[#allocation2 + $0x18] sm:$0xff]  ;;  %v1344_v53 = vsel %vm1332_vm1, %v1319_v22, %v1320_v32  ;;  %v5906_v47 = vrot.slane %v4586_v37, 7  ;;  %v1321_v28 = vrot.slane %v4586_v37, 1  ;;  %v3679_v17 = vadd.f32 %v3678_v34, %v3677_v57 }
 0x14d   : > { %1599 = vst.msk [vmem:[#allocation2 + $0x28] sm:$0xff] %vm1525_vm0, %v1561_v25  ;;  %v4621_v52 = vmax.f32 %v588_v50, 0.0  ;;  %v591_v1 = vadd.f32 %v3634_v5, %v4400_v15  ;;  %3467 = vmatprep.mubr.msk.bf16.mxu1 %vm1525_vm0, %v1685_v36  ;;  %3496 = vmatprep.mubr.msk.bf16.mxu0 %vm1525_vm0, %v1685_v36  ;;  %v1384_v6 = vsel %vm4537_vm6, 0.0, %v1344_v53  ;;  %v3682_v27 = vadd.f32 %v3681_v16, %v3680_v44 }
 0x14e   : > { %v1577_v22 = vpack.c.bf16 %v1384_v6, %v1345_v0  ;;  %v1343_v10 = vsel %vm1332_vm1, %v1320_v32, %v1321_v28  ;;  %v652_v57 = vadd.f32 %v3679_v17, %v4400_v15  ;;  %v948_v32 = vand.u32 15, %v4519_v42 }
 0x14f   : > { %v1306_v8 = vrot.slane %v4621_v52, 1  ;;  %v4634_v5 = vmax.f32 %v591_v1, 0.0  ;;  %v3635_v24 = vpop.f32.mrb[16].mxu0  ;;  %v655_v53 = vadd.f32 %v3682_v27, %v4400_v15  ;;  %v3683_v0 = vpop.f32.mrb[16].mxu1  ;;  %v4651_v21 = vsel %vm1203_vm2, %v1175_v23, %v1176_v62 }
 0x150   : > { %v3636_v17 = vpop.f32.mrb[17].mxu0  ;;  %1615 = vst.msk [vmem:[#allocation2 + $0xa8] sm:$0xff] %vm1525_vm0, %v1577_v22  ;;  %v4645_v44 = vmax.f32 %v652_v57, 0.0  ;;  %v3684_v16 = vpop.f32.mrb[17].mxu1  ;;  %v4657_v38 = vsel %vm1203_vm2, %v1174_v2, %v1175_v23  ;;  %v4665_v25 = vsel %vm1203_vm2, %v5907_v4, %v5906_v47  ;;  %v850_v27 = vand.u32 15, %v4575_v13 }
 0x151   : > { %v1358_v50 = vsel %vm1332_vm1, %v1305_v43, %v1306_v8  ;;  %v1307_v36 = vrot.slane %v4634_v5, 1  ;;  %v3637_v1 = vadd.f32 %v3636_v17, %v3635_v24  ;;  %v3638_v6 = vpop.f32.mrb[18].mxu0  ;;  %v3686_v33 = vpop.f32.mrb[18].mxu1  ;;  %v5912_v23 = vrot.slane %v4634_v5, 7 }
 0x152   : > { %v1370_v2 = vsel %vm4569_vm7, 0.0, %v1358_v50  ;;  %v3639_v22 = vpop.f32.mrb[19].mxu0  ;;  %v3790_v57 = vpack.i.bf16 %v4634_v5, %v4621_v52  ;;  %v1322_v47 = vrot.slane %v4645_v44, 1  ;;  %v3687_v24 = vpop.f32.mrb[19].mxu1  ;;  %v4689_v34 = vmax.f32 %v655_v53, 0.0 }
 0x153   : > { %v1563_v17 = vpack.c.bf16 %v1370_v2, %v1359_v35  ;;  %v1357_v12 = vsel %vm1332_vm1, %v1306_v8, %v1307_v36  ;;  %v596_v50 = vadd.f32 %v3637_v1, %v4400_v15  ;;  %v3640_v4 = vadd.f32 %v3639_v22, %v3638_v6 }
 0x154   : > { %3791 = vrot.lane.b32.xlu1 %v3790_v57, %s4023_s21  ;;  %v1342_v58 = vsel %vm1332_vm1, %v1321_v28, %v1322_v47  ;;  %v3685_v48 = vadd.f32 %v3684_v16, %v3683_v0  ;;  %v3688_v29 = vadd.f32 %v3687_v24, %v3686_v33  ;;  %v4698_v1 = vadd.s32 120, %v4391_v11 }
 0x155   : > { %1601 = vst.msk [vmem:[#allocation2 + $0x38] sm:$0xff] %vm1525_vm0, %v1563_v17  ;;  %v4692_v49 = vmax.f32 %v596_v50, 0.0  ;;  %v599_v35 = vadd.f32 %v3640_v4, %v4400_v15  ;;  %v1386_v8 = vsel %vm4608_vm8, 0.0, %v1342_v58  ;;  %v1177_v6 = vrot.slane %v4621_v52, 7 }
 0x156   : > { %v1579_v2 = vpack.c.bf16 %v1386_v8, %v1343_v10  ;;  %v1323_v28 = vrot.slane %v4689_v34, 1  ;;  %v660_v53 = vadd.f32 %v3685_v48, %v4400_v15  ;;  %v663_v58 = vadd.f32 %v3688_v29, %v4400_v15 }
 0x157   : > { %v1308_v0 = vrot.slane %v4692_v49, 1  ;;  %v4704_v16 = vmax.f32 %v599_v35, 0.0  ;;  %v3641_v33 = vpop.f32.mrb[20].mxu0  ;;  %v3689_v3 = vpop.f32.mrb[20].mxu1  ;;  %v4714_v52 = vadd.s32 248, %v4391_v11  ;;  %v4727_v46 = vsel %vm1203_vm2, %v1177_v6, %v5912_v23 }
 0x158   : > { %v3642_v10 = vpop.f32.mrb[21].mxu0  ;;  %1617 = vst.msk [vmem:[#allocation2 + $0xb8] sm:$0xff] %vm1525_vm0, %v1579_v2  ;;  %v1341_v22 = vsel %vm1332_vm1, %v1322_v47, %v1323_v28  ;;  %v4719_v57 = vmax.f32 %v660_v53, 0.0  ;;  %v3690_v24 = vpop.f32.mrb[21].mxu1  ;;  %v4753_v40 = vmax.f32 %v663_v58, 0.0  ;;  %vm4804_vm14 = vcmp.eq.s32.totalorder %v948_v32, 15 }
 0x159   : > { %v1356_v17 = vsel %vm1332_vm1, %v1307_v36, %v1308_v0  ;;  %v1309_v50 = vrot.slane %v4704_v16, 1  ;;  %v3643_v48 = vadd.f32 %v3642_v10, %v3641_v33  ;;  %v3644_v29 = vpop.f32.mrb[22].mxu0  ;;  %v3692_v47 = vpop.f32.mrb[22].mxu1  ;;  %v3795_v53 = vpack.i.bf16 %v4704_v16, %v4692_v49 }
 0x15a   : > { %v1372_v8 = vsel %vm4638_vm9, 0.0, %v1356_v17  ;;  %v3645_v2 = vpop.f32.mrb[23].mxu0  ;;  %v1324_v31 = vrot.slane %v4719_v57, 1  ;;  %v3693_v33 = vpop.f32.mrb[23].mxu1  ;;  %v4745_v10 = vadd.s32 232, %v4391_v11  ;;  %v3691_v9 = vadd.f32 %v3690_v24, %v3689_v3 }
 0x15b   : > { %v1565_v56 = vpack.c.bf16 %v1372_v8, %v1357_v12  ;;  %v1355_v63 = vsel %vm1332_vm1, %v1308_v0, %v1309_v50  ;;  %v604_v17 = vadd.f32 %v3643_v48, %v4400_v15  ;;  %v3646_v59 = vadd.f32 %v3645_v2, %v3644_v29  ;;  %3796 = vrot.lane.b32.xlu0 %v3795_v53, %s4023_s21 }
 0x15c   : > { %v1340_v55 = vsel %vm1332_vm1, %v1323_v28, %v1324_v31  ;;  %v3694_v35 = vadd.f32 %v3693_v33, %v3692_v47  ;;  %v4765_v48 = vsel %vm1203_vm2, %v1176_v62, %v1177_v6  ;;  %v1325_v58 = vrot.slane %v4753_v40, 1 }
 0x15d   : > { %1603 = vst.msk [vmem:[#allocation2 + $0x48] sm:$0xff] %vm1525_vm0, %v1565_v56  ;;  %v4756_v23 = vmax.f32 %v604_v17, 0.0  ;;  %v607_v12 = vadd.f32 %v3646_v59, %v4400_v15  ;;  %v1388_v0 = vsel %vm4679_vm10, 0.0, %v1340_v55  ;;  %v668_v3 = vadd.f32 %v3691_v9, %v4400_v15 }
 0x15e   : > { %v1581_v28 = vpack.c.bf16 %v1388_v0, %v1341_v22  ;;  %v671_v62 = vadd.f32 %v3694_v35, %v4400_v15  ;;  %v962_v6 = vand.u32 15, %v4745_v10  ;;  %v1179_v9 = vrot.slane %v4692_v49, 7 }
 0x15f   : > { %v1310_v24 = vrot.slane %v4756_v23, 1  ;;  %v4771_v29 = vmax.f32 %v607_v12, 0.0  ;;  %v3647_v59 = vpop.f32.mrb[24].mxu0  ;;  %v3695_v43 = vpop.f32.mrb[24].mxu1  ;;  %v1339_v22 = vsel %vm1332_vm1, %v1324_v31, %v1325_v58  ;;  %v4785_v8 = vmax.f32 %v668_v3, 0.0 }
 0x160   : > { %1619 = vst.msk [vmem:[#allocation2 + $0xc8] sm:$0xff] %vm1525_vm0, %v1581_v28  ;;  %v3648_v47 = vpop.f32.mrb[25].mxu0  ;;  %v3696_v54 = vpop.f32.mrb[25].mxu1  ;;  %v5914_v2 = vrot.slane %v4704_v16, 7  ;;  %v5915_v17 = vrot.slane %v4756_v23, 7  ;;  %v4797_v0 = vmax.f32 %v671_v62, 0.0 }
 0x161   : > { %v1354_v35 = vsel %vm1332_vm1, %v1309_v50, %v1310_v24  ;;  %v1311_v53 = vrot.slane %v4771_v29, 1  ;;  %v3649_v49 = vadd.f32 %v3648_v47, %v3647_v59  ;;  %v3650_v33 = vpop.f32.mrb[26].mxu0  ;;  %v3698_v10 = vpop.f32.mrb[26].mxu1  ;;  %v1326_v55 = vrot.slane %v4785_v8, 1 }
 0x162   : > { %v1374_v31 = vsel %vm4708_vm11, 0.0, %v1354_v35  ;;  %v3651_v12 = vpop.f32.mrb[27].mxu0  ;;  %v3699_v28 = vpop.f32.mrb[27].mxu1  ;;  %v5913_v4 = vrot.slane %v4771_v29, 7  ;;  %v1327_v35 = vrot.slane %v4797_v0, 1  ;;  %vm4834_vm15 = vcmp.eq.s32.totalorder %v850_v27, 15 }
 0x163   : > { %v1567_v3 = vpack.c.bf16 %v1374_v31, %v1355_v63  ;;  %v1353_v50 = vsel %vm1332_vm1, %v1310_v24, %v1311_v53  ;;  %v612_v30 = vadd.f32 %v3649_v49, %v4400_v15  ;;  %v3652_v59 = vadd.f32 %v3651_v12, %v3650_v33 }
 0x164   : > { %v1338_v62 = vsel %vm1332_vm1, %v1325_v58, %v1326_v55  ;;  %v3800_v63 = vpack.i.bf16 %v4771_v29, %v4756_v23  ;;  %v3697_v49 = vadd.f32 %v3696_v54, %v3695_v43  ;;  %v1337_v31 = vsel %vm1332_vm1, %v1326_v55, %v1327_v35 }
 0x165   : > { %1605 = vst.msk [vmem:[#allocation2 + $0x58] sm:$0xff] %vm1525_vm0, %v1567_v3  ;;  %v4815_v24 = vmax.f32 %v612_v30, 0.0  ;;  %v1390_v42 = vsel %vm4740_vm12, 0.0, %v1338_v62  ;;  %v615_v32 = vadd.f32 %v3652_v59, %v4400_v15  ;;  %v3700_v58 = vadd.f32 %v3699_v28, %v3698_v10 }
 0x166   : > { %v1583_v33 = vpack.c.bf16 %v1390_v42, %v1339_v22  ;;  %3801 = vrot.lane.b32.xlu1 %v3800_v63, %s4023_s21  ;;  %v676_v36 = vadd.f32 %v3697_v49, %v4400_v15  ;;  %vm4838_vm3 = vcmp.eq.s32.totalorder %v962_v6, 15  ;;  %v4846_v62 = vsel %vm1203_vm2, %v1179_v9, %v5914_v2 }
 0x167   : > { %v1312_v30 = vrot.slane %v4815_v24, 1  ;;  %v4827_v56 = vmax.f32 %v615_v32, 0.0  ;;  %v3653_v59 = vpop.f32.mrb[28].mxu0  ;;  %v3701_v43 = vpop.f32.mrb[28].mxu1  ;;  %v679_v22 = vadd.f32 %v3700_v58, %v4400_v15  ;;  %v5950_v63 = vrot.slane %v4634_v5, 7 }
 0x168   : > { %1621 = vst.msk [vmem:[#allocation2 + $0xd8] sm:$0xff] %vm1525_vm0, %v1583_v33  ;;  %v3654_v54 = vpop.f32.mrb[29].mxu0  ;;  %v3702_v55 = vpop.f32.mrb[29].mxu1  ;;  %v4860_v27 = vsel %vm1203_vm2, %v5915_v17, %v5913_v4  ;;  %v4866_v5 = vmax.f32 %v676_v36, 0.0  ;;  %v1195_v6 = vrot.slane %v4719_v57, 7  ;;  %v5951_v17 = vand.u32 15, %v4698_v1 }
 0x169   : > { %v4852_v13 = vsel %vm1203_vm2, %v5950_v63, %v1179_v9  ;;  %v1352_v42 = vsel %vm1332_vm1, %v1311_v53, %v1312_v30  ;;  %v1313_v32 = vrot.slane %v4827_v56, 1  ;;  %v3656_v49 = vpop.f32.mrb[30].mxu0  ;;  %v3704_v9 = vpop.f32.mrb[30].mxu1  ;;  %v4870_v58 = vmax.f32 %v679_v22, 0.0 }
 0x16a   : > { %v1376_v33 = vsel %vm4775_vm13, 0.0, %v1352_v42  ;;  %v3655_v63 = vadd.f32 %v3654_v54, %v3653_v59  ;;  %v3703_v12 = vadd.f32 %v3702_v55, %v3701_v43  ;;  %v3657_v3 = vpop.f32.mrb[31].mxu0  ;;  %v3705_v4 = vpop.f32.mrb[31].mxu1  ;;  %v1328_v36 = vrot.slane %v4866_v5, 1 }
 0x16b   : > { %v1569_v2 = vpack.c.bf16 %v1376_v33, %v1353_v50  ;;  %v1351_v53 = vsel %vm1332_vm1, %v1312_v30, %v1313_v32  ;;  %vm4878_vm4 = vcmp.eq.s32.totalorder %v5951_v17, 15  ;;  %v1184_v7 = vrot.slane %v4827_v56, 7 }
 0x16c   : > { %v1329_v59 = vrot.slane %v4870_v58, 1  ;;  %v620_v43 = vadd.f32 %v3655_v63, %v4400_v15  ;;  %v684_v22 = vadd.f32 %v3703_v12, %v4400_v15  ;;  %v5954_v50 = vand.u32 15, %v4714_v52 }
 0x16d   : > { %1607 = vst.msk [vmem:[#allocation2 + $0x68] sm:$0xff] %vm1525_vm0, %v1569_v2  ;;  %v1336_v1 = vsel %vm1332_vm1, %v1327_v35, %v1328_v36  ;;  %v3658_v17 = vadd.f32 %v3657_v3, %v3656_v49  ;;  %v3706_v54 = vadd.f32 %v3705_v4, %v3704_v9  ;;  %v3805_v55 = vpack.i.bf16 %v4827_v56, %v4815_v24 }
 0x16e   : > { %vm4888_vm5 = vcmp.eq.s32.totalorder %v5954_v50, 15  ;;  %v1392_v42 = vsel %vm4804_vm14, 0.0, %v1336_v1  ;;  %v1335_v52 = vsel %vm1332_vm1, %v1328_v36, %v1329_v59  ;;  %v704_v12 = vmax.f32 %v620_v43, 0.0 }
 0x16f   : > { %v4901_v33 = vmax.f32 %v684_v22, 0.0  ;;  %v1585_v63 = vpack.c.bf16 %v1392_v42, %v1337_v31  ;;  %v623_v2 = vadd.f32 %v3658_v17, %v4400_v15  ;;  %v687_v50 = vadd.f32 %v3706_v54, %v4400_v15  ;;  %3806 = vrot.lane.b32.xlu0 %v3805_v55, %s4023_s21 }
 0x170   : > { %v3845_v4 = vpack.i.bf16 %v4870_v58, %v4866_v5  ;;  %v1196_v35 = vrot.slane %v4753_v40, 7  ;;  %v1183_v47 = vrot.slane %v4815_v24, 7  ;;  %v1314_v3 = vrot.slane %v704_v12, 1 }
 0x171   : > { %v1330_v49 = vrot.slane %v4901_v33, 1  ;;  %v1198_v9 = vrot.slane %v4797_v0, 7  ;;  %1623 = vst.msk [vmem:[#allocation2 + $0xe8] sm:$0xff] %vm1525_vm0, %v1585_v63  ;;  %v705_v31 = vmax.f32 %v623_v2, 0.0  ;;  %v721_v36 = vmax.f32 %v687_v50, 0.0 }
 0x172   : > { %v5957_v15 = vrot.slane %v4756_v23, 7  ;;  %v5958_v43 = vrot.slane %v4704_v16, 7  ;;  %v1185_v1 = vrot.slane %v704_v12, 7  ;;  %v1350_v24 = vsel %vm1332_vm1, %v1313_v32, %v1314_v3 }
 0x173   : > { %v1334_v17 = vsel %vm1332_vm1, %v1329_v59, %v1330_v49  ;;  %v4929_v54 = vsel %vm1203_vm2, %v1183_v47, %v1184_v7  ;;  %v1378_v23 = vsel %vm4834_vm15, 0.0, %v1350_v24  ;;  %v1186_v55 = vrot.slane %v705_v31, 7 }
 0x174   : > { %v4919_v22 = vsel %vm1203_vm2, %v5958_v43, %v5957_v15  ;;  %v1394_v16 = vsel %vm4838_vm3, 0.0, %v1334_v17  ;;  %v1315_v42 = vrot.slane %v705_v31, 1  ;;  %v5959_v32 = vpack.i.bf16 %v4463_v60, %v4437_v45 }
 0x175   : > { %v1571_v59 = vpack.c.bf16 %v1378_v23, %v1351_v53  ;;  %v1587_v63 = vpack.c.bf16 %v1394_v16, %v1335_v52  ;;  %v1202_v2 = vrot.slane %v721_v36, 7  ;;  %v1331_v50 = vrot.slane %v721_v36, 1 }
 0x176   : > { %3816 = vrot.lane.b32.xlu0 %v5959_v32, %s4023_s21  ;;  %v5960_v15 = vrot.slane %v4437_v45, 1  ;;  %v1349_v28 = vsel %vm1332_vm1, %v1314_v3, %v1315_v42  ;;  %v3810_v43 = vpack.i.bf16 %v705_v31, %v704_v12  ;;  %v3850_v24 = vpack.i.bf16 %v721_v36, %v4901_v33 }
 0x177   : > { %1609 = vst.msk [vmem:[#allocation2 + $0x78] sm:$0xff] %vm1525_vm0, %v1571_v59  ;;  %1625 = vst.msk [vmem:[#allocation2 + $0xf8] sm:$0xff] %vm1525_vm0, %v1587_v63  ;;  %v1333_v52 = vsel %vm1332_vm1, %v1330_v49, %v1331_v50  ;;  %v5961_v17 = vrot.slane %v4432_v41, 1  ;;  %v5962_v3 = vrot.slane %v4432_v41, 7  ;;  %v1199_v31 = vrot.slane %v4866_v5, 7 }
 0x178   : > { %v1348_v10 = vsel %vm1332_vm1, %v1315_v42, %v5960_v15  ;;  %3811 = vrot.lane.b32.xlu1 %v3810_v43, %s4023_s21  ;;  %v5963_v49 = vpack.i.bf16 %v4586_v37, %v4584_v19  ;;  %v5964_v16 = vrot.slane %v4771_v29, 7  ;;  %v1200_v42 = vrot.slane %v4870_v58, 7 }
 0x179   : > { %v1380_v53 = vsel %vm4878_vm4, 0.0, %v1348_v10  ;;  %v1364_v23 = vsel %vm1332_vm1, %v1331_v50, %v5961_v17  ;;  %v1235_v12 = vsel %vm1203_vm2, %v1202_v2, %v5962_v3  ;;  %v5965_v59 = vrot.slane %v4437_v45, 7 }
 0x17a   : > { %v1573_v36 = vpack.c.bf16 %v1380_v53, %v1349_v28  ;;  %v1396_v51 = vsel %vm4888_vm5, 0.0, %v1364_v23  ;;  %3826 = vrot.lane.b32.xlu0 %v5963_v49, %s4023_s21  ;;  %v4972_v41 = vsel %vm1203_vm2, %v5964_v16, %v1183_v47  ;;  %v4983_v63 = vsel %vm1203_vm2, %v1185_v1, %v1186_v55 }
 0x17b   : > { %v1589_v32 = vpack.c.bf16 %v1396_v51, %v1333_v52  ;;  %v4979_v30 = vsel %vm1203_vm2, %v1186_v55, %v5965_v59  ;;  %v1197_v50 = vrot.slane %v4785_v8, 7  ;;  %v4991_v29 = vsel %vm1203_vm2, %v1184_v7, %v1185_v1 }
 0x17c   : > { %1611 = vst.msk [vmem:[#allocation2 + $0x88] sm:$0xff] %vm1525_vm0, %v1573_v36  ;;  %v5966_v45 = vrot.slane %v4584_v19, 7  ;;  %v5967_v47 = vrot.slane %v4523_v61, 7  ;;  %v5968_v55 = vrot.slane %v4506_v26, 7  ;;  %v5969_v10 = vrot.slane %v4463_v60, 7 }
 0x17d   : > { %v1201_v56 = vrot.slane %v4901_v33, 7  ;;  %1627 = vst.msk [vmem:[#allocation2 + $0x108] sm:$0xff] %vm1525_vm0, %v1589_v32  ;;  %v5015_v19 = vsel %vm1203_vm2, %v1195_v6, %v1196_v35  ;;  %v5970_v7 = vpack.i.bf16 %v4523_v61, %v4506_v26  ;;  %v5971_v60 = vpack.i.bf16 %v4753_v40, %v4719_v57 }
 0x17e   : > { %v4999_v15 = vsel %vm1203_vm2, %v5967_v47, %v5966_v45  ;;  %v5007_v28 = vsel %vm1203_vm2, %v5969_v10, %v5968_v55  ;;  %v5972_v33 = vrot.slane %v4689_v34, 7  ;;  %v5974_v53 = vrot.slane %v4645_v44, 7  ;;  %v3897_v10 = vld [vmem:[%s5897_s3 + $0xd0] sm:$0xff]  }
 0x17f   : > { %3821 = vrot.lane.b32.xlu1 %v5970_v7, %s4023_s21  ;;  %3836 = vrot.lane.b32.xlu0 %v5971_v60, %s4023_s21  ;;  %v5976_v40 = vrot.slane %v4586_v37, 7  ;;  %v5055_v52 = vsel %vm1203_vm2, %v1198_v9, %v1199_v31  ;;  %v5059_v17 = vsel %vm1203_vm2, %v1197_v50, %v1198_v9  ;;  %v5063_v23 = vsel %vm1203_vm2, %v1196_v35, %v1197_v50  ;;  %v3898_v7 = vld [vmem:[%s5897_s3 + $0xd8] sm:$0xff]  }
 0x180   : > { %v5031_v1 = vsel %vm1203_vm2, %v5972_v33, %v1195_v6  ;;  %v5973_v43 = vmov %v5972_v33  ;;  %v5975_v61 = vmov %v5974_v53  ;;  %v5051_v6 = vsel %vm1203_vm2, %v1199_v31, %v1200_v42 }
 0x181   : > { %v5039_v26 = vsel %vm1203_vm2, %v5974_v53, %v5973_v43  ;;  %v5047_v57 = vsel %vm1203_vm2, %v5976_v40, %v5975_v61  ;;  %v5067_v37 = vsel %vm1203_vm2, %v1201_v56, %v1202_v2  ;;  %v5071_v3 = vsel %vm1203_vm2, %v1200_v42, %v1201_v56 }
 0x182   : > { %v5977_v31 = vpack.i.bf16 %v4689_v34, %v4645_v44  ;;  %v5978_v35 = vpack.i.bf16 %v4797_v0, %v4785_v8  ;;  %v759_v9 = vand.u32 15, %v4391_v11  ;;  %v725_v36 = vadd.s32 16, %v4391_v11  ;;  %v3895_v8 = vld [vmem:[%s5897_s3 + $0xc0] sm:$0xff]  }
 0x183   : > { %3846 = vrot.lane.b32.xlu0 %v3845_v4, %s4023_s21  ;;  %v5094_v4 = vld [vmem:[#allocation2 + $0x28] sm:$0xff] }
 0x184   : > { %3831 = vrot.lane.b32.xlu1 %v5977_v31, %s4023_s21  ;;  %vm1139_vm1 = vcmp.eq.s32.totalorder %v759_v9, 0  ;;  %v773_v58 = vand.u32 15, %v725_v36 }
 0x185   : > { %v1236_v51 = vsel %vm1139_vm1, 0.0, %v1235_v12  ;;  %v5104_v12 = vld [vmem:[#allocation2] sm:$0xff] }
 0x186   : > { %vm1141_vm2 = vcmp.eq.s32.totalorder %v773_v58, 0  ;;  %v3902_v58 = vld [vmem:[%s5897_s3 + $0xf8] sm:$0xff]  }
 0x187   : > { %v1238_v59 = vsel %vm1141_vm2, 0.0, %v4581_v14  ;;  %v5119_v14 = vld [vmem:[#allocation2 + $0x38] sm:$0xff] }
 0x188   : > { %3841 = vrot.lane.b32.xlu1 %v5978_v35, %s4023_s21  ;;  %v3899_v35 = vld [vmem:[%s5897_s3 + $0xe0] sm:$0xff]  }
 0x18c   : > { %3851 = vrot.lane.b32.xlu1 %v3850_v24, %s4023_s21  ;;  %v3896_v24 = vld [vmem:[%s5897_s3 + $0xc8] sm:$0xff]  }
 0x1ad   : > { %v3777_v2 = vpop.permute.xlu0 %3776 }
 0x1ae   : > { %v3779_v34 = vunpack.i.h.bf16 %v3777_v2  ;;  %v3778_v44 = vunpack.i.l.bf16 %v3777_v2  ;;  %v3900_v2 = vld [vmem:[%s5897_s3 + $0xe8] sm:$0xff]  }
 0x1b0   : > { %v1526_v49 = vsel %vm1525_vm0, %v1236_v51, %v3778_v44  ;;  %v1527_v5 = vsel %vm1525_vm0, %v4490_v18, %v3779_v34  ;;  %v727_v18 = vadd.s32 32, %v4391_v11 }
 0x1b1   : > { %v1558_v0 = vpack.c.bf16 %v1527_v5, %v1526_v49 }
 0x1b2   : > { %v787_v47 = vand.u32 15, %v727_v18 }
 0x1b3   : > { %1894 = vmatmul.mubr.bf16.vlgmr.msra.gmra.mrb[32].mxu1 %v1558_v0  ;;  %2183 = vmatmul.mubr.bf16.gmra.mrb[36].mxu0 %v1558_v0  ;;  %v3901_v0 = vld [vmem:[%s5897_s3 + $0xf0] sm:$0xff]  }
 0x1b4   : > { %2482 = vmatpush1.bf16.msra.mxu1 %v3895_v8  ;;  %3468 = vmatprep.mubr.msk.bf16.mxu1 %vm1525_vm0, %v5094_v4  ;;  %vm1143_vm6 = vcmp.eq.s32.totalorder %v787_v47, 0 }
 0x1b5   : > { %3497 = vmatprep.mubr.msk.bf16.mxu0 %vm1525_vm0, %v5094_v4  ;;  %2483 = vmatprep.subr.bf16.mxu1 %v5104_v12  ;;  %v1240_v43 = vsel %vm1143_vm6, 0.0, %v4657_v38  ;;  %v5142_v38 = vld [vmem:[#allocation2 + $0x48] sm:$0xff] }
 0x1b6   : > { %v3782_v16 = vpop.permute.xlu0 %3781 }
 0x1b7   : > { %v3784_v42 = vunpack.i.h.bf16 %v3782_v16  ;;  %v3783_v32 = vunpack.i.l.bf16 %v3782_v16  ;;  %v733_v16 = vadd.s32 80, %v4391_v11 }
 0x1b8   : > { %2484 = vmatpush1.bf16.msra.mxu1 %v3896_v24 }
 0x1b9   : > { %v1529_v50 = vsel %vm1525_vm0, %v4562_v39, %v3784_v42  ;;  %v1528_v45 = vsel %vm1525_vm0, %v1238_v59, %v3783_v32  ;;  %2485 = vmatprep.subr.bf16.mxu1 %v5104_v12  ;;  %v729_v39 = vadd.s32 48, %v4391_v11  ;;  %v829_v47 = vand.u32 15, %v733_v16 }
 0x1ba   : > { %v5112_v55 = vpack.c.bf16 %v1529_v50, %v1528_v45  ;;  %v3903_v45 = vld [vmem:[%s5897_s3 + $0x100] sm:$0xff]  }
 0x1bb   : > { %v801_v40 = vand.u32 15, %v729_v39  ;;  %vm1149_vm9 = vcmp.eq.s32.totalorder %v829_v47, 0  ;;  %v735_v39 = vadd.s32 96, %v4391_v11 }
 0x1bc   : > { %1902 = vmatmul.mubr.bf16.gmra.mrb[36].mxu1 %v5112_v55  ;;  %2191 = vmatmul.mubr.bf16.gmra.mrb[40].mxu0 %v5112_v55 }
 0x1bd   : > { %3469 = vmatprep.mubr.msk.bf16.mxu1 %vm1525_vm0, %v5119_v14  ;;  %3498 = vmatprep.mubr.msk.bf16.mxu0 %vm1525_vm0, %v5119_v14  ;;  %vm1145_vm7 = vcmp.eq.s32.totalorder %v801_v40, 0  ;;  %v739_v40 = vadd.s32 128, %v4391_v11 }
 0x1be   : > { %v3787_v56 = vpop.permute.xlu1 %3786  ;;  %2486 = vmatpush1.bf16.msra.mxu1 %v3897_v10  ;;  %v1242_v44 = vsel %vm1145_vm7, 0.0, %v4765_v48  ;;  %v5165_v48 = vld [vmem:[#allocation2 + $0x58] sm:$0xff] }
 0x1bf   : > { %v3789_v60 = vunpack.i.h.bf16 %v3787_v56  ;;  %v3788_v33 = vunpack.i.l.bf16 %v3787_v56  ;;  %2487 = vmatprep.subr.bf16.mxu1 %v5104_v12 }
 0x1c1   : > { %v1530_v53 = vsel %vm1525_vm0, %v1240_v43, %v3788_v33  ;;  %v1531_v61 = vsel %vm1525_vm0, %v4651_v21, %v3789_v60  ;;  %v731_v21 = vadd.s32 64, %v4391_v11  ;;  %v1246_v60 = vsel %vm1149_vm9, 0.0, %v4919_v22  ;;  %v5212_v22 = vld [vmem:[#allocation2 + $0x78] sm:$0xff] }
 0x1c2   : > { %v5134_v31 = vpack.c.bf16 %v1531_v61, %v1530_v53  ;;  %2488 = vmatpush1.bf16.msra.mxu1 %v3898_v7  ;;  %v843_v61 = vand.u32 15, %v735_v39 }
 0x1c3   : > { %2489 = vmatprep.subr.bf16.mxu1 %v5104_v12  ;;  %v815_v5 = vand.u32 15, %v731_v21  ;;  %v871_v21 = vand.u32 15, %v739_v40  ;;  %v749_v40 = vadd.s32 208, %v4391_v11 }
 0x1c4   : > { %1910 = vmatmul.mubr.bf16.gmra.mrb[40].mxu1 %v5134_v31  ;;  %2199 = vmatmul.mubr.bf16.gmra.mrb[44].mxu0 %v5134_v31  ;;  %vm1151_vm10 = vcmp.eq.s32.totalorder %v843_v61, 0 }
 0x1c5   : > { %3470 = vmatprep.mubr.msk.bf16.mxu1 %vm1525_vm0, %v5142_v38  ;;  %3499 = vmatprep.mubr.msk.bf16.mxu0 %vm1525_vm0, %v5142_v38  ;;  %vm1147_vm8 = vcmp.eq.s32.totalorder %v815_v5, 0  ;;  %vm5230_vm11 = vcmp.eq.s32.totalorder %v871_v21, 0 }
 0x1c6   : > { %v3792_v9 = vpop.permute.xlu1 %3791  ;;  %2490 = vmatpush1.bf16.msra.mxu1 %v3899_v35  ;;  %v1244_v42 = vsel %vm1147_vm8, 0.0, %v4852_v13  ;;  %v5188_v13 = vld [vmem:[#allocation2 + $0x68] sm:$0xff]  ;;  %v3905_v35 = vld [vmem:[%s5897_s3 + $0x110] sm:$0xff]  }
 0x1c7   : > { %v3794_v36 = vunpack.i.h.bf16 %v3792_v9  ;;  %v3793_v34 = vunpack.i.l.bf16 %v3792_v9  ;;  %2491 = vmatprep.subr.bf16.mxu1 %v5104_v12  ;;  %v743_v9 = vadd.s32 160, %v4391_v11 }
 0x1c9   : > { %v1533_v51 = vsel %vm1525_vm0, %v4727_v46, %v3794_v36  ;;  %v1532_v49 = vsel %vm1525_vm0, %v1242_v44, %v3793_v34  ;;  %v741_v34 = vadd.s32 144, %v4391_v11 }
 0x1ca   : > { %v5157_v8 = vpack.c.bf16 %v1533_v51, %v1532_v49  ;;  %2492 = vmatpush1.bf16.msra.mxu1 %v3900_v2  ;;  %v3906_v2 = vld [vmem:[%s5897_s3 + $0x118] sm:$0xff]   ;;  %v1248_v49 = vsel %vm1151_vm10, 0.0, %v4972_v41  ;;  %v745_v41 = vadd.s32 176, %v4391_v11 }
 0x1cb   : > { %2493 = vmatprep.subr.bf16.mxu1 %v5104_v12 }
 0x1cc   : > { %1918 = vmatmul.mubr.bf16.gmra.mrb[44].mxu1 %v5157_v8  ;;  %2207 = vmatmul.mubr.bf16.gmra.mrb[48].mxu0 %v5157_v8  ;;  %v913_v61 = vand.u32 15, %v745_v41 }
 0x1cd   : > { %3471 = vmatprep.mubr.msk.bf16.mxu1 %vm1525_vm0, %v5165_v48  ;;  %3500 = vmatprep.mubr.msk.bf16.mxu0 %vm1525_vm0, %v5165_v48  ;;  %v3797_v46 = vpop.permute.xlu0 %3796 }
 0x1ce   : > { %2494 = vmatpush1.bf16.msra.mxu1 %v3901_v0  ;;  %v3799_v24 = vunpack.i.h.bf16 %v3797_v46  ;;  %v3798_v18 = vunpack.i.l.bf16 %v3797_v46  ;;  %v747_v0 = vadd.s32 192, %v4391_v11  ;;  %vm5287_vm3 = vcmp.eq.s32.totalorder %v913_v61, 0 }
 0x1cf   : > { %2495 = vmatprep.subr.bf16.mxu1 %v5104_v12 }
 0x1d0   : > { %v1535_v32 = vsel %vm1525_vm0, %v4846_v62, %v3799_v24  ;;  %v1534_v59 = vsel %vm1525_vm0, %v1244_v42, %v3798_v18  ;;  %v3904_v62 = vld [vmem:[%s5897_s3 + $0x108] sm:$0xff]   ;;  %v899_v18 = vand.u32 15, %v743_v9  ;;  %v927_v47 = vand.u32 15, %v747_v0 }
 0x1d1   : > { %v5180_v50 = vpack.c.bf16 %v1535_v32, %v1534_v59  ;;  %v885_v32 = vand.u32 15, %v741_v34 }
 0x1d2   : > { %2496 = vmatpush1.bf16.msra.mxu1 %v3902_v58  ;;  %vm5252_vm13 = vcmp.eq.s32.totalorder %v899_v18, 0  ;;  %vm5273_vm15 = vcmp.eq.s32.totalorder %v927_v47, 0  ;;  %v941_v18 = vand.u32 15, %v749_v40  ;;  %v753_v47 = vadd.s32 240, %v4391_v11 }
 0x1d3   : > { %2497 = vmatprep.subr.bf16.mxu1 %v5104_v12  ;;  %vm5262_vm14 = vcmp.eq.s32.totalorder %v885_v32, 0 }
 0x1d4   : > { %1926 = vmatmul.mubr.bf16.gmra.mrb[48].mxu1 %v5180_v50  ;;  %2215 = vmatmul.mubr.bf16.gmra.mrb[52].mxu0 %v5180_v50  ;;  %vm5326_vm5 = vcmp.eq.s32.totalorder %v941_v18, 0 }
 0x1d5   : > { %3472 = vmatprep.mubr.msk.bf16.mxu1 %vm1525_vm0, %v5188_v13  ;;  %3501 = vmatprep.mubr.msk.bf16.mxu0 %vm1525_vm0, %v5188_v13 }
 0x1d6   : > { %2498 = vmatpush1.bf16.msra.mxu1 %v3903_v45 }
 0x1d7   : > { %2499 = vmatprep.subr.bf16.mxu1 %v5104_v12 }
 0x1d8   : > { %v3802_v10 = vpop.permute.xlu1 %3801 }
 0x1d9   : > { %v3804_v56 = vunpack.i.h.bf16 %v3802_v10  ;;  %v3803_v7 = vunpack.i.l.bf16 %v3802_v10  ;;  %v751_v10 = vadd.s32 224, %v4391_v11 }
 0x1da   : > { %2500 = vmatpush1.bf16.msra.mxu1 %v3904_v62  ;;  %v5242_v62 = vld [vmem:[#allocation2 + $0x88] sm:$0xff] }
 0x1db   : > { %v1537_v33 = vsel %vm1525_vm0, %v4860_v27, %v3804_v56  ;;  %v1536_v43 = vsel %vm1525_vm0, %v1246_v60, %v3803_v7  ;;  %2501 = vmatprep.subr.bf16.mxu1 %v5104_v12  ;;  %v737_v27 = vadd.s32 112, %v4391_v11 }
 0x1dc   : > { %v5204_v53 = vpack.c.bf16 %v1537_v33, %v1536_v43 }
 0x1dd   : > { %v857_v5 = vand.u32 15, %v737_v27 }
 0x1de   : > { %1934 = vmatmul.mubr.bf16.gmra.mrb[52].mxu1 %v5204_v53  ;;  %2223 = vmatmul.mubr.bf16.gmra.mrb[56].mxu0 %v5204_v53 }
 0x1df   : > { %3473 = vmatprep.mubr.msk.bf16.mxu1 %vm1525_vm0, %v5212_v22  ;;  %3502 = vmatprep.mubr.msk.bf16.mxu0 %vm1525_vm0, %v5212_v22  ;;  %vm5248_vm12 = vcmp.eq.s32.totalorder %v857_v5, 0 }
 0x1e0   : > { %2502 = vmatpush1.bf16.msra.mxu1 %v3905_v35 }
 0x1e1   : > { %v3807_v36 = vpop.permute.xlu0 %3806  ;;  %2503 = vmatprep.subr.bf16.mxu1 %v5104_v12 }
 0x1e2   : > { %v3809_v44 = vunpack.i.h.bf16 %v3807_v36  ;;  %v3808_v51 = vunpack.i.l.bf16 %v3807_v36  ;;  %v1256_v36 = vsel %vm5252_vm13, 0.0, %v4999_v15 }
 0x1e4   : > { %v1539_v46 = vsel %vm1525_vm0, %v4929_v54, %v3809_v44  ;;  %v1538_v58 = vsel %vm1525_vm0, %v1248_v49, %v3808_v51  ;;  %2504 = vmatpush1.bf16.msra.mxu1 %v3906_v2  ;;  %v1252_v54 = vsel %vm5230_vm11, 0.0, %v4979_v30  ;;  %v1250_v2 = vsel %vm5248_vm12, 0.0, %v4991_v29 }
 0x1e5   : > { %v5234_v16 = vpack.c.bf16 %v1539_v46, %v1538_v58  ;;  %v955_v44 = vand.u32 15, %v751_v10  ;;  %v5993_v10 = vld [vmem:[#allocation9_spill] sm:$0xff] }
 0x1e7   : > { %1942 = vmatmul.mubr.bf16.gmra.mrb[56].mxu1 %v5234_v16  ;;  %2231 = vmatmul.mubr.bf16.gmra.mrb[60].mxu0 %v5234_v16  ;;  %vm5297_vm4 = vcmp.eq.s32.totalorder %v955_v44, 0 }
 0x1e8   : > { %v3817_v42 = vpop.permute.xlu0 %3816  ;;  %3474 = vmatprep.mubr.msk.bf16.mxu1 %vm1525_vm0, %v5242_v62  ;;  %3503 = vmatprep.mubr.msk.bf16.mxu0 %vm1525_vm0, %v5242_v62 }
 0x1e9   : > { %v3819_v59 = vunpack.i.h.bf16 %v3817_v42  ;;  %v3818_v45 = vunpack.i.l.bf16 %v3817_v42 }
 0x1ea   : > { %v3812_v33 = vpop.permute.xlu1 %3811 }
 0x1eb   : > { %v1543_v39 = vsel %vm1525_vm0, %v4498_v20, %v3819_v59  ;;  %v1542_v56 = vsel %vm1525_vm0, %v1252_v54, %v3818_v45  ;;  %v3814_v35 = vunpack.i.h.bf16 %v3812_v33  ;;  %v3813_v27 = vunpack.i.l.bf16 %v3812_v33  ;;  %v5303_v54 = vld [vmem:[#allocation2 + $0x98] sm:$0xff] }
 0x1ec   : > { %v5260_v60 = vpack.c.bf16 %v1543_v39, %v1542_v56  ;;  %v3827_v20 = vpop.permute.xlu0 %3826  ;;  %v1260_v59 = vsel %vm5273_vm15, 0.0, %v5031_v1 }
 0x1ed   : > { %v3829_v21 = vunpack.i.h.bf16 %v3827_v20  ;;  %v3828_v9 = vunpack.i.l.bf16 %v3827_v20  ;;  %v1541_v51 = vsel %vm1525_vm0, %v4983_v63, %v3814_v35  ;;  %v1540_v49 = vsel %vm1525_vm0, %v1250_v2, %v3813_v27 }
 0x1ee   : > { %v5283_v29 = vpack.c.bf16 %v1541_v51, %v1540_v49  ;;  %v1264_v27 = vsel %vm5297_vm4, 0.0, %v5055_v52 }
 0x1ef   : > { %v1547_v5 = vsel %vm1525_vm0, %v4665_v25, %v3829_v21  ;;  %v1546_v0 = vsel %vm1525_vm0, %v1256_v36, %v3828_v9  ;;  %v1254_v25 = vsel %vm5262_vm14, 0.0, %v5007_v28  ;;  %v969_v9 = vand.u32 15, %v753_v47  ;;  %v1709_v47 = vld [vmem:[#allocation2 + $0xd8] sm:$0xff] }
 0x1f0   : > { %v5285_v46 = vpack.c.bf16 %v1547_v5, %v1546_v0  ;;  %1950 = vmatmul.mubr.bf16.gmra.mrb[60].mxu1 %v5283_v29  ;;  %2239 = vmatmul.mubr.bf16.gmra.mrb[64].mxu0 %v5283_v29  ;;  %v1262_v0 = vsel %vm5326_vm5, 0.0, %v5063_v23 }
 0x1f1   : > { %v3822_v15 = vpop.permute.xlu1 %3821  ;;  %v3837_v58 = vpop.permute.xlu0 %3836  ;;  %3475 = vmatprep.mubr.msk.bf16.mxu1 %vm1525_vm0, %v5303_v54  ;;  %3504 = vmatprep.mubr.msk.bf16.mxu0 %vm1525_vm0, %v5303_v54  ;;  %vm1169_vm1 = vcmp.eq.s32.totalorder %v969_v9, 0 }
 0x1f2   : > { %v3824_v42 = vunpack.i.h.bf16 %v3822_v15  ;;  %v3823_v63 = vunpack.i.l.bf16 %v3822_v15  ;;  %v3839_v32 = vunpack.i.h.bf16 %v3837_v58  ;;  %v3838_v41 = vunpack.i.l.bf16 %v3837_v58 }
 0x1f4   : > { %v1545_v39 = vsel %vm1525_vm0, %v5993_v10, %v3824_v42  ;;  %v1544_v28 = vsel %vm1525_vm0, %v1254_v25, %v3823_v63  ;;  %v1551_v1 = vsel %vm1525_vm0, %v5015_v19, %v3839_v32  ;;  %v1550_v56 = vsel %vm1525_vm0, %v1260_v59, %v3838_v41  ;;  %v5364_v41 = vld [vmem:[#allocation2 + $0xb8] sm:$0xff]  ;;  %v3907_v10 = vld [vmem:[%s5899_s5] ss:$8 sps:$4 sm:$0xff]  }
 0x1f5   : > { %v5314_v7 = vpack.c.bf16 %v1545_v39, %v1544_v28  ;;  %v5316_v30 = vpack.c.bf16 %v1551_v1, %v1550_v56  ;;  %v3847_v20 = vpop.permute.xlu0 %3846  ;;  %v1258_v19 = vsel %vm5287_vm3, 0.0, %v5047_v57  ;;  %v1266_v42 = vsel %vm1169_vm1, 0.0, %v5071_v3  ;;  %v5370_v3 = vpop.f32.mrb[32].mxu0  ;;  %v3909_v39 = vld [vmem:[%s5899_s5 + $0x4] ss:$8 sps:$4 sm:$0xff]   ;;  %v5394_v1 = vld [vmem:[#allocation2 + $0xf8] sm:$0xff] }
 0x1f6   : > { %v3832_v33 = vpop.permute.xlu1 %3831  ;;  %v3849_v40 = vunpack.i.h.bf16 %v3847_v20  ;;  %v3848_v35 = vunpack.i.l.bf16 %v3847_v20  ;;  %v2178_v25 = vpop.f32.mrb[33].mxu0  ;;  %2869 = vmatprep.subr.bf16.mxu0 %v3909_v39  ;;  %v1711_v28 = vld [vmem:[#allocation2 + $0xe8] sm:$0xff]  ;;  %v3912_v20 = vld [vmem:[%s5899_s5 + $0x14] ss:$8 sps:$4 sm:$0xff]  }
 0x1f7   : > { %v3834_v43 = vunpack.i.h.bf16 %v3832_v33  ;;  %v3833_v61 = vunpack.i.l.bf16 %v3832_v33  ;;  %v5374_v59 = vpop.f32.mrb[34].mxu0  ;;  %2870 = vmatpush1.bf16.msra.mxu0 %v3907_v10  ;;  %v5402_v56 = vld [vmem:[#allocation2 + $0x108] sm:$0xff]  ;;  %v3910_v33 = vld [vmem:[%s5899_s5 + $0x10] ss:$8 sps:$4 sm:$0xff]  }
 0x1f8   : > { %v1555_v34 = vsel %vm1525_vm0, %v5051_v6, %v3849_v40  ;;  %v1554_v44 = vsel %vm1525_vm0, %v1264_v27, %v3848_v35  ;;  %1958 = vmatmul.mubr.bf16.gmra.mrb[64].mxu1 %v5260_v60  ;;  %2247 = vmatmul.mubr.bf16.gmra.mrb[68].mxu0 %v5260_v60  ;;  %v2181_v45 = vpop.f32.mrb[35].mxu0 }
 0x1f9   : > { %v1549_v2 = vsel %vm1525_vm0, %v5039_v26, %v3834_v43  ;;  %v1548_v36 = vsel %vm1525_vm0, %v1258_v19, %v3833_v61  ;;  %v5338_v51 = vpack.c.bf16 %v1555_v34, %v1554_v44  ;;  %v5345_v26 = vld [vmem:[#allocation2 + $0xa8] sm:$0xff]  ;;  %2871 = vmatprep.subr.bf16.mxu0 %v3912_v20 }
 0x1fa   : > { %v5336_v57 = vpack.c.bf16 %v1549_v2, %v1548_v36  ;;  %v3842_v52 = vpop.permute.xlu1 %3841  ;;  %3476 = vmatprep.mubr.msk.bf16.mxu1 %vm1525_vm0, %v5345_v26  ;;  %3505 = vmatprep.mubr.msk.bf16.mxu0 %vm1525_vm0, %v5345_v26 }
 0x1fb   : > { %v3844_v49 = vunpack.i.h.bf16 %v3842_v52  ;;  %v3843_v5 = vunpack.i.l.bf16 %v3842_v52  ;;  %2872 = vmatpush1.bf16.msra.mxu0 %v3910_v33 }
 0x1fd   : > { %v1553_v6 = vsel %vm1525_vm0, %v5059_v17, %v3844_v49  ;;  %v1552_v15 = vsel %vm1525_vm0, %v1262_v0, %v3843_v5 }
 0x1fe   : > { %v5354_v58 = vpack.c.bf16 %v1553_v6, %v1552_v15  ;;  %v3852_v23 = vpop.permute.xlu1 %3851 }
 0x1ff   : > { %v3854_v24 = vunpack.i.h.bf16 %v3852_v23  ;;  %v3853_v18 = vunpack.i.l.bf16 %v3852_v23 }
 0x200   : > { %1966 = vmatmul.mubr.bf16.gmra.mrb[68].mxu1 %v5314_v7  ;;  %2255 = vmatmul.mubr.bf16.gmra.mrb[72].mxu0 %v5314_v7 }
 0x201   : > { %v1557_v63 = vsel %vm1525_vm0, %v5067_v37, %v3854_v24  ;;  %v1556_v17 = vsel %vm1525_vm0, %v1266_v42, %v3853_v18  ;;  %3477 = vmatprep.mubr.msk.bf16.mxu1 %vm1525_vm0, %v5364_v41  ;;  %3506 = vmatprep.mubr.msk.bf16.mxu0 %vm1525_vm0, %v5364_v41  ;;  %v1707_v37 = vld [vmem:[#allocation2 + $0xc8] sm:$0xff] }
 0x202   : > { %v5360_v32 = vpack.c.bf16 %v1557_v63, %v1556_v17  ;;  %v2335_v63 = vld [vmem:[#allocation2 + $0x118] sm:$0xff] }
 0x208   : > { %1974 = vmatmul.mubr.bf16.gmra.mrb[72].mxu1 %v5285_v46  ;;  %2263 = vmatmul.mubr.bf16.gmra.mrb[76].mxu0 %v5285_v46 }
 0x209   : > { %3478 = vmatprep.mubr.msk.bf16.mxu1 %vm1525_vm0, %v1707_v37  ;;  %3507 = vmatprep.mubr.msk.bf16.mxu0 %vm1525_vm0, %v1707_v37 }
 0x210   : > { %1982 = vmatmul.mubr.bf16.gmra.mrb[76].mxu1 %v5336_v57  ;;  %2271 = vmatmul.mubr.bf16.gmra.mrb[80].mxu0 %v5336_v57 }
 0x211   : > { %3479 = vmatprep.mubr.msk.bf16.mxu1 %vm1525_vm0, %v1709_v47  ;;  %3508 = vmatprep.mubr.msk.bf16.mxu0 %vm1525_vm0, %v1709_v47 }
 0x218   : > { %1990 = vmatmul.mubr.bf16.gmra.mrb[80].mxu1 %v5316_v30  ;;  %2279 = vmatmul.mubr.bf16.gmra.mrb[84].mxu0 %v5316_v30 }
 0x219   : > { %3480 = vmatprep.mubr.msk.bf16.mxu1 %vm1525_vm0, %v1711_v28  ;;  %3509 = vmatprep.mubr.msk.bf16.mxu0 %vm1525_vm0, %v1711_v28 }
 0x220   : > { %1998 = vmatmul.mubr.bf16.gmra.mrb[84].mxu1 %v5354_v58  ;;  %2287 = vmatmul.mubr.bf16.gmra.mrb[88].mxu0 %v5354_v58 }
 0x221   : > { %3481 = vmatprep.mubr.msk.bf16.mxu1 %vm1525_vm0, %v5394_v1  ;;  %3510 = vmatprep.mubr.msk.bf16.mxu0 %vm1525_vm0, %v5394_v1 }
 0x228   : > { %2006 = vmatmul.mubr.bf16.gmra.mrb[88].mxu1 %v5338_v51  ;;  %2295 = vmatmul.mubr.bf16.gmra.mrb[92].mxu0 %v5338_v51 }
 0x229   : > { %3482 = vmatprep.mubr.msk.bf16.mxu1 %vm1525_vm0, %v5402_v56  ;;  %2901 = vmatprep.mubr.bf16.mxu0 %v5104_v12 }
 0x230   : > { %2014 = vmatmul.mubr.bf16.gmra.mrb[92].mxu1 %v5360_v32 }
 0x231   : > { %3547 = vmatprep.mubr.msk.bf16.mxu1 %vm1525_vm0, %v5094_v4  ;;  %v3913_v4 = vld [vmem:[%s5899_s5 + $0x20] ss:$8 sps:$4 sm:$0xff]  }
 0x238   : > { %2514 = vmatmul.mubr.bf16.vlgmr.msra.gmra.mrb[96].mxu1 %v5112_v55  ;;  %v3915_v55 = vld [vmem:[%s5899_s5 + $0x24] ss:$8 sps:$4 sm:$0xff]  }
 0x239   : > { %3548 = vmatprep.mubr.msk.bf16.mxu1 %vm1525_vm0, %v5119_v14  ;;  %2873 = vmatprep.subr.bf16.mxu0 %v3915_v55  ;;  %v3916_v14 = vld [vmem:[%s5899_s5 + $0x30] ss:$8 sps:$4 sm:$0xff]  }
 0x23a   : > { %2874 = vmatpush1.bf16.msra.mxu0 %v3913_v4 }
 0x240   : > { %2522 = vmatmul.mubr.bf16.gmra.mrb[100].mxu1 %v5134_v31  ;;  %v3918_v31 = vld [vmem:[%s5899_s5 + $0x34] ss:$8 sps:$4 sm:$0xff]  }
 0x241   : > { %3549 = vmatprep.mubr.msk.bf16.mxu1 %vm1525_vm0, %v5142_v38  ;;  %2875 = vmatprep.subr.bf16.mxu0 %v3918_v31 }
 0x242   : > { %2876 = vmatpush1.bf16.msra.mxu0 %v3916_v14 }
 0x248   : > { %2530 = vmatmul.mubr.bf16.gmra.mrb[104].mxu1 %v5157_v8 }
 0x249   : > { %3550 = vmatprep.mubr.msk.bf16.mxu1 %vm1525_vm0, %v5165_v48 }
 0x250   : > { %2538 = vmatmul.mubr.bf16.gmra.mrb[108].mxu1 %v5180_v50 }
 0x251   : > { %3551 = vmatprep.mubr.msk.bf16.mxu1 %vm1525_vm0, %v5188_v13 }
 0x258   : > { %2546 = vmatmul.mubr.bf16.gmra.mrb[112].mxu1 %v5204_v53 }
 0x259   : > { %3552 = vmatprep.mubr.msk.bf16.mxu1 %vm1525_vm0, %v5212_v22 }
 0x260   : > { %2554 = vmatmul.mubr.bf16.gmra.mrb[116].mxu1 %v5234_v16 }
 0x261   : > { %3553 = vmatprep.mubr.msk.bf16.mxu1 %vm1525_vm0, %v5242_v62 }
 0x268   : > { %2562 = vmatmul.mubr.bf16.gmra.mrb[120].mxu1 %v5283_v29 }
 0x269   : > { %3554 = vmatprep.mubr.msk.bf16.mxu1 %vm1525_vm0, %v5303_v54 }
 0x270   : > { %2570 = vmatmul.mubr.bf16.gmra.mrb[124].mxu1 %v5260_v60 }
 0x271   : > { %3555 = vmatprep.mubr.msk.bf16.mxu1 %vm1525_vm0, %v5345_v26 }
 0x278   : > { %2578 = vmatmul.mubr.bf16.gmra.mrb[128].mxu1 %v5314_v7 }
 0x279   : > { %3556 = vmatprep.mubr.msk.bf16.mxu1 %vm1525_vm0, %v5364_v41 }
 0x280   : > { %2586 = vmatmul.mubr.bf16.gmra.mrb[132].mxu1 %v5285_v46 }
 0x281   : > { %3557 = vmatprep.mubr.msk.bf16.mxu1 %vm1525_vm0, %v1707_v37 }
 0x286   : > { %v1895_v38 = vpop.f32.mrb[32].mxu1  ;;  %v2184_v8 = vpop.f32.mrb[36].mxu0 }
 0x287   : > { %v5459_v48 = vadd.f32 %v5370_v3, %v1895_v38  ;;  %v1897_v50 = vpop.f32.mrb[33].mxu1  ;;  %v2186_v13 = vpop.f32.mrb[37].mxu0 }
 0x288   : > { %2594 = vmatmul.mubr.bf16.gmra.mrb[136].mxu1 %v5336_v57  ;;  %v1898_v53 = vpop.f32.mrb[34].mxu1  ;;  %v2187_v22 = vpop.f32.mrb[38].mxu0 }
 0x289   : > { %3558 = vmatprep.mubr.msk.bf16.mxu1 %vm1525_vm0, %v1709_v47  ;;  %v5463_v16 = vadd.f32 %v5374_v59, %v1898_v53  ;;  %v1900_v62 = vpop.f32.mrb[35].mxu1  ;;  %v2189_v60 = vpop.f32.mrb[39].mxu0 }
 0x28f   : > { %v1903_v29 = vpop.f32.mrb[36].mxu1  ;;  %v2192_v46 = vpop.f32.mrb[40].mxu0 }
 0x290   : > { %2602 = vmatmul.mubr.bf16.gmra.mrb[140].mxu1 %v5316_v30  ;;  %v5467_v54 = vadd.f32 %v2184_v8, %v1903_v29  ;;  %v1905_v7 = vpop.f32.mrb[37].mxu1  ;;  %v2194_v43 = vpop.f32.mrb[41].mxu0 }
 0x291   : > { %3559 = vmatprep.mubr.msk.bf16.mxu1 %vm1525_vm0, %v1711_v28  ;;  %v1906_v61 = vpop.f32.mrb[38].mxu1  ;;  %v2195_v40 = vpop.f32.mrb[42].mxu0 }
 0x292   : > { %v5469_v35 = vadd.f32 %v2187_v22, %v1906_v61  ;;  %v1908_v19 = vpop.f32.mrb[39].mxu1  ;;  %v2197_v27 = vpop.f32.mrb[43].mxu0 }
 0x297   : > { %v1911_v21 = vpop.f32.mrb[40].mxu1  ;;  %v2200_v9 = vpop.f32.mrb[44].mxu0 }
 0x298   : > { %2610 = vmatmul.mubr.bf16.gmra.mrb[144].mxu1 %v5354_v58  ;;  %v5474_v30 = vadd.f32 %v2192_v46, %v1911_v21  ;;  %v1913_v2 = vpop.f32.mrb[41].mxu1  ;;  %v2202_v36 = vpop.f32.mrb[45].mxu0 }
 0x299   : > { %3560 = vmatprep.mubr.msk.bf16.mxu1 %vm1525_vm0, %v5394_v1  ;;  %v1914_v34 = vpop.f32.mrb[42].mxu1  ;;  %v2203_v44 = vpop.f32.mrb[46].mxu0 }
 0x29a   : > { %v5476_v57 = vadd.f32 %v2195_v40, %v1914_v34  ;;  %v1916_v52 = vpop.f32.mrb[43].mxu1  ;;  %v2205_v49 = vpop.f32.mrb[47].mxu0 }
 0x29f   : > { %v1919_v5 = vpop.f32.mrb[44].mxu1  ;;  %v2208_v0 = vpop.f32.mrb[48].mxu0 }
 0x2a0   : > { %2618 = vmatmul.mubr.bf16.gmra.mrb[148].mxu1 %v5338_v51  ;;  %v5481_v26 = vadd.f32 %v2200_v9, %v1919_v5  ;;  %v1921_v6 = vpop.f32.mrb[45].mxu1  ;;  %v2210_v15 = vpop.f32.mrb[49].mxu0 }
 0x2a1   : > { %3561 = vmatprep.mubr.msk.bf16.mxu1 %vm1525_vm0, %v5402_v56  ;;  %v1922_v58 = vpop.f32.mrb[46].mxu1  ;;  %v2211_v23 = vpop.f32.mrb[50].mxu0 }
 0x2a2   : > { %v5483_v24 = vadd.f32 %v2203_v44, %v1922_v58  ;;  %v1924_v18 = vpop.f32.mrb[47].mxu1  ;;  %v2213_v42 = vpop.f32.mrb[51].mxu0 }
 0x2a7   : > { %v1927_v17 = vpop.f32.mrb[48].mxu1  ;;  %v2216_v51 = vpop.f32.mrb[52].mxu0 }
 0x2a8   : > { %2626 = vmatmul.mubr.bf16.gmra.mrb[152].mxu1 %v5360_v32  ;;  %v5486_v41 = vadd.f32 %v2208_v0, %v1927_v17  ;;  %v1929_v3 = vpop.f32.mrb[49].mxu1  ;;  %v2218_v25 = vpop.f32.mrb[53].mxu0 }
 0x2a9   : > { %3562 = vmatprep.mubr.msk.bf16.mxu1 %vm1525_vm0, %v2335_v63  ;;  %v1930_v37 = vpop.f32.mrb[50].mxu1  ;;  %v2219_v59 = vpop.f32.mrb[54].mxu0 }
 0x2aa   : > { %v5489_v45 = vadd.f32 %v2211_v23, %v1930_v37  ;;  %v1932_v47 = vpop.f32.mrb[51].mxu1  ;;  %v2221_v10 = vpop.f32.mrb[55].mxu0 }
 0x2b0   : > { %2634 = vmatmul.mubr.bf16.gmra.mrb[156].mxu1 %v5104_v12 }
 0x2b1   : > { %v1935_v39 = vpop.f32.mrb[52].mxu1  ;;  %v2224_v28 = vpop.f32.mrb[56].mxu0 }
 0x2b2   : > { %v5492_v1 = vadd.f32 %v2216_v51, %v1935_v39  ;;  %v1937_v32 = vpop.f32.mrb[53].mxu1  ;;  %v2226_v56 = vpop.f32.mrb[57].mxu0 }
 0x2b3   : > { %v1938_v33 = vpop.f32.mrb[54].mxu1  ;;  %v2227_v20 = vpop.f32.mrb[58].mxu0 }
 0x2b4   : > { %v5494_v4 = vadd.f32 %v2219_v59, %v1938_v33  ;;  %v1940_v55 = vpop.f32.mrb[55].mxu1  ;;  %v2229_v14 = vpop.f32.mrb[59].mxu0 }
 0x2ba   : > { %v1943_v31 = vpop.f32.mrb[56].mxu1  ;;  %v2232_v38 = vpop.f32.mrb[60].mxu0 }
 0x2bb   : > { %v5496_v8 = vadd.f32 %v2224_v28, %v1943_v31  ;;  %v1945_v50 = vpop.f32.mrb[57].mxu1  ;;  %v2234_v13 = vpop.f32.mrb[61].mxu0 }
 0x2bc   : > { %v1946_v53 = vpop.f32.mrb[58].mxu1  ;;  %v2235_v22 = vpop.f32.mrb[62].mxu0 }
 0x2bd   : > { %v5498_v62 = vadd.f32 %v2227_v20, %v1946_v53  ;;  %v1948_v60 = vpop.f32.mrb[59].mxu1  ;;  %v2237_v29 = vpop.f32.mrb[63].mxu0 }
 0x2c3   : > { %v1951_v46 = vpop.f32.mrb[60].mxu1  ;;  %v2240_v7 = vpop.f32.mrb[64].mxu0 }
 0x2c4   : > { %v5500_v43 = vadd.f32 %v2232_v38, %v1951_v46  ;;  %v1953_v61 = vpop.f32.mrb[61].mxu1  ;;  %v2242_v40 = vpop.f32.mrb[65].mxu0 }
 0x2c5   : > { %v1954_v19 = vpop.f32.mrb[62].mxu1  ;;  %v2243_v27 = vpop.f32.mrb[66].mxu0 }
 0x2c6   : > { %v5502_v21 = vadd.f32 %v2235_v22, %v1954_v19  ;;  %v1956_v9 = vpop.f32.mrb[63].mxu1  ;;  %v2245_v2 = vpop.f32.mrb[67].mxu0 }
 0x2cb   : > { %v1959_v36 = vpop.f32.mrb[64].mxu1  ;;  %v2248_v34 = vpop.f32.mrb[68].mxu0 }
 0x2cc   : > { %v5504_v44 = vadd.f32 %v2240_v7, %v1959_v36  ;;  %v1961_v52 = vpop.f32.mrb[65].mxu1  ;;  %v2250_v49 = vpop.f32.mrb[69].mxu0 }
 0x2cd   : > { %v1962_v5 = vpop.f32.mrb[66].mxu1  ;;  %v2251_v0 = vpop.f32.mrb[70].mxu0 }
 0x2ce   : > { %v5506_v6 = vadd.f32 %v2243_v27, %v1962_v5  ;;  %v1964_v15 = vpop.f32.mrb[67].mxu1  ;;  %v2253_v58 = vpop.f32.mrb[71].mxu0 }
 0x2d3   : > { %v1967_v23 = vpop.f32.mrb[68].mxu1  ;;  %v2256_v18 = vpop.f32.mrb[72].mxu0 }
 0x2d4   : > { %v5508_v42 = vadd.f32 %v2248_v34, %v1967_v23  ;;  %v1969_v63 = vpop.f32.mrb[69].mxu1  ;;  %v2258_v17 = vpop.f32.mrb[73].mxu0 }
 0x2d5   : > { %v1970_v51 = vpop.f32.mrb[70].mxu1  ;;  %v2259_v3 = vpop.f32.mrb[74].mxu0 }
 0x2d6   : > { %v5510_v25 = vadd.f32 %v2251_v0, %v1970_v51  ;;  %v1972_v37 = vpop.f32.mrb[71].mxu1  ;;  %v2261_v59 = vpop.f32.mrb[75].mxu0 }
 0x2db   : > { %v1975_v47 = vpop.f32.mrb[72].mxu1  ;;  %v2264_v10 = vpop.f32.mrb[76].mxu0 }
 0x2dc   : > { %v5512_v39 = vadd.f32 %v2256_v18, %v1975_v47  ;;  %v1977_v28 = vpop.f32.mrb[73].mxu1  ;;  %v2266_v32 = vpop.f32.mrb[77].mxu0 }
 0x2dd   : > { %v1978_v56 = vpop.f32.mrb[74].mxu1  ;;  %v2267_v33 = vpop.f32.mrb[78].mxu0 }
 0x2de   : > { %v5514_v20 = vadd.f32 %v2259_v3, %v1978_v56  ;;  %v1980_v55 = vpop.f32.mrb[75].mxu1  ;;  %v2269_v14 = vpop.f32.mrb[79].mxu0 }
 0x2e3   : > { %v1983_v31 = vpop.f32.mrb[76].mxu1  ;;  %v2272_v38 = vpop.f32.mrb[80].mxu0 }
 0x2e4   : > { %v5516_v50 = vadd.f32 %v2264_v10, %v1983_v31  ;;  %v1985_v13 = vpop.f32.mrb[77].mxu1  ;;  %v2274_v53 = vpop.f32.mrb[81].mxu0 }
 0x2e5   : > { %v1986_v22 = vpop.f32.mrb[78].mxu1  ;;  %v2275_v60 = vpop.f32.mrb[82].mxu0 }
 0x2e6   : > { %v5518_v29 = vadd.f32 %v2267_v33, %v1986_v22  ;;  %v1988_v46 = vpop.f32.mrb[79].mxu1  ;;  %v2277_v7 = vpop.f32.mrb[83].mxu0 }
 0x2e7   : > { %v5539_v7 = vld [vmem:[%s5898_s4] ss:$0 sm:$0xff] }
 0x2eb   : > { %v1991_v61 = vpop.f32.mrb[80].mxu1  ;;  %v2280_v40 = vpop.f32.mrb[84].mxu0 }
 0x2ec   : > { %v5520_v19 = vadd.f32 %v2272_v38, %v1991_v61  ;;  %v1993_v27 = vpop.f32.mrb[81].mxu1  ;;  %v2282_v9 = vpop.f32.mrb[85].mxu0 }
 0x2ed   : > { %v1994_v2 = vpop.f32.mrb[82].mxu1  ;;  %v2283_v36 = vpop.f32.mrb[86].mxu0 }
 0x2ee   : > { %v5522_v34 = vadd.f32 %v2275_v60, %v1994_v2  ;;  %v1996_v52 = vpop.f32.mrb[83].mxu1  ;;  %v2285_v49 = vpop.f32.mrb[87].mxu0 }
 0x2f3   : > { %v1999_v5 = vpop.f32.mrb[84].mxu1  ;;  %v2288_v0 = vpop.f32.mrb[88].mxu0 }
 0x2f4   : > { %v5524_v15 = vadd.f32 %v2280_v40, %v1999_v5  ;;  %v2001_v58 = vpop.f32.mrb[85].mxu1  ;;  %v2290_v23 = vpop.f32.mrb[89].mxu0 }
 0x2f5   : > { %v2002_v18 = vpop.f32.mrb[86].mxu1  ;;  %v2291_v63 = vpop.f32.mrb[90].mxu0 }
 0x2f6   : > { %v5526_v17 = vadd.f32 %v2283_v36, %v2002_v18  ;;  %v2004_v51 = vpop.f32.mrb[87].mxu1  ;;  %v2293_v3 = vpop.f32.mrb[91].mxu0 }
 0x2fb   : > { %v2007_v37 = vpop.f32.mrb[88].mxu1  ;;  %v2296_v59 = vpop.f32.mrb[92].mxu0 }
 0x2fc   : > { %v5528_v47 = vadd.f32 %v2288_v0, %v2007_v37  ;;  %v2009_v10 = vpop.f32.mrb[89].mxu1  ;;  %v2298_v28 = vpop.f32.mrb[93].mxu0 }
 0x2fd   : > { %v2010_v32 = vpop.f32.mrb[90].mxu1  ;;  %v2299_v56 = vpop.f32.mrb[94].mxu0 }
 0x2fe   : > { %v5530_v33 = vadd.f32 %v2291_v63, %v2010_v32  ;;  %v2012_v55 = vpop.f32.mrb[91].mxu1  ;;  %v2301_v14 = vpop.f32.mrb[95].mxu0 }
 0x303   : > { %v2015_v31 = vpop.f32.mrb[92].mxu1 }
 0x304   : > { %v5532_v38 = vadd.f32 %v2296_v59, %v2015_v31  ;;  %v2017_v13 = vpop.f32.mrb[93].mxu1 }
 0x305   : > { %v2018_v53 = vpop.f32.mrb[94].mxu1 }
 0x306   : > { %v5534_v22 = vadd.f32 %v2299_v56, %v2018_v53  ;;  %v2020_v60 = vpop.f32.mrb[95].mxu1 }
 0x30b   : > { %v2515_v46 = vpop.f32.mrb[96].mxu1 }
 0x30c   : > { %v2642_v61 = vadd.f32 %v2515_v46, %v5459_v48  ;;  %v2517_v40 = vpop.f32.mrb[97].mxu1 }
 0x30d   : > { %v2518_v27 = vpop.f32.mrb[98].mxu1 }
 0x30e   : > { %v2681_v9 = vadd.f32 %v5539_v7, %v2642_v61  ;;  %v2643_v2 = vadd.f32 %v2518_v27, %v5463_v16  ;;  %v2520_v36 = vpop.f32.mrb[99].mxu1 }
 0x310   : > { %v2682_v52 = vadd.f32 %v5539_v7, %v2643_v2  ;;  %v2713_v49 = vmax.f32 %v2681_v9, 0.0  ;;  %v5561_v2 = vld [vmem:[#allocation2] sm:$0xff] }
 0x312   : > { %v2714_v5 = vmax.f32 %v2682_v52, 0.0 }
 0x313   : > { %v2523_v0 = vpop.f32.mrb[100].mxu1 }
 0x314   : > { %v2745_v58 = vpack.c.bf16 %v2714_v5, %v2713_v49  ;;  %v2644_v23 = vadd.f32 %v2523_v0, %v5467_v54  ;;  %v2525_v18 = vpop.f32.mrb[101].mxu1 }
 0x315   : > { %v2526_v63 = vpop.f32.mrb[102].mxu1 }
 0x316   : > { %v2683_v51 = vadd.f32 %v5539_v7, %v2644_v23  ;;  %v2645_v48 = vadd.f32 %v2526_v63, %v5469_v35  ;;  %v2528_v3 = vpop.f32.mrb[103].mxu1  ;;  %3572 = vmatmul.mubr.msk.bf16.vlgmr.msra.gmra.mrb[96].mxu0 %vm1525_vm0, %v2745_v58 }
 0x317   : > { %2911 = vmatprep.mubr.bf16.mxu0 %v5104_v12 }
 0x318   : > { %v2684_v16 = vadd.f32 %v5539_v7, %v2645_v48  ;;  %v2715_v37 = vmax.f32 %v2683_v51, 0.0 }
 0x31a   : > { %v2716_v59 = vmax.f32 %v2684_v16, 0.0 }
 0x31b   : > { %v2531_v10 = vpop.f32.mrb[104].mxu1 }
 0x31c   : > { %v2746_v28 = vpack.c.bf16 %v2716_v59, %v2715_v37  ;;  %v2646_v32 = vadd.f32 %v2531_v10, %v5474_v30  ;;  %v2533_v54 = vpop.f32.mrb[105].mxu1 }
 0x31d   : > { %v2534_v56 = vpop.f32.mrb[106].mxu1 }
 0x31e   : > { %v2685_v55 = vadd.f32 %v5539_v7, %v2646_v32  ;;  %v2647_v14 = vadd.f32 %v2534_v56, %v5476_v57  ;;  %v2536_v35 = vpop.f32.mrb[107].mxu1  ;;  %3573 = vmatmul.mubr.msk.bf16.gmra.mrb[100].mxu0 %vm1525_vm0, %v2746_v28 }
 0x31f   : > { %2921 = vmatprep.mubr.bf16.mxu0 %v5104_v12 }
 0x320   : > { %v2686_v31 = vadd.f32 %v5539_v7, %v2647_v14  ;;  %v2717_v13 = vmax.f32 %v2685_v55, 0.0 }
 0x322   : > { %v2718_v53 = vmax.f32 %v2686_v31, 0.0 }
 0x323   : > { %v2539_v60 = vpop.f32.mrb[108].mxu1 }
 0x324   : > { %v2747_v46 = vpack.c.bf16 %v2718_v53, %v2717_v13  ;;  %v2648_v61 = vadd.f32 %v2539_v60, %v5481_v26  ;;  %v2541_v30 = vpop.f32.mrb[109].mxu1 }
 0x325   : > { %v2542_v40 = vpop.f32.mrb[110].mxu1 }
 0x326   : > { %v2687_v27 = vadd.f32 %v5539_v7, %v2648_v61  ;;  %v2649_v9 = vadd.f32 %v2542_v40, %v5483_v24  ;;  %v2544_v57 = vpop.f32.mrb[111].mxu1  ;;  %3574 = vmatmul.mubr.msk.bf16.gmra.mrb[104].mxu0 %vm1525_vm0, %v2747_v46 }
 0x327   : > { %2931 = vmatprep.mubr.bf16.mxu0 %v5561_v2 }
 0x328   : > { %v2688_v12 = vadd.f32 %v5539_v7, %v2649_v9  ;;  %v2719_v36 = vmax.f32 %v2687_v27, 0.0 }
 0x32a   : > { %v2720_v52 = vmax.f32 %v2688_v12, 0.0 }
 0x32b   : > { %v2547_v49 = vpop.f32.mrb[112].mxu1 }
 0x32c   : > { %v2748_v5 = vpack.c.bf16 %v2720_v52, %v2719_v36  ;;  %v2650_v26 = vadd.f32 %v2547_v49, %v5486_v41  ;;  %v2549_v0 = vpop.f32.mrb[113].mxu1 }
 0x32d   : > { %v2550_v58 = vpop.f32.mrb[114].mxu1 }
 0x32e   : > { %v2689_v23 = vadd.f32 %v5539_v7, %v2650_v26  ;;  %v2651_v24 = vadd.f32 %v2550_v58, %v5489_v45  ;;  %v2552_v18 = vpop.f32.mrb[115].mxu1  ;;  %3575 = vmatmul.mubr.msk.bf16.gmra.mrb[108].mxu0 %vm1525_vm0, %v2748_v5 }
 0x32f   : > { %2941 = vmatprep.mubr.bf16.mxu0 %v5561_v2 }
 0x330   : > { %v2690_v63 = vadd.f32 %v5539_v7, %v2651_v24  ;;  %v2721_v51 = vmax.f32 %v2689_v23, 0.0 }
 0x332   : > { %v2722_v48 = vmax.f32 %v2690_v63, 0.0 }
 0x333   : > { %v2555_v3 = vpop.f32.mrb[116].mxu1 }
 0x334   : > { %v2749_v16 = vpack.c.bf16 %v2722_v48, %v2721_v51  ;;  %v2652_v37 = vadd.f32 %v2555_v3, %v5492_v1  ;;  %v2557_v41 = vpop.f32.mrb[117].mxu1 }
 0x335   : > { %v2558_v59 = vpop.f32.mrb[118].mxu1 }
 0x336   : > { %v2691_v10 = vadd.f32 %v5539_v7, %v2652_v37  ;;  %v2653_v28 = vadd.f32 %v2558_v59, %v5494_v4  ;;  %v2560_v45 = vpop.f32.mrb[119].mxu1  ;;  %3576 = vmatmul.mubr.msk.bf16.gmra.mrb[112].mxu0 %vm1525_vm0, %v2749_v16 }
 0x337   : > { %2951 = vmatprep.mubr.bf16.mxu0 %v5561_v2 }
 0x338   : > { %v2692_v32 = vadd.f32 %v5539_v7, %v2653_v28  ;;  %v2723_v54 = vmax.f32 %v2691_v10, 0.0 }
 0x33a   : > { %v2724_v56 = vmax.f32 %v2692_v32, 0.0 }
 0x33b   : > { %v2563_v55 = vpop.f32.mrb[120].mxu1 }
 0x33c   : > { %v2750_v14 = vpack.c.bf16 %v2724_v56, %v2723_v54  ;;  %v2654_v35 = vadd.f32 %v2563_v55, %v5496_v8  ;;  %v2565_v1 = vpop.f32.mrb[121].mxu1 }
 0x33d   : > { %v2566_v31 = vpop.f32.mrb[122].mxu1 }
 0x33e   : > { %v2693_v13 = vadd.f32 %v5539_v7, %v2654_v35  ;;  %v2655_v53 = vadd.f32 %v2566_v31, %v5498_v62  ;;  %v2568_v4 = vpop.f32.mrb[123].mxu1  ;;  %3577 = vmatmul.mubr.msk.bf16.gmra.mrb[116].mxu0 %vm1525_vm0, %v2750_v14 }
 0x33f   : > { %2961 = vmatprep.mubr.bf16.mxu0 %v5561_v2 }
 0x340   : > { %v2694_v60 = vadd.f32 %v5539_v7, %v2655_v53  ;;  %v2725_v46 = vmax.f32 %v2693_v13, 0.0 }
 0x342   : > { %v2726_v61 = vmax.f32 %v2694_v60, 0.0 }
 0x343   : > { %v2571_v30 = vpop.f32.mrb[124].mxu1 }
 0x344   : > { %v2751_v40 = vpack.c.bf16 %v2726_v61, %v2725_v46  ;;  %v2656_v27 = vadd.f32 %v2571_v30, %v5500_v43  ;;  %v2573_v8 = vpop.f32.mrb[125].mxu1 }
 0x345   : > { %v2574_v9 = vpop.f32.mrb[126].mxu1 }
 0x346   : > { %v2695_v57 = vadd.f32 %v5539_v7, %v2656_v27  ;;  %v2657_v12 = vadd.f32 %v2574_v9, %v5502_v21  ;;  %v2576_v62 = vpop.f32.mrb[127].mxu1  ;;  %3578 = vmatmul.mubr.msk.bf16.gmra.mrb[120].mxu0 %vm1525_vm0, %v2751_v40 }
 0x347   : > { %2971 = vmatprep.mubr.bf16.mxu0 %v5561_v2 }
 0x348   : > { %v2696_v36 = vadd.f32 %v5539_v7, %v2657_v12  ;;  %v2727_v52 = vmax.f32 %v2695_v57, 0.0 }
 0x34a   : > { %v2728_v49 = vmax.f32 %v2696_v36, 0.0 }
 0x34b   : > { %v2579_v5 = vpop.f32.mrb[128].mxu1 }
 0x34c   : > { %v2752_v26 = vpack.c.bf16 %v2728_v49, %v2727_v52  ;;  %v2658_v0 = vadd.f32 %v2579_v5, %v5504_v44  ;;  %v2581_v43 = vpop.f32.mrb[129].mxu1 }
 0x34d   : > { %v2582_v58 = vpop.f32.mrb[130].mxu1 }
 0x34e   : > { %v2697_v23 = vadd.f32 %v5539_v7, %v2658_v0  ;;  %v2659_v24 = vadd.f32 %v2582_v58, %v5506_v6  ;;  %v2584_v21 = vpop.f32.mrb[131].mxu1  ;;  %3579 = vmatmul.mubr.msk.bf16.gmra.mrb[124].mxu0 %vm1525_vm0, %v2752_v26 }
 0x34f   : > { %2981 = vmatprep.mubr.bf16.mxu0 %v5561_v2 }
 0x350   : > { %v2698_v18 = vadd.f32 %v5539_v7, %v2659_v24  ;;  %v2729_v63 = vmax.f32 %v2697_v23, 0.0 }
 0x352   : > { %v2730_v51 = vmax.f32 %v2698_v18, 0.0 }
 0x353   : > { %v2587_v48 = vpop.f32.mrb[132].mxu1 }
 0x354   : > { %v2753_v3 = vpack.c.bf16 %v2730_v51, %v2729_v63  ;;  %v2660_v16 = vadd.f32 %v2587_v48, %v5508_v42  ;;  %v2589_v44 = vpop.f32.mrb[133].mxu1 }
 0x355   : > { %v2590_v37 = vpop.f32.mrb[134].mxu1 }
 0x356   : > { %v2699_v41 = vadd.f32 %v5539_v7, %v2660_v16  ;;  %v2661_v59 = vadd.f32 %v2590_v37, %v5510_v25  ;;  %v2592_v6 = vpop.f32.mrb[135].mxu1  ;;  %3580 = vmatmul.mubr.msk.bf16.gmra.mrb[128].mxu0 %vm1525_vm0, %v2753_v3 }
 0x357   : > { %2991 = vmatprep.mubr.bf16.mxu0 %v5561_v2 }
 0x358   : > { %v2700_v10 = vadd.f32 %v5539_v7, %v2661_v59  ;;  %v2731_v28 = vmax.f32 %v2699_v41, 0.0 }
 0x35a   : > { %v2732_v45 = vmax.f32 %v2700_v10, 0.0 }
 0x35b   : > { %v2595_v32 = vpop.f32.mrb[136].mxu1 }
 0x35c   : > { %v2754_v54 = vpack.c.bf16 %v2732_v45, %v2731_v28  ;;  %v2662_v56 = vadd.f32 %v2595_v32, %v5512_v39  ;;  %v2597_v42 = vpop.f32.mrb[137].mxu1 }
 0x35d   : > { %v2598_v55 = vpop.f32.mrb[138].mxu1 }
 0x35e   : > { %v2701_v14 = vadd.f32 %v5539_v7, %v2662_v56  ;;  %v2663_v35 = vadd.f32 %v2598_v55, %v5514_v20  ;;  %v2600_v25 = vpop.f32.mrb[139].mxu1  ;;  %3581 = vmatmul.mubr.msk.bf16.gmra.mrb[132].mxu0 %vm1525_vm0, %v2754_v54 }
 0x35f   : > { %3001 = vmatprep.mubr.bf16.mxu0 %v5561_v2 }
 0x360   : > { %v2702_v1 = vadd.f32 %v5539_v7, %v2663_v35  ;;  %v2733_v31 = vmax.f32 %v2701_v14, 0.0 }
 0x362   : > { %v2734_v13 = vmax.f32 %v2702_v1, 0.0  ;;  %v2777_v1 = vsub.s32 1, %v4391_v11 }
 0x363   : > { %v2603_v53 = vpop.f32.mrb[140].mxu1 }
 0x364   : > { %v2755_v4 = vpack.c.bf16 %v2734_v13, %v2733_v31  ;;  %v2664_v60 = vadd.f32 %v2603_v53, %v5516_v50  ;;  %v2605_v39 = vpop.f32.mrb[141].mxu1  ;;  %v3062_v13 = vld [vmem:[%s4177_s15] sm:$0xff] }
 0x365   : > { %v2606_v46 = vpop.f32.mrb[142].mxu1 }
 0x366   : > { %v2703_v61 = vadd.f32 %v5539_v7, %v2664_v60  ;;  %v2665_v30 = vadd.f32 %v2606_v46, %v5518_v29  ;;  %v2608_v20 = vpop.f32.mrb[143].mxu1  ;;  %3582 = vmatmul.mubr.msk.bf16.gmra.mrb[136].mxu0 %vm1525_vm0, %v2755_v4  ;;  %v3063_v60 = vld [vmem:[%s4177_s15 + $0x8] sm:$0xff] }
 0x367   : > { %3011 = vmatprep.mubr.bf16.mxu0 %v5561_v2 }
 0x368   : > { %v2704_v40 = vadd.f32 %v5539_v7, %v2665_v30  ;;  %v2735_v27 = vmax.f32 %v2703_v61, 0.0  ;;  %v3064_v61 = vld [vmem:[%s4177_s15 + $0x10] sm:$0xff] }
 0x36a   : > { %v2736_v8 = vmax.f32 %v2704_v40, 0.0  ;;  %v3065_v40 = vld [vmem:[%s4177_s15 + $0x18] sm:$0xff] }
 0x36b   : > { %v2611_v9 = vpop.f32.mrb[144].mxu1 }
 0x36c   : > { %v2756_v57 = vpack.c.bf16 %v2736_v8, %v2735_v27  ;;  %v2666_v12 = vadd.f32 %v2611_v9, %v5520_v19  ;;  %v2613_v50 = vpop.f32.mrb[145].mxu1 }
 0x36d   : > { %v2614_v62 = vpop.f32.mrb[146].mxu1 }
 0x36e   : > { %v2705_v36 = vadd.f32 %v5539_v7, %v2666_v12  ;;  %v2667_v52 = vadd.f32 %v2614_v62, %v5522_v34  ;;  %v2616_v29 = vpop.f32.mrb[147].mxu1  ;;  %3583 = vmatmul.mubr.msk.bf16.gmra.mrb[140].mxu0 %vm1525_vm0, %v2756_v57 }
 0x36f   : > { %3021 = vmatprep.mubr.bf16.mxu0 %v5561_v2  ;;  %v3066_v29 = vld [vmem:[%s4177_s15 + $0x20] sm:$0xff] }
 0x370   : > { %v2706_v49 = vadd.f32 %v5539_v7, %v2667_v52  ;;  %v2737_v5 = vmax.f32 %v2705_v36, 0.0 }
 0x372   : > { %v2738_v26 = vmax.f32 %v2706_v49, 0.0 }
 0x373   : > { %v2619_v0 = vpop.f32.mrb[148].mxu1 }
 0x374   : > { %v2757_v43 = vpack.c.bf16 %v2738_v26, %v2737_v5  ;;  %v2668_v58 = vadd.f32 %v2619_v0, %v5524_v15  ;;  %v2621_v19 = vpop.f32.mrb[149].mxu1  ;;  %v3067_v26 = vld [vmem:[%s4177_s15 + $0x28] sm:$0xff] }
 0x375   : > { %v2622_v23 = vpop.f32.mrb[150].mxu1 }
 0x376   : > { %v2707_v24 = vadd.f32 %v5539_v7, %v2668_v58  ;;  %v2669_v21 = vadd.f32 %v2622_v23, %v5526_v17  ;;  %v2624_v34 = vpop.f32.mrb[151].mxu1  ;;  %3584 = vmatmul.mubr.msk.bf16.gmra.mrb[144].mxu0 %vm1525_vm0, %v2757_v43  ;;  %v3068_v58 = vld [vmem:[%s4177_s15 + $0x30] sm:$0xff] }
 0x377   : > { %3031 = vmatprep.mubr.bf16.mxu0 %v5561_v2 }
 0x378   : > { %v2708_v18 = vadd.f32 %v5539_v7, %v2669_v21  ;;  %v2739_v63 = vmax.f32 %v2707_v24, 0.0  ;;  %v3069_v21 = vld [vmem:[%s4177_s15 + $0x38] sm:$0xff] }
 0x37a   : > { %v2740_v51 = vmax.f32 %v2708_v18, 0.0 }
 0x37b   : > { %v2627_v48 = vpop.f32.mrb[152].mxu1 }
 0x37c   : > { %v2758_v3 = vpack.c.bf16 %v2740_v51, %v2739_v63  ;;  %v2670_v16 = vadd.f32 %v2627_v48, %v5528_v47  ;;  %v2629_v15 = vpop.f32.mrb[153].mxu1 }
 0x37d   : > { %v2630_v44 = vpop.f32.mrb[154].mxu1 }
 0x37e   : > { %v2709_v37 = vadd.f32 %v5539_v7, %v2670_v16  ;;  %v2671_v41 = vadd.f32 %v2630_v44, %v5530_v33  ;;  %v2632_v17 = vpop.f32.mrb[155].mxu1  ;;  %3585 = vmatmul.mubr.msk.bf16.gmra.mrb[148].mxu0 %vm1525_vm0, %v2758_v3 }
 0x37f   : > { %3041 = vmatprep.mubr.bf16.mxu0 %v5561_v2 }
 0x380   : > { %v2710_v59 = vadd.f32 %v5539_v7, %v2671_v41  ;;  %v2741_v6 = vmax.f32 %v2709_v37, 0.0  ;;  %v3070_v37 = vld [vmem:[%s4177_s15 + $0x40] sm:$0xff] }
 0x382   : > { %v2742_v10 = vmax.f32 %v2710_v59, 0.0  ;;  %v3071_v59 = vld [vmem:[%s4177_s15 + $0x48] sm:$0xff] }
 0x383   : > { %v2635_v28 = vpop.f32.mrb[156].mxu1 }
 0x384   : > { %v2759_v45 = vpack.c.bf16 %v2742_v10, %v2741_v6  ;;  %v2672_v32 = vadd.f32 %v2635_v28, %v5532_v38  ;;  %v2637_v47 = vpop.f32.mrb[157].mxu1  ;;  %v2773_v38 = vsub.s32 0, %v4391_v11  ;;  %v3072_v28 = vld [vmem:[%s4177_s15 + $0x50] sm:$0xff] }
 0x385   : > { %v2638_v54 = vpop.f32.mrb[158].mxu1 }
 0x386   : > { %v2711_v56 = vadd.f32 %v5539_v7, %v2672_v32  ;;  %v2673_v33 = vadd.f32 %v2638_v54, %v5534_v22  ;;  %v2640_v42 = vpop.f32.mrb[159].mxu1  ;;  %3586 = vmatmul.mubr.msk.bf16.gmra.mrb[152].mxu0 %vm1525_vm0, %v2759_v45  ;;  %v2769_v22 = vld [vmem:[%s5900_s6] sm:$0x3]  ;;  %v3073_v54 = vld [vmem:[%s4177_s15 + $0x58] sm:$0xff] }
 0x387   : > { %3051 = vmatprep.mubr.bf16.mxu0 %v5561_v2  ;;  %v5643_v31 = vrot.slane %v2769_v22, %v2773_v38  ;;  %v5645_v2 = vrot.slane %v2769_v22, %v2777_v1  ;;  %v3074_v1 = vld [vmem:[%s4177_s15 + $0x60] sm:$0xff] }
 0x388   : > { %v2712_v55 = vadd.f32 %v5539_v7, %v2673_v33  ;;  %v2743_v14 = vmax.f32 %v2711_v56, 0.0 }
 0x38a   : > { %v2744_v35 = vmax.f32 %v2712_v55, 0.0 }
 0x38c   : > { %v2760_v25 = vpack.c.bf16 %v2744_v35, %v2743_v14 }
 0x38e   : > { %3587 = vmatmul.mubr.msk.bf16.gmra.mrb[156].mxu0 %vm1525_vm0, %v2760_v25 }
 0x3e9   : > { %v2903_v7 = vpop.f32.mrb[96].mxu0 }
 0x3ea   : > { %v2904_v53 = vadd.f32 %v2903_v7, %v5643_v31  ;;  %v2905_v4 = vpop.f32.mrb[97].mxu0 }
 0x3eb   : > { %v2906_v39 = vadd.f32 %v2905_v4, %v5645_v2  ;;  %v2907_v46 = vpop.f32.mrb[98].mxu0 }
 0x3ec   : > { %v3126_v30 = vadd.f32 %v3062_v13, %v2904_v53  ;;  %v2908_v20 = vadd.f32 %v2907_v46, %v5643_v31  ;;  %v2909_v11 = vpop.f32.mrb[99].mxu0  ;;  %v3075_v53 = vld [vmem:[%s4177_s15 + $0x68] sm:$0xff] }
 0x3ed   : > { %v3127_v27 = vadd.f32 %v3063_v60, %v2906_v39  ;;  %v2910_v8 = vadd.f32 %v2909_v11, %v5645_v2  ;;  %v3076_v39 = vld [vmem:[%s4177_s15 + $0x70] sm:$0xff] }
 0x3ee   : > { %v3190_v9 = vmax.f32 %v3126_v30, 0.0  ;;  %v3128_v57 = vadd.f32 %v3064_v61, %v2908_v20  ;;  %v3077_v20 = vld [vmem:[%s4177_s15 + $0x78] sm:$0xff] }
 0x3ef   : > { %v3191_v12 = vmax.f32 %v3127_v27, 0.0  ;;  %v3129_v50 = vadd.f32 %v3065_v40, %v2910_v8 }
 0x3f0   : > { %3254 = vst [vmem:[%s5657_s12] sm:$0xff] %v3190_v9  ;;  %v3192_v62 = vmax.f32 %v3128_v57, 0.0 }
 0x3f1   : > { %3255 = vst [vmem:[%s5657_s12 + $0x8] sm:$0xff] %v3191_v12  ;;  %v3193_v36 = vmax.f32 %v3129_v50, 0.0  ;;  %v2913_v52 = vpop.f32.mrb[100].mxu0 }
 0x3f2   : > { %3256 = vst [vmem:[%s5657_s12 + $0x10] sm:$0xff] %v3192_v62  ;;  %v2914_v49 = vadd.f32 %v2913_v52, %v5643_v31  ;;  %v2915_v5 = vpop.f32.mrb[101].mxu0 }
 0x3f3   : > { %3257 = vst [vmem:[%s5657_s12 + $0x18] sm:$0xff] %v3193_v36  ;;  %v2916_v0 = vadd.f32 %v2915_v5, %v5645_v2  ;;  %v2917_v43 = vpop.f32.mrb[102].mxu0  ;;  %v3078_v36 = vld [vmem:[%s4177_s15 + $0x80] sm:$0xff] }
 0x3f4   : > { %v3130_v19 = vadd.f32 %v3066_v29, %v2914_v49  ;;  %v2918_v23 = vadd.f32 %v2917_v43, %v5643_v31  ;;  %v2919_v24 = vpop.f32.mrb[103].mxu0  ;;  %v3079_v49 = vld [vmem:[%s4177_s15 + $0x88] sm:$0xff] }
 0x3f5   : > { %v3131_v34 = vadd.f32 %v3067_v26, %v2916_v0  ;;  %v2920_v18 = vadd.f32 %v2919_v24, %v5645_v2  ;;  %v3080_v0 = vld [vmem:[%s4177_s15 + $0x90] sm:$0xff] }
 0x3f6   : > { %v3194_v63 = vmax.f32 %v3130_v19, 0.0  ;;  %v3132_v51 = vadd.f32 %v3068_v58, %v2918_v23  ;;  %v3081_v23 = vld [vmem:[%s4177_s15 + $0x98] sm:$0xff] }
 0x3f7   : > { %v3195_v48 = vmax.f32 %v3131_v34, 0.0  ;;  %v3133_v3 = vadd.f32 %v3069_v21, %v2920_v18 }
 0x3f8   : > { %3258 = vst [vmem:[%s5657_s12 + $0x20] sm:$0xff] %v3194_v63  ;;  %v3196_v16 = vmax.f32 %v3132_v51, 0.0 }
 0x3f9   : > { %3259 = vst [vmem:[%s5657_s12 + $0x28] sm:$0xff] %v3195_v48  ;;  %v3197_v15 = vmax.f32 %v3133_v3, 0.0  ;;  %v2923_v44 = vpop.f32.mrb[104].mxu0 }
 0x3fa   : > { %3260 = vst [vmem:[%s5657_s12 + $0x30] sm:$0xff] %v3196_v16  ;;  %v2924_v41 = vadd.f32 %v2923_v44, %v5643_v31  ;;  %v2925_v17 = vpop.f32.mrb[105].mxu0 }
 0x3fb   : > { %3261 = vst [vmem:[%s5657_s12 + $0x38] sm:$0xff] %v3197_v15  ;;  %v2926_v6 = vadd.f32 %v2925_v17, %v5645_v2  ;;  %v2927_v10 = vpop.f32.mrb[106].mxu0  ;;  %v3082_v15 = vld [vmem:[%s4177_s15 + $0xa0] sm:$0xff] }
 0x3fc   : > { %v3134_v45 = vadd.f32 %v3070_v37, %v2924_v41  ;;  %v2928_v32 = vadd.f32 %v2927_v10, %v5643_v31  ;;  %v2929_v47 = vpop.f32.mrb[107].mxu0  ;;  %v3083_v41 = vld [vmem:[%s4177_s15 + $0xa8] sm:$0xff] }
 0x3fd   : > { %v3135_v56 = vadd.f32 %v3071_v59, %v2926_v6  ;;  %v2930_v33 = vadd.f32 %v2929_v47, %v5645_v2  ;;  %v3084_v6 = vld [vmem:[%s4177_s15 + $0xb0] sm:$0xff] }
 0x3fe   : > { %v3198_v42 = vmax.f32 %v3134_v45, 0.0  ;;  %v3136_v55 = vadd.f32 %v3072_v28, %v2928_v32  ;;  %v3085_v32 = vld [vmem:[%s4177_s15 + $0xb8] sm:$0xff] }
 0x3ff   : > { %v3199_v14 = vmax.f32 %v3135_v56, 0.0  ;;  %v3137_v35 = vadd.f32 %v3073_v54, %v2930_v33 }
 0x400   : > { %3262 = vst [vmem:[%s5657_s12 + $0x40] sm:$0xff] %v3198_v42  ;;  %v3200_v25 = vmax.f32 %v3136_v55, 0.0 }
 0x401   : > { %3263 = vst [vmem:[%s5657_s12 + $0x48] sm:$0xff] %v3199_v14  ;;  %v3201_v38 = vmax.f32 %v3137_v35, 0.0  ;;  %v2933_v22 = vpop.f32.mrb[108].mxu0 }
 0x402   : > { %3264 = vst [vmem:[%s5657_s12 + $0x50] sm:$0xff] %v3200_v25  ;;  %v2934_v7 = vadd.f32 %v2933_v22, %v5643_v31  ;;  %v2935_v13 = vpop.f32.mrb[109].mxu0 }
 0x403   : > { %3265 = vst [vmem:[%s5657_s12 + $0x58] sm:$0xff] %v3201_v38  ;;  %v2936_v4 = vadd.f32 %v2935_v13, %v5645_v2  ;;  %v2937_v60 = vpop.f32.mrb[110].mxu0  ;;  %v3086_v38 = vld [vmem:[%s4177_s15 + $0xc0] sm:$0xff] }
 0x404   : > { %v3138_v46 = vadd.f32 %v3074_v1, %v2934_v7  ;;  %v2938_v61 = vadd.f32 %v2937_v60, %v5643_v31  ;;  %v2939_v30 = vpop.f32.mrb[111].mxu0  ;;  %v3087_v7 = vld [vmem:[%s4177_s15 + $0xc8] sm:$0xff] }
 0x405   : > { %v3139_v11 = vadd.f32 %v3075_v53, %v2936_v4  ;;  %v2940_v40 = vadd.f32 %v2939_v30, %v5645_v2  ;;  %v3088_v4 = vld [vmem:[%s4177_s15 + $0xd0] sm:$0xff] }
 0x406   : > { %v3202_v27 = vmax.f32 %v3138_v46, 0.0  ;;  %v3140_v8 = vadd.f32 %v3076_v39, %v2938_v61  ;;  %v3089_v61 = vld [vmem:[%s4177_s15 + $0xd8] sm:$0xff] }
 0x407   : > { %v3203_v9 = vmax.f32 %v3139_v11, 0.0  ;;  %v3141_v57 = vadd.f32 %v3077_v20, %v2940_v40 }
 0x408   : > { %3266 = vst [vmem:[%s5657_s12 + $0x60] sm:$0xff] %v3202_v27  ;;  %v3204_v12 = vmax.f32 %v3140_v8, 0.0 }
 0x409   : > { %3267 = vst [vmem:[%s5657_s12 + $0x68] sm:$0xff] %v3203_v9  ;;  %v3205_v50 = vmax.f32 %v3141_v57, 0.0  ;;  %v2943_v62 = vpop.f32.mrb[112].mxu0 }
 0x40a   : > { %3268 = vst [vmem:[%s5657_s12 + $0x70] sm:$0xff] %v3204_v12  ;;  %v2944_v52 = vadd.f32 %v2943_v62, %v5643_v31  ;;  %v2945_v29 = vpop.f32.mrb[113].mxu0 }
 0x40b   : > { %3269 = vst [vmem:[%s5657_s12 + $0x78] sm:$0xff] %v3205_v50  ;;  %v2946_v5 = vadd.f32 %v2945_v29, %v5645_v2  ;;  %v2947_v26 = vpop.f32.mrb[114].mxu0  ;;  %v3090_v50 = vld [vmem:[%s4177_s15 + $0xe0] sm:$0xff] }
 0x40c   : > { %v3142_v43 = vadd.f32 %v3078_v36, %v2944_v52  ;;  %v2948_v58 = vadd.f32 %v2947_v26, %v5643_v31  ;;  %v2949_v19 = vpop.f32.mrb[115].mxu0  ;;  %v3091_v52 = vld [vmem:[%s4177_s15 + $0xe8] sm:$0xff] }
 0x40d   : > { %v3143_v24 = vadd.f32 %v3079_v49, %v2946_v5  ;;  %v2950_v21 = vadd.f32 %v2949_v19, %v5645_v2  ;;  %v3092_v5 = vld [vmem:[%s4177_s15 + $0xf0] sm:$0xff] }
 0x40e   : > { %v3206_v34 = vmax.f32 %v3142_v43, 0.0  ;;  %v3144_v18 = vadd.f32 %v3080_v0, %v2948_v58  ;;  %v3093_v58 = vld [vmem:[%s4177_s15 + $0xf8] sm:$0xff] }
 0x40f   : > { %v3207_v63 = vmax.f32 %v3143_v24, 0.0  ;;  %v3145_v51 = vadd.f32 %v3081_v23, %v2950_v21 }
 0x410   : > { %3270 = vst [vmem:[%s5657_s12 + $0x80] sm:$0xff] %v3206_v34  ;;  %v3208_v48 = vmax.f32 %v3144_v18, 0.0 }
 0x411   : > { %3271 = vst [vmem:[%s5657_s12 + $0x88] sm:$0xff] %v3207_v63  ;;  %v3209_v3 = vmax.f32 %v3145_v51, 0.0  ;;  %v2953_v16 = vpop.f32.mrb[116].mxu0 }
 0x412   : > { %3272 = vst [vmem:[%s5657_s12 + $0x90] sm:$0xff] %v3208_v48  ;;  %v2954_v44 = vadd.f32 %v2953_v16, %v5643_v31  ;;  %v2955_v37 = vpop.f32.mrb[117].mxu0 }
 0x413   : > { %3273 = vst [vmem:[%s5657_s12 + $0x98] sm:$0xff] %v3209_v3  ;;  %v2956_v17 = vadd.f32 %v2955_v37, %v5645_v2  ;;  %v2957_v59 = vpop.f32.mrb[118].mxu0  ;;  %v3094_v3 = vld [vmem:[%s4177_s15 + $0x100] sm:$0xff] }
 0x414   : > { %v3146_v10 = vadd.f32 %v3082_v15, %v2954_v44  ;;  %v2958_v28 = vadd.f32 %v2957_v59, %v5643_v31  ;;  %v2959_v45 = vpop.f32.mrb[119].mxu0  ;;  %v3095_v44 = vld [vmem:[%s4177_s15 + $0x108] sm:$0xff] }
 0x415   : > { %v3147_v47 = vadd.f32 %v3083_v41, %v2956_v17  ;;  %v2960_v54 = vadd.f32 %v2959_v45, %v5645_v2  ;;  %v3096_v17 = vld [vmem:[%s4177_s15 + $0x110] sm:$0xff] }
 0x416   : > { %v3210_v56 = vmax.f32 %v3146_v10, 0.0  ;;  %v3148_v33 = vadd.f32 %v3084_v6, %v2958_v28  ;;  %v3097_v28 = vld [vmem:[%s4177_s15 + $0x118] sm:$0xff] }
 0x417   : > { %v3211_v42 = vmax.f32 %v3147_v47, 0.0  ;;  %v3149_v55 = vadd.f32 %v3085_v32, %v2960_v54 }
 0x418   : > { %3274 = vst [vmem:[%s5657_s12 + $0xa0] sm:$0xff] %v3210_v56  ;;  %v3212_v14 = vmax.f32 %v3148_v33, 0.0 }
 0x419   : > { %3275 = vst [vmem:[%s5657_s12 + $0xa8] sm:$0xff] %v3211_v42  ;;  %v3213_v35 = vmax.f32 %v3149_v55, 0.0  ;;  %v2963_v25 = vpop.f32.mrb[120].mxu0 }
 0x41a   : > { %3276 = vst [vmem:[%s5657_s12 + $0xb0] sm:$0xff] %v3212_v14  ;;  %v2964_v22 = vadd.f32 %v2963_v25, %v5643_v31  ;;  %v2965_v1 = vpop.f32.mrb[121].mxu0 }
 0x41b   : > { %3277 = vst [vmem:[%s5657_s12 + $0xb8] sm:$0xff] %v3213_v35  ;;  %v2966_v13 = vadd.f32 %v2965_v1, %v5645_v2  ;;  %v2967_v53 = vpop.f32.mrb[122].mxu0  ;;  %v3098_v35 = vld [vmem:[%s4177_s15 + $0x120] sm:$0xff] }
 0x41c   : > { %v3150_v60 = vadd.f32 %v3086_v38, %v2964_v22  ;;  %v2968_v39 = vadd.f32 %v2967_v53, %v5643_v31  ;;  %v2969_v46 = vpop.f32.mrb[123].mxu0  ;;  %v3099_v22 = vld [vmem:[%s4177_s15 + $0x128] sm:$0xff] }
 0x41d   : > { %v3151_v30 = vadd.f32 %v3087_v7, %v2966_v13  ;;  %v2970_v20 = vadd.f32 %v2969_v46, %v5645_v2  ;;  %v3100_v13 = vld [vmem:[%s4177_s15 + $0x130] sm:$0xff] }
 0x41e   : > { %v3214_v11 = vmax.f32 %v3150_v60, 0.0  ;;  %v3152_v40 = vadd.f32 %v3088_v4, %v2968_v39  ;;  %v3101_v39 = vld [vmem:[%s4177_s15 + $0x138] sm:$0xff] }
 0x41f   : > { %v3215_v27 = vmax.f32 %v3151_v30, 0.0  ;;  %v3153_v8 = vadd.f32 %v3089_v61, %v2970_v20 }
 0x420   : > { %3278 = vst [vmem:[%s5657_s12 + $0xc0] sm:$0xff] %v3214_v11  ;;  %v3216_v9 = vmax.f32 %v3152_v40, 0.0 }
 0x421   : > { %3279 = vst [vmem:[%s5657_s12 + $0xc8] sm:$0xff] %v3215_v27  ;;  %v3217_v57 = vmax.f32 %v3153_v8, 0.0  ;;  %v2973_v12 = vpop.f32.mrb[124].mxu0 }
 0x422   : > { %3280 = vst [vmem:[%s5657_s12 + $0xd0] sm:$0xff] %v3216_v9  ;;  %v2974_v62 = vadd.f32 %v2973_v12, %v5643_v31  ;;  %v2975_v36 = vpop.f32.mrb[125].mxu0 }
 0x423   : > { %3281 = vst [vmem:[%s5657_s12 + $0xd8] sm:$0xff] %v3217_v57  ;;  %v2976_v29 = vadd.f32 %v2975_v36, %v5645_v2  ;;  %v2977_v49 = vpop.f32.mrb[126].mxu0  ;;  %v3102_v57 = vld [vmem:[%s4177_s15 + $0x140] sm:$0xff] }
 0x424   : > { %v3154_v26 = vadd.f32 %v3090_v50, %v2974_v62  ;;  %v2978_v0 = vadd.f32 %v2977_v49, %v5643_v31  ;;  %v2979_v43 = vpop.f32.mrb[127].mxu0  ;;  %v3103_v62 = vld [vmem:[%s4177_s15 + $0x148] sm:$0xff] }
 0x425   : > { %v3155_v19 = vadd.f32 %v3091_v52, %v2976_v29  ;;  %v2980_v23 = vadd.f32 %v2979_v43, %v5645_v2  ;;  %v3104_v29 = vld [vmem:[%s4177_s15 + $0x150] sm:$0xff] }
 0x426   : > { %v3218_v24 = vmax.f32 %v3154_v26, 0.0  ;;  %v3156_v21 = vadd.f32 %v3092_v5, %v2978_v0  ;;  %v3105_v0 = vld [vmem:[%s4177_s15 + $0x158] sm:$0xff] }
 0x427   : > { %v3219_v34 = vmax.f32 %v3155_v19, 0.0  ;;  %v3157_v18 = vadd.f32 %v3093_v58, %v2980_v23 }
 0x428   : > { %3282 = vst [vmem:[%s5657_s12 + $0xe0] sm:$0xff] %v3218_v24  ;;  %v3220_v63 = vmax.f32 %v3156_v21, 0.0 }
 0x429   : > { %3283 = vst [vmem:[%s5657_s12 + $0xe8] sm:$0xff] %v3219_v34  ;;  %v3221_v51 = vmax.f32 %v3157_v18, 0.0  ;;  %v2983_v48 = vpop.f32.mrb[128].mxu0 }
 0x42a   : > { %3284 = vst [vmem:[%s5657_s12 + $0xf0] sm:$0xff] %v3220_v63  ;;  %v2984_v16 = vadd.f32 %v2983_v48, %v5643_v31  ;;  %v2985_v15 = vpop.f32.mrb[129].mxu0 }
 0x42b   : > { %3285 = vst [vmem:[%s5657_s12 + $0xf8] sm:$0xff] %v3221_v51  ;;  %v2986_v37 = vadd.f32 %v2985_v15, %v5645_v2  ;;  %v2987_v41 = vpop.f32.mrb[130].mxu0  ;;  %v3106_v51 = vld [vmem:[%s4177_s15 + $0x160] sm:$0xff] }
 0x42c   : > { %v3158_v59 = vadd.f32 %v3094_v3, %v2984_v16  ;;  %v2988_v6 = vadd.f32 %v2987_v41, %v5643_v31  ;;  %v2989_v10 = vpop.f32.mrb[131].mxu0  ;;  %v3107_v16 = vld [vmem:[%s4177_s15 + $0x168] sm:$0xff] }
 0x42d   : > { %v3159_v45 = vadd.f32 %v3095_v44, %v2986_v37  ;;  %v2990_v32 = vadd.f32 %v2989_v10, %v5645_v2  ;;  %v3108_v37 = vld [vmem:[%s4177_s15 + $0x170] sm:$0xff] }
 0x42e   : > { %v3222_v47 = vmax.f32 %v3158_v59, 0.0  ;;  %v3160_v54 = vadd.f32 %v3096_v17, %v2988_v6  ;;  %v3109_v6 = vld [vmem:[%s4177_s15 + $0x178] sm:$0xff] }
 0x42f   : > { %v3223_v56 = vmax.f32 %v3159_v45, 0.0  ;;  %v3161_v33 = vadd.f32 %v3097_v28, %v2990_v32 }
 0x430   : > { %3286 = vst [vmem:[%s5657_s12 + $0x100] sm:$0xff] %v3222_v47  ;;  %v3224_v42 = vmax.f32 %v3160_v54, 0.0 }
 0x431   : > { %3287 = vst [vmem:[%s5657_s12 + $0x108] sm:$0xff] %v3223_v56  ;;  %v3225_v55 = vmax.f32 %v3161_v33, 0.0  ;;  %v2993_v14 = vpop.f32.mrb[132].mxu0 }
 0x432   : > { %3288 = vst [vmem:[%s5657_s12 + $0x110] sm:$0xff] %v3224_v42  ;;  %v2994_v25 = vadd.f32 %v2993_v14, %v5643_v31  ;;  %v2995_v38 = vpop.f32.mrb[133].mxu0 }
 0x433   : > { %3289 = vst [vmem:[%s5657_s12 + $0x118] sm:$0xff] %v3225_v55  ;;  %v2996_v1 = vadd.f32 %v2995_v38, %v5645_v2  ;;  %v2997_v7 = vpop.f32.mrb[134].mxu0  ;;  %v3110_v55 = vld [vmem:[%s4177_s15 + $0x180] sm:$0xff] }
 0x434   : > { %v3162_v53 = vadd.f32 %v3098_v35, %v2994_v25  ;;  %v2998_v4 = vadd.f32 %v2997_v7, %v5643_v31  ;;  %v2999_v60 = vpop.f32.mrb[135].mxu0  ;;  %v3111_v25 = vld [vmem:[%s4177_s15 + $0x188] sm:$0xff] }
 0x435   : > { %v3163_v46 = vadd.f32 %v3099_v22, %v2996_v1  ;;  %v3000_v61 = vadd.f32 %v2999_v60, %v5645_v2  ;;  %v3112_v1 = vld [vmem:[%s4177_s15 + $0x190] sm:$0xff] }
 0x436   : > { %v3226_v30 = vmax.f32 %v3162_v53, 0.0  ;;  %v3164_v20 = vadd.f32 %v3100_v13, %v2998_v4  ;;  %v3113_v4 = vld [vmem:[%s4177_s15 + $0x198] sm:$0xff] }
 0x437   : > { %v3227_v11 = vmax.f32 %v3163_v46, 0.0  ;;  %v3165_v40 = vadd.f32 %v3101_v39, %v3000_v61 }
 0x438   : > { %3290 = vst [vmem:[%s5657_s12 + $0x120] sm:$0xff] %v3226_v30  ;;  %v3228_v27 = vmax.f32 %v3164_v20, 0.0 }
 0x439   : > { %3291 = vst [vmem:[%s5657_s12 + $0x128] sm:$0xff] %v3227_v11  ;;  %v3229_v8 = vmax.f32 %v3165_v40, 0.0  ;;  %v3003_v9 = vpop.f32.mrb[136].mxu0 }
 0x43a   : > { %3292 = vst [vmem:[%s5657_s12 + $0x130] sm:$0xff] %v3228_v27  ;;  %v3004_v12 = vadd.f32 %v3003_v9, %v5643_v31  ;;  %v3005_v50 = vpop.f32.mrb[137].mxu0 }
 0x43b   : > { %3293 = vst [vmem:[%s5657_s12 + $0x138] sm:$0xff] %v3229_v8  ;;  %v3006_v36 = vadd.f32 %v3005_v50, %v5645_v2  ;;  %v3007_v52 = vpop.f32.mrb[138].mxu0  ;;  %v3114_v8 = vld [vmem:[%s4177_s15 + $0x1a0] sm:$0xff] }
 0x43c   : > { %v3166_v49 = vadd.f32 %v3102_v57, %v3004_v12  ;;  %v3008_v5 = vadd.f32 %v3007_v52, %v5643_v31  ;;  %v3009_v26 = vpop.f32.mrb[139].mxu0  ;;  %v3115_v12 = vld [vmem:[%s4177_s15 + $0x1a8] sm:$0xff] }
 0x43d   : > { %v3167_v43 = vadd.f32 %v3103_v62, %v3006_v36  ;;  %v3010_v58 = vadd.f32 %v3009_v26, %v5645_v2  ;;  %v3116_v36 = vld [vmem:[%s4177_s15 + $0x1b0] sm:$0xff] }
 0x43e   : > { %v3230_v19 = vmax.f32 %v3166_v49, 0.0  ;;  %v3168_v23 = vadd.f32 %v3104_v29, %v3008_v5  ;;  %v3117_v5 = vld [vmem:[%s4177_s15 + $0x1b8] sm:$0xff] }
 0x43f   : > { %v3231_v24 = vmax.f32 %v3167_v43, 0.0  ;;  %v3169_v21 = vadd.f32 %v3105_v0, %v3010_v58 }
 0x440   : > { %3294 = vst [vmem:[%s5657_s12 + $0x140] sm:$0xff] %v3230_v19  ;;  %v3232_v34 = vmax.f32 %v3168_v23, 0.0 }
 0x441   : > { %3295 = vst [vmem:[%s5657_s12 + $0x148] sm:$0xff] %v3231_v24  ;;  %v3233_v18 = vmax.f32 %v3169_v21, 0.0  ;;  %v3013_v63 = vpop.f32.mrb[140].mxu0 }
 0x442   : > { %3296 = vst [vmem:[%s5657_s12 + $0x150] sm:$0xff] %v3232_v34  ;;  %v3014_v48 = vadd.f32 %v3013_v63, %v5643_v31  ;;  %v3015_v3 = vpop.f32.mrb[141].mxu0 }
 0x443   : > { %3297 = vst [vmem:[%s5657_s12 + $0x158] sm:$0xff] %v3233_v18  ;;  %v3016_v15 = vadd.f32 %v3015_v3, %v5645_v2  ;;  %v3017_v44 = vpop.f32.mrb[142].mxu0  ;;  %v3118_v18 = vld [vmem:[%s4177_s15 + $0x1c0] sm:$0xff] }
 0x444   : > { %v3170_v41 = vadd.f32 %v3106_v51, %v3014_v48  ;;  %v3018_v17 = vadd.f32 %v3017_v44, %v5643_v31  ;;  %v3019_v59 = vpop.f32.mrb[143].mxu0  ;;  %v3119_v48 = vld [vmem:[%s4177_s15 + $0x1c8] sm:$0xff] }
 0x445   : > { %v3171_v10 = vadd.f32 %v3107_v16, %v3016_v15  ;;  %v3020_v28 = vadd.f32 %v3019_v59, %v5645_v2  ;;  %v3120_v15 = vld [vmem:[%s4177_s15 + $0x1d0] sm:$0xff] }
 0x446   : > { %v3234_v45 = vmax.f32 %v3170_v41, 0.0  ;;  %v3172_v32 = vadd.f32 %v3108_v37, %v3018_v17  ;;  %v3121_v17 = vld [vmem:[%s4177_s15 + $0x1d8] sm:$0xff] }
 0x447   : > { %v3235_v47 = vmax.f32 %v3171_v10, 0.0  ;;  %v3173_v54 = vadd.f32 %v3109_v6, %v3020_v28 }
 0x448   : > { %3298 = vst [vmem:[%s5657_s12 + $0x160] sm:$0xff] %v3234_v45  ;;  %v3236_v56 = vmax.f32 %v3172_v32, 0.0 }
 0x449   : > { %3299 = vst [vmem:[%s5657_s12 + $0x168] sm:$0xff] %v3235_v47  ;;  %v3237_v33 = vmax.f32 %v3173_v54, 0.0  ;;  %v3023_v42 = vpop.f32.mrb[144].mxu0 }
 0x44a   : > { %3300 = vst [vmem:[%s5657_s12 + $0x170] sm:$0xff] %v3236_v56  ;;  %v3024_v14 = vadd.f32 %v3023_v42, %v5643_v31  ;;  %v3025_v35 = vpop.f32.mrb[145].mxu0 }
 0x44b   : > { %3301 = vst [vmem:[%s5657_s12 + $0x178] sm:$0xff] %v3237_v33  ;;  %v3026_v38 = vadd.f32 %v3025_v35, %v5645_v2  ;;  %v3027_v22 = vpop.f32.mrb[146].mxu0  ;;  %v3122_v33 = vld [vmem:[%s4177_s15 + $0x1e0] sm:$0xff] }
 0x44c   : > { %v3174_v7 = vadd.f32 %v3110_v55, %v3024_v14  ;;  %v3028_v13 = vadd.f32 %v3027_v22, %v5643_v31  ;;  %v3029_v53 = vpop.f32.mrb[147].mxu0  ;;  %v3123_v14 = vld [vmem:[%s4177_s15 + $0x1e8] sm:$0xff] }
 0x44d   : > { %v3175_v60 = vadd.f32 %v3111_v25, %v3026_v38  ;;  %v3030_v39 = vadd.f32 %v3029_v53, %v5645_v2  ;;  %v3124_v38 = vld [vmem:[%s4177_s15 + $0x1f0] sm:$0xff] }
 0x44e   : > { %v3238_v46 = vmax.f32 %v3174_v7, 0.0  ;;  %v3176_v61 = vadd.f32 %v3112_v1, %v3028_v13  ;;  %v3125_v13 = vld [vmem:[%s4177_s15 + $0x1f8] sm:$0xff]  ;;  %s3951_s15 = scalar_lea.vmem %s5847_s9, 8192 }
 0x44f   : > { %v3239_v30 = vmax.f32 %v3175_v60, 0.0  ;;  %v3177_v20 = vadd.f32 %v3113_v4, %v3030_v39  ;;  %p3952_p6 = scmp.ne.s32.totalorder %s5847_s9, %s3951_s15  ;;  %p3959_p10 = scmp.lt.s32.totalorder %s3957_s23, %s3951_s15 }
 0x450   : > { %3302 = vst [vmem:[%s5657_s12 + $0x180] sm:$0xff] %v3238_v46  ;;  %v3240_v11 = vmax.f32 %v3176_v61, 0.0 }
 0x451   : > { %3303 = vst [vmem:[%s5657_s12 + $0x188] sm:$0xff] %v3239_v30  ;;  %v3241_v40 = vmax.f32 %v3177_v20, 0.0  ;;  %v3033_v27 = vpop.f32.mrb[148].mxu0  ;;  %p3953_p12 = pnand %p3952_p6, %p5996_p11  ;;  %p3960_p0 = por %p3959_p10, %p3958_p8 }
 0x452   : > { %3304 = vst [vmem:[%s5657_s12 + $0x190] sm:$0xff] %v3240_v11  ;;  %v3034_v9 = vadd.f32 %v3033_v27, %v5643_v31  ;;  %v3035_v57 = vpop.f32.mrb[149].mxu0 }
 0x453   : > { %3305 = vst [vmem:[%s5657_s12 + $0x198] sm:$0xff] %v3241_v40  ;;  %v3036_v50 = vadd.f32 %v3035_v57, %v5645_v2  ;;  %v3037_v62 = vpop.f32.mrb[150].mxu0  ;;  %p3954_p13 = pneg %p3953_p12 }
 0x454   : > { %v3178_v52 = vadd.f32 %v3114_v8, %v3034_v9  ;;  %v3038_v29 = vadd.f32 %v3037_v62, %v5643_v31  ;;  %v3039_v49 = vpop.f32.mrb[151].mxu0 }
 0x455   : > { %v3179_v26 = vadd.f32 %v3115_v12, %v3036_v50  ;;  %v3040_v0 = vadd.f32 %v3039_v49, %v5645_v2  ;;  %p3961_p2 = pnand %p3960_p0, %p3954_p13 }
 0x456   : > { %v3242_v43 = vmax.f32 %v3178_v52, 0.0  ;;  %v3180_v58 = vadd.f32 %v3116_v36, %v3038_v29 }
 0x457   : > { %v3243_v19 = vmax.f32 %v3179_v26, 0.0  ;;  %v3181_v23 = vadd.f32 %v3117_v5, %v3040_v0 }
 0x458   : > { %3306 = vst [vmem:[%s5657_s12 + $0x1a0] sm:$0xff] %v3242_v43  ;;  %v3244_v24 = vmax.f32 %v3180_v58, 0.0 }
 0x459   : > { %3307 = vst [vmem:[%s5657_s12 + $0x1a8] sm:$0xff] %v3243_v19  ;;  %v3245_v21 = vmax.f32 %v3181_v23, 0.0  ;;  %v3043_v34 = vpop.f32.mrb[152].mxu0 }
 0x45a   : > { %3308 = vst [vmem:[%s5657_s12 + $0x1b0] sm:$0xff] %v3244_v24  ;;  %v3044_v63 = vadd.f32 %v3043_v34, %v5643_v31  ;;  %v3045_v51 = vpop.f32.mrb[153].mxu0 }
 0x45b   : > { %3309 = vst [vmem:[%s5657_s12 + $0x1b8] sm:$0xff] %v3245_v21  ;;  %v3046_v3 = vadd.f32 %v3045_v51, %v5645_v2  ;;  %v3047_v16 = vpop.f32.mrb[154].mxu0 }
 0x45c   : > { %v3182_v44 = vadd.f32 %v3118_v18, %v3044_v63  ;;  %v3048_v37 = vadd.f32 %v3047_v16, %v5643_v31  ;;  %v3049_v41 = vpop.f32.mrb[155].mxu0 }
 0x45d   : > { %v3183_v59 = vadd.f32 %v3119_v48, %v3046_v3  ;;  %v3050_v6 = vadd.f32 %v3049_v41, %v5645_v2 }
 0x45e   : > { %v3246_v10 = vmax.f32 %v3182_v44, 0.0  ;;  %v3184_v28 = vadd.f32 %v3120_v15, %v3048_v37 }
 0x45f   : > { %v3247_v45 = vmax.f32 %v3183_v59, 0.0  ;;  %v3185_v32 = vadd.f32 %v3121_v17, %v3050_v6 }
 0x460   : > { %3310 = vst [vmem:[%s5657_s12 + $0x1c0] sm:$0xff] %v3246_v10  ;;  %v3248_v47 = vmax.f32 %v3184_v28, 0.0 }
 0x461   : > { %3311 = vst [vmem:[%s5657_s12 + $0x1c8] sm:$0xff] %v3247_v45  ;;  %v3249_v54 = vmax.f32 %v3185_v32, 0.0  ;;  %v3053_v56 = vpop.f32.mrb[156].mxu0 }
 0x462   : > { %3312 = vst [vmem:[%s5657_s12 + $0x1d0] sm:$0xff] %v3248_v47  ;;  %v3054_v42 = vadd.f32 %v3053_v56, %v5643_v31  ;;  %v3055_v55 = vpop.f32.mrb[157].mxu0 }
 0x463   : > { %3313 = vst [vmem:[%s5657_s12 + $0x1d8] sm:$0xff] %v3249_v54  ;;  %v3056_v35 = vadd.f32 %v3055_v55, %v5645_v2  ;;  %v3057_v25 = vpop.f32.mrb[158].mxu0 }
 0x464   : > { %v3186_v22 = vadd.f32 %v3122_v33, %v3054_v42  ;;  %v3058_v1 = vadd.f32 %v3057_v25, %v5643_v31  ;;  %v3059_v7 = vpop.f32.mrb[159].mxu0 }
 0x465   : > { %v3187_v53 = vadd.f32 %v3123_v14, %v3056_v35  ;;  %v3060_v4 = vadd.f32 %v3059_v7, %v5645_v2 }
 0x466   : > { %v3250_v60 = vmax.f32 %v3186_v22, 0.0  ;;  %v3188_v39 = vadd.f32 %v3124_v38, %v3058_v1 }
 0x467   : > { %v3251_v46 = vmax.f32 %v3187_v53, 0.0  ;;  %v3189_v61 = vadd.f32 %v3125_v13, %v3060_v4 }
 0x468   : > { %3314 = vst [vmem:[%s5657_s12 + $0x1e0] sm:$0xff] %v3250_v60  ;;  %v3252_v30 = vmax.f32 %v3188_v39, 0.0 }
 0x469   : > { %3315 = vst [vmem:[%s5657_s12 + $0x1e8] sm:$0xff] %v3251_v46  ;;  %v3253_v31 = vmax.f32 %v3189_v61, 0.0 }
 0x46a   : > { %3316 = vst [vmem:[%s5657_s12 + $0x1f0] sm:$0xff] %v3252_v30 }
 0x46b   : > { %3317 = vst [vmem:[%s5657_s12 + $0x1f8] sm:$0xff] %v3253_v31 }
 0x46c   : > { %3964 = shalt.err (!%p3961_p2)
}
 0x46d   : > { %s3965_s29 = scalar_lea.hbm %s5845_s18, 8192  ;;  %s3969_s12 = scalar_lea.hbm %s5901_s7, 16384 }
 0x46e   : > { %p3966_p4 = scmp.ne.s32.totalorder %s5845_s18, %s3965_s29  ;;  %p3970_p9 = scmp.lt.u32.totalorder %s5845_s18, %s5901_s7 }
 0x46f   : > { %p3971_p1 = scmp.lt.u32.totalorder %s3969_s12, %s3965_s29  ;;  %p3973_p6 = scmp.lt.u32.totalorder %s3965_s29, %s5845_s18 }
 0x470   : > { %p3967_p5 = pnand %p3966_p4, %p5996_p11 }
 0x471   : > { %p3972_p3 = por %p3971_p1, %p3970_p9 }
 0x472   : > { %p3968_p7 = pneg %p3967_p5 }
 0x473   : > { %p3974_p12 = por %p3973_p6, %p3972_p3 }
 0x475   : > { %p3975_p13 = pnand %p3974_p12, %p3968_p7 }
 0x477   : > { %3978 = shalt.err (!%p3975_p13)
}
 0x478   : > { %s4025_s11 = smov 256   ;;  %s4026_s15 = smov 16  }
 0x479   : > { %3725 = dma.vmem_to_hbm [thread:$0]  (%p5996_p11), %s5847_s9, 8192, %s5845_s18, %s3319_s28, %s4025_s11, %s4025_s11, %s4026_s15  }
 0x47a PF: > { %s3347_s20 = sand.u32 1, %s4005_s24   ;;  %p5997_p8 = scmp.ne.s32.totalorder %s5919_s14, 0 }
 0x47b   : > { %p5998_p10 = scmp.ge.s32.totalorder %s4017_s27, 2  ;;  %s3348_s22 = scalar_lea.sflag [#allocation5], %s3347_s20 }
 0x47d   : > { %p3732_p0 = pnand %p5998_p10, %p5997_p8 }
 0x47f   : > { %4000 = dma.done.wait (!%p3732_p0), %s3348_s22, 8192  }
 0x480   : > { %4002 = vsyncadd (!%p3732_p0), %s3348_s22, 4294959104  ;;  %p20_p2 = scmp.ge.s32.totalorder %s4092_s30, 4   ;;  %s5999_s24 = smov %s4009_s25 }
 0x481   : > { %s6000_s25 = smov %s4013_s26  ;;  %s6001_s26 = smov %s4104_s10 }
 0x482   : > { %s6002_s27 = smov %s4092_s30  ;;  %22 = sbr.rel (!%p20_p2) target bundleno = 5 (0x5), region = 98 }
 0x489   :  { %3353 = vsyncpa [#allocation4], 1 }
 0x48a   :  { %3355 = vsyncpa [#allocation4 + $0x1], 1 }
 0x48b   :  { %3356 = vsyncpa [#allocation5], 1 }
 0x48c   :  { %3358 = vsyncpa [#allocation5 + $0x1], 1 }

</bundles_post_ra>
